<compile_context>
chip_gen: v5e
topology: v5e:2x2
jax: 0.10.0
libtpu: 0.0.40
codegen_flags: <defaults>
</compile_context>

<pallas_src>
import math
from functools import partial

import jax
import jax.numpy as jnp
import numpy as np
from jax.experimental import pallas as pl
from jax.experimental.pallas import tpu as pltpu

EPS = 1e-5  # torch.nn.LayerNorm default eps

# Row indices of the packed per-layer vector table (each row has length E).
_LN1_W, _LN1_B, _LN2_W, _LN2_B, _LN3_W, _LN3_B = 0, 1, 2, 3, 4, 5
_SA_BQ, _SA_BK, _SA_BV, _SA_BO = 6, 7, 8, 9        # (Q bias already scaled)
_CA_BQ, _CA_BK, _CA_BV, _CA_BO = 10, 11, 12, 13
_B2 = 14
_N_VEC_ROWS = 16  # padded to a sublane multiple


# ----------------------------- in-kernel helpers -----------------------------

def _erf(z):
    # Abramowitz & Stegun 7.1.26, |abs err| < 1.5e-7 (~f32 eps). Matches
    # torch.nn.GELU() (exact erf) to float32 precision using only exp/mul/add.
    a = jnp.abs(z)
    t = 1.0 / (1.0 + 0.3275911 * a)
    poly = t * (0.254829592 + t * (-0.284496736 + t * (1.421413741
             + t * (-1.453152027 + t * 1.061405429))))
    e = 1.0 - poly * jnp.exp(-a * a)
    return jnp.where(z >= 0.0, e, -e)


def _gelu_exact(x):
    return 0.5 * x * (1.0 + _erf(x * 0.7071067811865476))


# --------------------------------- kernel ------------------------------------

def _decoder_kernel(
    tgt_ref, mem_ref, mask_ref, vec_ref,
    wqo_ref, wkv_ref, w1_ref, b1_ref, w2_ref,
    out_ref,
    act_ref, ctx_ref,
    *, num_heads, head_dim, b_chunk, t_len, s_len):
    """grid = (batch_chunk, layer). Activation resident in act_ref across layers."""
    l = pl.program_id(1)

    # Layer 0: seed the resident activation with the input tokens.
    @pl.when(l == 0)
    def _():
        act_ref[...] = tgt_ref[...]

    x = act_ref[...]          # (Bc*T, E) running activation (f32, VMEM-resident)
    mem = mem_ref[...]        # (Bc*S, E)
    vec = vec_ref[...]        # (_N_VEC_ROWS, E) packed LN weights / biases (f32)
    E = x.shape[-1]
    inv_e = 1.0 / E

    def row(i):               # (1, E) broadcastable row from the packed table
        return vec[i:i + 1, :]

    def layernorm(z, w, b):
        mu = jnp.sum(z, axis=-1, keepdims=True) * inv_e
        d = z - mu
        var = jnp.sum(d * d, axis=-1, keepdims=True) * inv_e
        return d * jax.lax.rsqrt(var + EPS) * w + b

    def mha(q_in, kv_in, wq, wk, wv, wo, bq, bk, bv, bo, tk, mask_add):
        # Fused, lane-dense projections on the whole (Bc*T, E) / (Bc*tk, E)
        # activation.  Weights are bf16 (promoted to f32), accumulate in f32.
        q = jnp.dot(q_in, wq, preferred_element_type=jnp.float32) + bq   # scale folded
        k = jnp.dot(kv_in, wk, preferred_element_type=jnp.float32) + bk
        v = jnp.dot(kv_in, wv, preferred_element_type=jnp.float32) + bv

        # --- scores for every (batch, head) pair, stacked along sublanes ---
        parts = []
        for b in range(b_chunk):
            qb = q[b * t_len:(b + 1) * t_len, :]
            kb = k[b * tk:(b + 1) * tk, :]
            for h in range(num_heads):
                lo = h * head_dim
                s = jax.lax.dot_general(
                    qb[:, lo:lo + head_dim], kb[:, lo:lo + head_dim],
                    (((1,), (1,)), ((), ())),
                    preferred_element_type=jnp.float32)        # (T, tk)
                parts.append(s)
        s_all = jnp.concatenate(parts, axis=0)                 # (Bc*H*T, tk)
        if mask_add is not None:
            s_all = s_all + mask_add                           # resident causal mask

        # --- one batched softmax for all (batch, head) tiles ---
        m = jnp.max(s_all, axis=-1, keepdims=True)
        e = jnp.exp(s_all - m)
        p_all = e / jnp.sum(e, axis=-1, keepdims=True)         # exact reciprocal

        # --- per-(batch, head) context into a preallocated VMEM scratch ---
        r = 0
        for b in range(b_chunk):
            for h in range(num_heads):
                lo = h * head_dim
                p = p_all[r * t_len:(r + 1) * t_len, :]        # (T, tk)
                vbh = v[b * tk:(b + 1) * tk, lo:lo + head_dim]  # (tk, Dh)
                ctx_ref[b * t_len:(b + 1) * t_len, lo:lo + head_dim] = jnp.dot(
                    p, vbh, preferred_element_type=jnp.float32)
                r += 1
        ctx = ctx_ref[...]                                     # (Bc*T, E)
        # Single fused output projection on the full context.
        return jnp.dot(ctx, wo, preferred_element_type=jnp.float32) + bo

    # --- self-attention block (pre-norm, residual), causal mask ---
    xn = layernorm(x, row(_LN1_W), row(_LN1_B))
    x = x + mha(xn, xn, wqo_ref[0], wkv_ref[0], wkv_ref[1], wqo_ref[1],
                row(_SA_BQ), row(_SA_BK), row(_SA_BV), row(_SA_BO),
                t_len, mask_ref[...])

    # --- cross-attention block (queries from x, keys/values from mem) ---
    xn = layernorm(x, row(_LN2_W), row(_LN2_B))
    x = x + mha(xn, mem, wqo_ref[2], wkv_ref[2], wkv_ref[3], wqo_ref[3],
                row(_CA_BQ), row(_CA_BK), row(_CA_BV), row(_CA_BO),
                s_len, None)

    # --- MLP: Linear(E,4E) -> GELU(exact) -> Dropout(eval: identity) -> Linear(4E,E)
    xn = layernorm(x, row(_LN3_W), row(_LN3_B))
    h = _gelu_exact(jnp.dot(xn, w1_ref[...], preferred_element_type=jnp.float32)
                    + b1_ref[...])
    x = x + jnp.dot(h, w2_ref[...], preferred_element_type=jnp.float32) + row(_B2)

    act_ref[...] = x

    @pl.when(l == pl.num_programs(1) - 1)
    def _():
        out_ref[...] = x


# -------------------------------- wrapper -------------------------------------

def decoder_forward_pallas(tgt, mem, stacked, *, num_heads, batch_chunks=1):
    """Whole decoder stack (cache=False) in a single pallas_call.

    batch_chunks=1: best for v5e/v6e (weights fetched once per layer).
    batch_chunks=2: leading parallel grid axis so v7x's 2nd TensorCore is used.
    """
    # TODO(synk): cache=True incremental-decoding path (stateful tgt_cache) not implemented.
    B, T, E = tgt.shape
    S = mem.shape[1]
    L = stacked['vecs'].shape[0]
    head_dim = E // num_heads
    C = batch_chunks
    assert B % C == 0
    Bc = B // C

    # Fold batch into the (token) block: (B,T,E) -> (C, Bc*T, E).
    tgt_r = tgt.reshape(C, Bc * T, E)
    mem_r = mem.reshape(C, Bc * S, E)

    # Additive causal mask, pre-tiled over (batch-chunk, heads); constant
    # index_map keeps it resident in VMEM across all grid steps.
    rr = jax.lax.broadcasted_iota(jnp.int32, (T, T), 0)
    cc = jax.lax.broadcasted_iota(jnp.int32, (T, T), 1)
    mask = jnp.where(cc > rr, -1e30, 0.0).astype(jnp.float32)
    mask = jnp.tile(mask, (Bc * num_heads, 1))                 # (Bc*H*T, T)

    kernel = partial(_decoder_kernel, num_heads=num_heads, head_dim=head_dim,
                     b_chunk=Bc, t_len=T, s_len=S)

    in_specs = [
        pl.BlockSpec((None, Bc * T, E), lambda c, l: (c, 0, 0)),          # tgt
        pl.BlockSpec((None, Bc * S, E), lambda c, l: (c, 0, 0)),          # mem
        pl.BlockSpec((Bc * num_heads * T, T), lambda c, l: (0, 0)),       # causal mask
        pl.BlockSpec((None, _N_VEC_ROWS, E), lambda c, l: (l, 0, 0)),     # packed vectors
        pl.BlockSpec((None, 4, E, E), lambda c, l: (l, 0, 0, 0)),         # [sa_wq|sa_wo|ca_wq|ca_wo]
        pl.BlockSpec((None, 4, E, E), lambda c, l: (l, 0, 0, 0)),         # [sa_wk|sa_wv|ca_wk|ca_wv]
        pl.BlockSpec((None, E, 4 * E), lambda c, l: (l, 0, 0)),           # mlp w1
        pl.BlockSpec((None, 1, 4 * E), lambda c, l: (l, 0, 0)),           # mlp b1
        pl.BlockSpec((None, 4 * E, E), lambda c, l: (l, 0, 0)),           # mlp w2
    ]

    out = pl.pallas_call(
        kernel,
        out_shape=jax.ShapeDtypeStruct((C, Bc * T, E), jnp.float32),
        grid_spec=pltpu.PrefetchScalarGridSpec(
            num_scalar_prefetch=0,
            grid=(C, L),                       # layer axis innermost (sequential)
            in_specs=in_specs,
            out_specs=pl.BlockSpec((None, Bc * T, E), lambda c, l: (c, 0, 0)),
            scratch_shapes=[pltpu.VMEM((Bc * T, E), jnp.float32),   # resident activation
                            pltpu.VMEM((Bc * T, E), jnp.float32)],  # attention context
        ),
        compiler_params=pltpu.CompilerParams(
            dimension_semantics=("parallel", "arbitrary")),
    )(tgt_r, mem_r, mask, stacked['vecs'],
      stacked['wqo'], stacked['wkv'],
      stacked['w1'], stacked['b1'], stacked['w2'])
    return out.reshape(B, T, E)


# ------------------------- parameter init / packing ---------------------------

def init_layer_params_raw(key, E, scale=0.02):
    """Deterministic synthetic parameters in PyTorch layout."""
    ks = jax.random.split(key, 12)
    nrm = lambda k, s: scale * jax.random.normal(k, s, jnp.float32)
    return {
        'ln1_w': jnp.ones((E,), jnp.float32), 'ln1_b': jnp.zeros((E,), jnp.float32),
        'ln2_w': jnp.ones((E,), jnp.float32), 'ln2_b': jnp.zeros((E,), jnp.float32),
        'ln3_w': jnp.ones((E,), jnp.float32), 'ln3_b': jnp.zeros((E,), jnp.float32),
        'sa_in_w': nrm(ks[0], (3 * E, E)), 'sa_in_b': nrm(ks[1], (3 * E,)),
        'sa_out_w': nrm(ks[2], (E, E)),    'sa_out_b': nrm(ks[3], (E,)),
        'ca_in_w': nrm(ks[4], (3 * E, E)), 'ca_in_b': nrm(ks[5], (3 * E,)),
        'ca_out_w': nrm(ks[6], (E, E)),    'ca_out_b': nrm(ks[7], (E,)),
        'w1': nrm(ks[8], (4 * E, E)),      'b1': nrm(ks[9], (4 * E,)),
        'w2': nrm(ks[10], (E, 4 * E)),     'b2': nrm(ks[11], (E,)),
    }


def pack_decoder_params(raw_layers, E, num_heads):
    """Torch-layout per-layer params -> fused, consolidated, layer-stacked layout.

    1/sqrt(head_dim) is folded into the Q projections / biases; matmul weights
    are stored bf16 (halves per-layer weight DMA), biases / LN params stay f32.
    """
    head_dim = E // num_heads
    scale = 1.0 / math.sqrt(head_dim)

    def one(raw):
        sa_w, sa_b = raw['sa_in_w'], raw['sa_in_b']
        ca_w, ca_b = raw['ca_in_w'], raw['ca_in_b']
        vec = jnp.zeros((_N_VEC_ROWS, E), jnp.float32)
        rows = {
            _LN1_W: raw['ln1_w'], _LN1_B: raw['ln1_b'],
            _LN2_W: raw['ln2_w'], _LN2_B: raw['ln2_b'],
            _LN3_W: raw['ln3_w'], _LN3_B: raw['ln3_b'],
            _SA_BQ: sa_b[:E] * scale, _SA_BK: sa_b[E:2 * E], _SA_BV: sa_b[2 * E:],
            _SA_BO: raw['sa_out_b'],
            _CA_BQ: ca_b[:E] * scale, _CA_BK: ca_b[E:2 * E], _CA_BV: ca_b[2 * E:],
            _CA_BO: raw['ca_out_b'],
            _B2: raw['b2'],
        }
        for i, v in rows.items():
            vec = vec.at[i].set(v)
        wqo = jnp.stack([sa_w[:E].T * scale, raw['sa_out_w'].T,
                         ca_w[:E].T * scale, raw['ca_out_w'].T], axis=0)
        wkv = jnp.stack([sa_w[E:2 * E].T, sa_w[2 * E:].T,
                         ca_w[E:2 * E].T, ca_w[2 * E:].T], axis=0)
        return {
            'vecs': vec,
            'wqo': wqo.astype(jnp.bfloat16),
            'wkv': wkv.astype(jnp.bfloat16),
            'w1': raw['w1'].T.astype(jnp.bfloat16),
            'b1': raw['b1'].reshape(1, 4 * E),
            'w2': raw['w2'].T.astype(jnp.bfloat16),
        }

    per = [one(r) for r in raw_layers]
    return {k: jnp.stack([p[k] for p in per], axis=0) for k in per[0]}


# ------------------------------ pure-JAX reference ----------------------------

def reference_layer(tgt, mem, raw, num_heads):
    E = tgt.shape[-1]
    D = E // num_heads

    def ln(x, w, b):
        mu = x.mean(-1, keepdims=True)
        var = ((x - mu) ** 2).mean(-1, keepdims=True)
        return (x - mu) / jnp.sqrt(var + EPS) * w + b

    def mha(q_in, kv_in, in_w, in_b, out_w, out_b, causal):
        B, tq, _ = q_in.shape
        tk = kv_in.shape[1]
        wq, wk, wv = in_w[:E], in_w[E:2 * E], in_w[2 * E:]
        bq, bk, bv = in_b[:E], in_b[E:2 * E], in_b[2 * E:]
        q = (q_in @ wq.T + bq).reshape(B, tq, num_heads, D).transpose(0, 2, 1, 3)
        k = (kv_in @ wk.T + bk).reshape(B, tk, num_heads, D).transpose(0, 2, 1, 3)
        v = (kv_in @ wv.T + bv).reshape(B, tk, num_heads, D).transpose(0, 2, 1, 3)
        s = (q @ jnp.swapaxes(k, -1, -2)) / math.sqrt(D)
        if causal:
            mask = jnp.triu(jnp.ones((tq, tk), bool), k=1)
            s = jnp.where(mask, -jnp.inf, s)
        p = jax.nn.softmax(s, axis=-1)
        ctx = (p @ v).transpose(0, 2, 1, 3).reshape(B, tq, E)
        return ctx @ out_w.T + out_b

    out = tgt
    t_n = ln(tgt, raw['ln1_w'], raw['ln1_b'])
    out = out + mha(t_n, t_n, raw['sa_in_w'], raw['sa_in_b'],
                    raw['sa_out_w'], raw['sa_out_b'], True)
    o_n = ln(out, raw['ln2_w'], raw['ln2_b'])
    out = out + mha(o_n, mem, raw['ca_in_w'], raw['ca_in_b'],
                    raw['ca_out_w'], raw['ca_out_b'], False)
    o_n = ln(out, raw['ln3_w'], raw['ln3_b'])
    h = jax.nn.gelu(o_n @ raw['w1'].T + raw['b1'], approximate=False)
    out = out + h @ raw['w2'].T + raw['b2']
    return out


# ---------------------------------- main --------------------------------------

if __name__ == "__main__":
    key = jax.random.PRNGKey(0)
    B, T, S, E, H = 2, 8, 8, 64, 8       # batch, tgt tokens, mem tokens, embed, heads
    n_layers = 2
    n_token_max = 10
    assert T < n_token_max, "n_tokens must be < n_token_max (torch assert)"

    k1, k2, k3 = jax.random.split(key, 3)
    tgt = jax.random.normal(k1, (B, T, E), jnp.float32)
    mem = jax.random.normal(k2, (B, S, E), jnp.float32)

    layer_keys = jax.random.split(k3, n_layers)
    raw_params = [init_layer_params_raw(k, E) for k in layer_keys]
    stacked = pack_decoder_params(raw_params, E, H)

    out = decoder_forward_pallas(tgt, mem, stacked, num_heads=H, batch_chunks=1)
    out = jax.block_until_ready(out)

    # cross-check against a pure-JAX reference of the torch forward
    ref = tgt
    for r in raw_params:
        ref = reference_layer(ref, mem, r, H)
    np.testing.assert_allclose(np.asarray(out), np.asarray(ref), atol=2e-3, rtol=2e-3)

    print("KERNEL_OK")
</pallas_src>

<mosaic_0001>
module attributes {stable_mosaic.version = 11 : i64} {
  func.func @_decoder_kernel(%arg0: i32, %arg1: i32, %arg2: memref<1x16x64xf32, #tpu.memory_space<vmem>>, %arg3: memref<1x16x64xf32, #tpu.memory_space<vmem>>, %arg4: memref<128x8xf32, #tpu.memory_space<vmem>>, %arg5: memref<1x16x64xf32, #tpu.memory_space<vmem>>, %arg6: memref<1x4x64x64xbf16, #tpu.memory_space<vmem>>, %arg7: memref<1x4x64x64xbf16, #tpu.memory_space<vmem>>, %arg8: memref<1x64x256xbf16, #tpu.memory_space<vmem>>, %arg9: memref<1x1x256xf32, #tpu.memory_space<vmem>>, %arg10: memref<1x256x64xbf16, #tpu.memory_space<vmem>>, %arg11: memref<1x16x64xf32, #tpu.memory_space<vmem>>, %arg12: memref<16x64xf32, #tpu.memory_space<vmem>>, %arg13: memref<16x64xf32, #tpu.memory_space<vmem>>) attributes {dimension_semantics = [#tpu.dimension_semantics<parallel>, #tpu.dimension_semantics<arbitrary>], iteration_bounds = array<i64: 1, 2>, scalar_prefetch = 0 : i64, scratch_operands = 2 : i64, tpu.core_type = #tpu.core_type<tc>, window_params = [{transform_indices = @transform_0, window_bounds = array<i64: 1, 16, 64>}, {transform_indices = @transform_1, window_bounds = array<i64: 1, 16, 64>}, {pipeline_mode = #tpu.pipeline_mode<synchronous>, transform_indices = @transform_2, window_bounds = array<i64: 128, 8>}, {transform_indices = @transform_3, window_bounds = array<i64: 1, 16, 64>}, {transform_indices = @transform_4, window_bounds = array<i64: 1, 4, 64, 64>}, {transform_indices = @transform_5, window_bounds = array<i64: 1, 4, 64, 64>}, {transform_indices = @transform_6, window_bounds = array<i64: 1, 64, 256>}, {transform_indices = @transform_7, window_bounds = array<i64: 1, 1, 256>}, {transform_indices = @transform_8, window_bounds = array<i64: 1, 256, 64>}, {transform_indices = @transform_9, window_bounds = array<i64: 1, 16, 64>}]} {
    %c0_i32 = arith.constant 0 : i32
    %0 = arith.cmpi eq, %arg1, %c0_i32 : i32
    %1 = arith.extui %0 : i1 to i32
    %c0_i32_0 = arith.constant 0 : i32
    %2 = arith.cmpi ne, %1, %c0_i32_0 : i32
    scf.if %2 {
      %c0_219 = arith.constant 0 : index
      %c0_220 = arith.constant 0 : index
      %c0_221 = arith.constant 0 : index
      %438 = vector.load %arg2[%c0_219, %c0_220, %c0_221] : memref<1x16x64xf32, #tpu.memory_space<vmem>>, vector<1x16x64xf32>
      %439 = vector.shape_cast %438 : vector<1x16x64xf32> to vector<16x64xf32>
      %c0_222 = arith.constant 0 : index
      %c0_223 = arith.constant 0 : index
      %440 = vector.load %arg12[%c0_222, %c0_223] : memref<16x64xf32, #tpu.memory_space<vmem>>, vector<16x64xf32>
      tpu.vector_store %arg12[%c0_222, %c0_223], %439 {strides = array<i32>} : memref<16x64xf32, #tpu.memory_space<vmem>>, vector<16x64xf32>,
    } else {
    }
    %c0 = arith.constant 0 : index
    %c0_1 = arith.constant 0 : index
    %3 = vector.load %arg12[%c0, %c0_1] : memref<16x64xf32, #tpu.memory_space<vmem>>, vector<16x64xf32>
    %c0_2 = arith.constant 0 : index
    %c0_3 = arith.constant 0 : index
    %c0_4 = arith.constant 0 : index
    %4 = vector.load %arg3[%c0_2, %c0_3, %c0_4] : memref<1x16x64xf32, #tpu.memory_space<vmem>>, vector<1x16x64xf32>
    %5 = vector.shape_cast %4 : vector<1x16x64xf32> to vector<16x64xf32>
    %c0_5 = arith.constant 0 : index
    %c0_6 = arith.constant 0 : index
    %c0_7 = arith.constant 0 : index
    %6 = vector.load %arg5[%c0_5, %c0_6, %c0_7] : memref<1x16x64xf32, #tpu.memory_space<vmem>>, vector<1x16x64xf32>
    %7 = vector.shape_cast %6 : vector<1x16x64xf32> to vector<16x64xf32>
    %8 = vector.extract_strided_slice %7 {offsets = [0, 0], sizes = [1, 64], strides = [1, 1]} : vector<16x64xf32> to vector<1x64xf32>
    %9 = vector.extract_strided_slice %7 {offsets = [1, 0], sizes = [1, 64], strides = [1, 1]} : vector<16x64xf32> to vector<1x64xf32>
    %cst = arith.constant dense<0.000000e+00> : vector<16xf32>
    %10 = vector.multi_reduction <add>, %3, %cst [1] : vector<16x64xf32> to vector<16xf32>
    %11 = vector.shape_cast %10 : vector<16xf32> to vector<16x1xf32>
    %cst_8 = arith.constant 1.562500e-02 : f32
    %12 = vector.broadcast %cst_8 : f32 to vector<16x1xf32>
    %13 = arith.mulf %11, %12 : vector<16x1xf32>
    %14 = vector.broadcast %13 : vector<16x1xf32> to vector<16x64xf32>
    %15 = arith.subf %3, %14 : vector<16x64xf32>
    %16 = arith.mulf %15, %15 : vector<16x64xf32>
    %cst_9 = arith.constant dense<0.000000e+00> : vector<16xf32>
    %17 = vector.multi_reduction <add>, %16, %cst_9 [1] : vector<16x64xf32> to vector<16xf32>
    %18 = vector.shape_cast %17 : vector<16xf32> to vector<16x1xf32>
    %cst_10 = arith.constant 1.562500e-02 : f32
    %19 = vector.broadcast %cst_10 : f32 to vector<16x1xf32>
    %20 = arith.mulf %18, %19 : vector<16x1xf32>
    %cst_11 = arith.constant 9.99999974E-6 : f32
    %21 = vector.broadcast %cst_11 : f32 to vector<16x1xf32>
    %22 = arith.addf %20, %21 : vector<16x1xf32>
    %23 = math.rsqrt %22 : vector<16x1xf32>
    %24 = vector.broadcast %23 : vector<16x1xf32> to vector<16x64xf32>
    %25 = arith.mulf %15, %24 : vector<16x64xf32>
    %26 = vector.broadcast %8 : vector<1x64xf32> to vector<16x64xf32>
    %27 = arith.mulf %25, %26 : vector<16x64xf32>
    %28 = vector.broadcast %9 : vector<1x64xf32> to vector<16x64xf32>
    %29 = arith.addf %27, %28 : vector<16x64xf32>
    %c0_12 = arith.constant 0 : index
    %c0_13 = arith.constant 0 : index
    %c0_14 = arith.constant 0 : index
    %c0_15 = arith.constant 0 : index
    %30 = vector.load %arg6[%c0_12, %c0_13, %c0_14, %c0_15] : memref<1x4x64x64xbf16, #tpu.memory_space<vmem>>, vector<1x1x64x64xbf16>
    %31 = vector.shape_cast %30 : vector<1x1x64x64xbf16> to vector<64x64xbf16>
    %c0_16 = arith.constant 0 : index
    %c0_17 = arith.constant 0 : index
    %c0_18 = arith.constant 0 : index
    %c0_19 = arith.constant 0 : index
    %32 = vector.load %arg7[%c0_16, %c0_17, %c0_18, %c0_19] : memref<1x4x64x64xbf16, #tpu.memory_space<vmem>>, vector<1x1x64x64xbf16>
    %33 = vector.shape_cast %32 : vector<1x1x64x64xbf16> to vector<64x64xbf16>
    %c0_20 = arith.constant 0 : index
    %c1 = arith.constant 1 : index
    %c0_21 = arith.constant 0 : index
    %c0_22 = arith.constant 0 : index
    %34 = vector.load %arg7[%c0_20, %c1, %c0_21, %c0_22] : memref<1x4x64x64xbf16, #tpu.memory_space<vmem>>, vector<1x1x64x64xbf16>
    %35 = vector.shape_cast %34 : vector<1x1x64x64xbf16> to vector<64x64xbf16>
    %c0_23 = arith.constant 0 : index
    %c1_24 = arith.constant 1 : index
    %c0_25 = arith.constant 0 : index
    %c0_26 = arith.constant 0 : index
    %36 = vector.load %arg6[%c0_23, %c1_24, %c0_25, %c0_26] : memref<1x4x64x64xbf16, #tpu.memory_space<vmem>>, vector<1x1x64x64xbf16>
    %37 = vector.shape_cast %36 : vector<1x1x64x64xbf16> to vector<64x64xbf16>
    %38 = vector.extract_strided_slice %7 {offsets = [6, 0], sizes = [1, 64], strides = [1, 1]} : vector<16x64xf32> to vector<1x64xf32>
    %39 = vector.extract_strided_slice %7 {offsets = [7, 0], sizes = [1, 64], strides = [1, 1]} : vector<16x64xf32> to vector<1x64xf32>
    %40 = vector.extract_strided_slice %7 {offsets = [8, 0], sizes = [1, 64], strides = [1, 1]} : vector<16x64xf32> to vector<1x64xf32>
    %41 = vector.extract_strided_slice %7 {offsets = [9, 0], sizes = [1, 64], strides = [1, 1]} : vector<16x64xf32> to vector<1x64xf32>
    %c0_27 = arith.constant 0 : index
    %c0_28 = arith.constant 0 : index
    %42 = vector.load %arg4[%c0_27, %c0_28] : memref<128x8xf32, #tpu.memory_space<vmem>>, vector<128x8xf32>
    %cst_29 = arith.constant dense<0.000000e+00> : vector<16x64xf32>
    %43 = tpu.matmul %29, %31, %cst_29 {dimension_numbers = #tpu.dot_dimension_numbers<[1], [0], [0], [1], [0, 0, 1, 1], [], []>} : vector<16x64xf32>, vector<64x64xbf16>, vector<16x64xf32> -> vector<16x64xf32>
    %44 = vector.broadcast %38 : vector<1x64xf32> to vector<16x64xf32>
    %45 = arith.addf %43, %44 : vector<16x64xf32>
    %cst_30 = arith.constant dense<0.000000e+00> : vector<16x64xf32>
    %46 = tpu.matmul %29, %33, %cst_30 {dimension_numbers = #tpu.dot_dimension_numbers<[1], [0], [0], [1], [0, 0, 1, 1], [], []>} : vector<16x64xf32>, vector<64x64xbf16>, vector<16x64xf32> -> vector<16x64xf32>
    %47 = vector.broadcast %39 : vector<1x64xf32> to vector<16x64xf32>
    %48 = arith.addf %46, %47 : vector<16x64xf32>
    %cst_31 = arith.constant dense<0.000000e+00> : vector<16x64xf32>
    %49 = tpu.matmul %29, %35, %cst_31 {dimension_numbers = #tpu.dot_dimension_numbers<[1], [0], [0], [1], [0, 0, 1, 1], [], []>} : vector<16x64xf32>, vector<64x64xbf16>, vector<16x64xf32> -> vector<16x64xf32>
    %50 = vector.broadcast %40 : vector<1x64xf32> to vector<16x64xf32>
    %51 = arith.addf %49, %50 : vector<16x64xf32>
    %52 = vector.extract_strided_slice %45 {offsets = [0, 0], sizes = [8, 64], strides = [1, 1]} : vector<16x64xf32> to vector<8x64xf32>
    %53 = vector.extract_strided_slice %48 {offsets = [0, 0], sizes = [8, 64], strides = [1, 1]} : vector<16x64xf32> to vector<8x64xf32>
    %54 = vector.extract_strided_slice %52 {offsets = [0, 0], sizes = [8, 8], strides = [1, 1]} : vector<8x64xf32> to vector<8x8xf32>
    %55 = vector.extract_strided_slice %53 {offsets = [0, 0], sizes = [8, 8], strides = [1, 1]} : vector<8x64xf32> to vector<8x8xf32>
    %cst_32 = arith.constant dense<0.000000e+00> : vector<8x8xf32>
    %56 = tpu.matmul %54, %55, %cst_32 {dimension_numbers = #tpu.dot_dimension_numbers<[1], [1], [0], [0], [0, 0, 1, 0], [], []>} : vector<8x8xf32>, vector<8x8xf32>, vector<8x8xf32> -> vector<8x8xf32>
    %57 = vector.extract_strided_slice %52 {offsets = [0, 8], sizes = [8, 8], strides = [1, 1]} : vector<8x64xf32> to vector<8x8xf32>
    %58 = vector.extract_strided_slice %53 {offsets = [0, 8], sizes = [8, 8], strides = [1, 1]} : vector<8x64xf32> to vector<8x8xf32>
    %cst_33 = arith.constant dense<0.000000e+00> : vector<8x8xf32>
    %59 = tpu.matmul %57, %58, %cst_33 {dimension_numbers = #tpu.dot_dimension_numbers<[1], [1], [0], [0], [0, 0, 1, 0], [], []>} : vector<8x8xf32>, vector<8x8xf32>, vector<8x8xf32> -> vector<8x8xf32>
    %60 = vector.extract_strided_slice %52 {offsets = [0, 16], sizes = [8, 8], strides = [1, 1]} : vector<8x64xf32> to vector<8x8xf32>
    %61 = vector.extract_strided_slice %53 {offsets = [0, 16], sizes = [8, 8], strides = [1, 1]} : vector<8x64xf32> to vector<8x8xf32>
    %cst_34 = arith.constant dense<0.000000e+00> : vector<8x8xf32>
    %62 = tpu.matmul %60, %61, %cst_34 {dimension_numbers = #tpu.dot_dimension_numbers<[1], [1], [0], [0], [0, 0, 1, 0], [], []>} : vector<8x8xf32>, vector<8x8xf32>, vector<8x8xf32> -> vector<8x8xf32>
    %63 = vector.extract_strided_slice %52 {offsets = [0, 24], sizes = [8, 8], strides = [1, 1]} : vector<8x64xf32> to vector<8x8xf32>
    %64 = vector.extract_strided_slice %53 {offsets = [0, 24], sizes = [8, 8], strides = [1, 1]} : vector<8x64xf32> to vector<8x8xf32>
    %cst_35 = arith.constant dense<0.000000e+00> : vector<8x8xf32>
    %65 = tpu.matmul %63, %64, %cst_35 {dimension_numbers = #tpu.dot_dimension_numbers<[1], [1], [0], [0], [0, 0, 1, 0], [], []>} : vector<8x8xf32>, vector<8x8xf32>, vector<8x8xf32> -> vector<8x8xf32>
    %66 = vector.extract_strided_slice %52 {offsets = [0, 32], sizes = [8, 8], strides = [1, 1]} : vector<8x64xf32> to vector<8x8xf32>
    %67 = vector.extract_strided_slice %53 {offsets = [0, 32], sizes = [8, 8], strides = [1, 1]} : vector<8x64xf32> to vector<8x8xf32>
    %cst_36 = arith.constant dense<0.000000e+00> : vector<8x8xf32>
    %68 = tpu.matmul %66, %67, %cst_36 {dimension_numbers = #tpu.dot_dimension_numbers<[1], [1], [0], [0], [0, 0, 1, 0], [], []>} : vector<8x8xf32>, vector<8x8xf32>, vector<8x8xf32> -> vector<8x8xf32>
    %69 = vector.extract_strided_slice %52 {offsets = [0, 40], sizes = [8, 8], strides = [1, 1]} : vector<8x64xf32> to vector<8x8xf32>
    %70 = vector.extract_strided_slice %53 {offsets = [0, 40], sizes = [8, 8], strides = [1, 1]} : vector<8x64xf32> to vector<8x8xf32>
    %cst_37 = arith.constant dense<0.000000e+00> : vector<8x8xf32>
    %71 = tpu.matmul %69, %70, %cst_37 {dimension_numbers = #tpu.dot_dimension_numbers<[1], [1], [0], [0], [0, 0, 1, 0], [], []>} : vector<8x8xf32>, vector<8x8xf32>, vector<8x8xf32> -> vector<8x8xf32>
    %72 = vector.extract_strided_slice %52 {offsets = [0, 48], sizes = [8, 8], strides = [1, 1]} : vector<8x64xf32> to vector<8x8xf32>
    %73 = vector.extract_strided_slice %53 {offsets = [0, 48], sizes = [8, 8], strides = [1, 1]} : vector<8x64xf32> to vector<8x8xf32>
    %cst_38 = arith.constant dense<0.000000e+00> : vector<8x8xf32>
    %74 = tpu.matmul %72, %73, %cst_38 {dimension_numbers = #tpu.dot_dimension_numbers<[1], [1], [0], [0], [0, 0, 1, 0], [], []>} : vector<8x8xf32>, vector<8x8xf32>, vector<8x8xf32> -> vector<8x8xf32>
    %75 = vector.extract_strided_slice %52 {offsets = [0, 56], sizes = [8, 8], strides = [1, 1]} : vector<8x64xf32> to vector<8x8xf32>
    %76 = vector.extract_strided_slice %53 {offsets = [0, 56], sizes = [8, 8], strides = [1, 1]} : vector<8x64xf32> to vector<8x8xf32>
    %cst_39 = arith.constant dense<0.000000e+00> : vector<8x8xf32>
    %77 = tpu.matmul %75, %76, %cst_39 {dimension_numbers = #tpu.dot_dimension_numbers<[1], [1], [0], [0], [0, 0, 1, 0], [], []>} : vector<8x8xf32>, vector<8x8xf32>, vector<8x8xf32> -> vector<8x8xf32>
    %78 = vector.extract_strided_slice %45 {offsets = [8, 0], sizes = [8, 64], strides = [1, 1]} : vector<16x64xf32> to vector<8x64xf32>
    %79 = vector.extract_strided_slice %48 {offsets = [8, 0], sizes = [8, 64], strides = [1, 1]} : vector<16x64xf32> to vector<8x64xf32>
    %80 = vector.extract_strided_slice %78 {offsets = [0, 0], sizes = [8, 8], strides = [1, 1]} : vector<8x64xf32> to vector<8x8xf32>
    %81 = vector.extract_strided_slice %79 {offsets = [0, 0], sizes = [8, 8], strides = [1, 1]} : vector<8x64xf32> to vector<8x8xf32>
    %cst_40 = arith.constant dense<0.000000e+00> : vector<8x8xf32>
    %82 = tpu.matmul %80, %81, %cst_40 {dimension_numbers = #tpu.dot_dimension_numbers<[1], [1], [0], [0], [0, 0, 1, 0], [], []>} : vector<8x8xf32>, vector<8x8xf32>, vector<8x8xf32> -> vector<8x8xf32>
    %83 = vector.extract_strided_slice %78 {offsets = [0, 8], sizes = [8, 8], strides = [1, 1]} : vector<8x64xf32> to vector<8x8xf32>
    %84 = vector.extract_strided_slice %79 {offsets = [0, 8], sizes = [8, 8], strides = [1, 1]} : vector<8x64xf32> to vector<8x8xf32>
    %cst_41 = arith.constant dense<0.000000e+00> : vector<8x8xf32>
    %85 = tpu.matmul %83, %84, %cst_41 {dimension_numbers = #tpu.dot_dimension_numbers<[1], [1], [0], [0], [0, 0, 1, 0], [], []>} : vector<8x8xf32>, vector<8x8xf32>, vector<8x8xf32> -> vector<8x8xf32>
    %86 = vector.extract_strided_slice %78 {offsets = [0, 16], sizes = [8, 8], strides = [1, 1]} : vector<8x64xf32> to vector<8x8xf32>
    %87 = vector.extract_strided_slice %79 {offsets = [0, 16], sizes = [8, 8], strides = [1, 1]} : vector<8x64xf32> to vector<8x8xf32>
    %cst_42 = arith.constant dense<0.000000e+00> : vector<8x8xf32>
    %88 = tpu.matmul %86, %87, %cst_42 {dimension_numbers = #tpu.dot_dimension_numbers<[1], [1], [0], [0], [0, 0, 1, 0], [], []>} : vector<8x8xf32>, vector<8x8xf32>, vector<8x8xf32> -> vector<8x8xf32>
    %89 = vector.extract_strided_slice %78 {offsets = [0, 24], sizes = [8, 8], strides = [1, 1]} : vector<8x64xf32> to vector<8x8xf32>
    %90 = vector.extract_strided_slice %79 {offsets = [0, 24], sizes = [8, 8], strides = [1, 1]} : vector<8x64xf32> to vector<8x8xf32>
    %cst_43 = arith.constant dense<0.000000e+00> : vector<8x8xf32>
    %91 = tpu.matmul %89, %90, %cst_43 {dimension_numbers = #tpu.dot_dimension_numbers<[1], [1], [0], [0], [0, 0, 1, 0], [], []>} : vector<8x8xf32>, vector<8x8xf32>, vector<8x8xf32> -> vector<8x8xf32>
    %92 = vector.extract_strided_slice %78 {offsets = [0, 32], sizes = [8, 8], strides = [1, 1]} : vector<8x64xf32> to vector<8x8xf32>
    %93 = vector.extract_strided_slice %79 {offsets = [0, 32], sizes = [8, 8], strides = [1, 1]} : vector<8x64xf32> to vector<8x8xf32>
    %cst_44 = arith.constant dense<0.000000e+00> : vector<8x8xf32>
    %94 = tpu.matmul %92, %93, %cst_44 {dimension_numbers = #tpu.dot_dimension_numbers<[1], [1], [0], [0], [0, 0, 1, 0], [], []>} : vector<8x8xf32>, vector<8x8xf32>, vector<8x8xf32> -> vector<8x8xf32>
    %95 = vector.extract_strided_slice %78 {offsets = [0, 40], sizes = [8, 8], strides = [1, 1]} : vector<8x64xf32> to vector<8x8xf32>
    %96 = vector.extract_strided_slice %79 {offsets = [0, 40], sizes = [8, 8], strides = [1, 1]} : vector<8x64xf32> to vector<8x8xf32>
    %cst_45 = arith.constant dense<0.000000e+00> : vector<8x8xf32>
    %97 = tpu.matmul %95, %96, %cst_45 {dimension_numbers = #tpu.dot_dimension_numbers<[1], [1], [0], [0], [0, 0, 1, 0], [], []>} : vector<8x8xf32>, vector<8x8xf32>, vector<8x8xf32> -> vector<8x8xf32>
    %98 = vector.extract_strided_slice %78 {offsets = [0, 48], sizes = [8, 8], strides = [1, 1]} : vector<8x64xf32> to vector<8x8xf32>
    %99 = vector.extract_strided_slice %79 {offsets = [0, 48], sizes = [8, 8], strides = [1, 1]} : vector<8x64xf32> to vector<8x8xf32>
    %cst_46 = arith.constant dense<0.000000e+00> : vector<8x8xf32>
    %100 = tpu.matmul %98, %99, %cst_46 {dimension_numbers = #tpu.dot_dimension_numbers<[1], [1], [0], [0], [0, 0, 1, 0], [], []>} : vector<8x8xf32>, vector<8x8xf32>, vector<8x8xf32> -> vector<8x8xf32>
    %101 = vector.extract_strided_slice %78 {offsets = [0, 56], sizes = [8, 8], strides = [1, 1]} : vector<8x64xf32> to vector<8x8xf32>
    %102 = vector.extract_strided_slice %79 {offsets = [0, 56], sizes = [8, 8], strides = [1, 1]} : vector<8x64xf32> to vector<8x8xf32>
    %cst_47 = arith.constant dense<0.000000e+00> : vector<8x8xf32>
    %103 = tpu.matmul %101, %102, %cst_47 {dimension_numbers = #tpu.dot_dimension_numbers<[1], [1], [0], [0], [0, 0, 1, 0], [], []>} : vector<8x8xf32>, vector<8x8xf32>, vector<8x8xf32> -> vector<8x8xf32>
    %104 = tpu.concatenate %56, %59, %62, %65, %68, %71, %74, %77, %82, %85, %88, %91, %94, %97, %100, %103 in 0 : vector<8x8xf32>, vector<8x8xf32>, vector<8x8xf32>, vector<8x8xf32>, vector<8x8xf32>, vector<8x8xf32>, vector<8x8xf32>, vector<8x8xf32>, vector<8x8xf32>, vector<8x8xf32>, vector<8x8xf32>, vector<8x8xf32>, vector<8x8xf32>, vector<8x8xf32>, vector<8x8xf32>, vector<8x8xf32> -> vector<128x8xf32>
    %105 = arith.addf %104, %42 : vector<128x8xf32>
    %cst_48 = arith.constant dense<0xFF800000> : vector<128xf32>
    %106 = vector.multi_reduction <maximumf>, %105, %cst_48 [1] : vector<128x8xf32> to vector<128xf32>
    %107 = vector.shape_cast %106 : vector<128xf32> to vector<128x1xf32>
    %108 = vector.broadcast %107 : vector<128x1xf32> to vector<128x8xf32>
    %109 = arith.subf %105, %108 : vector<128x8xf32>
    %110 = math.exp %109 : vector<128x8xf32>
    %cst_49 = arith.constant dense<0.000000e+00> : vector<128xf32>
    %111 = vector.multi_reduction <add>, %110, %cst_49 [1] : vector<128x8xf32> to vector<128xf32>
    %112 = vector.shape_cast %111 : vector<128xf32> to vector<128x1xf32>
    %113 = vector.broadcast %112 : vector<128x1xf32> to vector<128x8xf32>
    %114 = arith.divf %110, %113 : vector<128x8xf32>
    %115 = vector.extract_strided_slice %114 {offsets = [0, 0], sizes = [8, 8], strides = [1, 1]} : vector<128x8xf32> to vector<8x8xf32>
    %116 = vector.extract_strided_slice %51 {offsets = [0, 0], sizes = [8, 8], strides = [1, 1]} : vector<16x64xf32> to vector<8x8xf32>
    %cst_50 = arith.constant dense<0.000000e+00> : vector<8x8xf32>
    %117 = tpu.matmul %115, %116, %cst_50 {dimension_numbers = #tpu.dot_dimension_numbers<[1], [0], [0], [1], [0, 0, 1, 1], [], []>} : vector<8x8xf32>, vector<8x8xf32>, vector<8x8xf32> -> vector<8x8xf32>
    %c0_51 = arith.constant 0 : index
    %c0_52 = arith.constant 0 : index
    %118 = vector.load %arg13[%c0_51, %c0_52] : memref<16x64xf32, #tpu.memory_space<vmem>>, vector<8x8xf32>
    tpu.vector_store %arg13[%c0_51, %c0_52], %117 {strides = array<i32>} : memref<16x64xf32, #tpu.memory_space<vmem>>, vector<8x8xf32>,
    %119 = vector.extract_strided_slice %114 {offsets = [8, 0], sizes = [8, 8], strides = [1, 1]} : vector<128x8xf32> to vector<8x8xf32>
    %120 = vector.extract_strided_slice %51 {offsets = [0, 8], sizes = [8, 8], strides = [1, 1]} : vector<16x64xf32> to vector<8x8xf32>
    %cst_53 = arith.constant dense<0.000000e+00> : vector<8x8xf32>
    %121 = tpu.matmul %119, %120, %cst_53 {dimension_numbers = #tpu.dot_dimension_numbers<[1], [0], [0], [1], [0, 0, 1, 1], [], []>} : vector<8x8xf32>, vector<8x8xf32>, vector<8x8xf32> -> vector<8x8xf32>
    %c0_54 = arith.constant 0 : index
    %c8 = arith.constant 8 : index
    %122 = vector.load %arg13[%c0_54, %c8] : memref<16x64xf32, #tpu.memory_space<vmem>>, vector<8x8xf32>
    tpu.vector_store %arg13[%c0_54, %c8], %121 {strides = array<i32>} : memref<16x64xf32, #tpu.memory_space<vmem>>, vector<8x8xf32>,
    %123 = vector.extract_strided_slice %114 {offsets = [16, 0], sizes = [8, 8], strides = [1, 1]} : vector<128x8xf32> to vector<8x8xf32>
    %124 = vector.extract_strided_slice %51 {offsets = [0, 16], sizes = [8, 8], strides = [1, 1]} : vector<16x64xf32> to vector<8x8xf32>
    %cst_55 = arith.constant dense<0.000000e+00> : vector<8x8xf32>
    %125 = tpu.matmul %123, %124, %cst_55 {dimension_numbers = #tpu.dot_dimension_numbers<[1], [0], [0], [1], [0, 0, 1, 1], [], []>} : vector<8x8xf32>, vector<8x8xf32>, vector<8x8xf32> -> vector<8x8xf32>
    %c0_56 = arith.constant 0 : index
    %c16 = arith.constant 16 : index
    %126 = vector.load %arg13[%c0_56, %c16] : memref<16x64xf32, #tpu.memory_space<vmem>>, vector<8x8xf32>
    tpu.vector_store %arg13[%c0_56, %c16], %125 {strides = array<i32>} : memref<16x64xf32, #tpu.memory_space<vmem>>, vector<8x8xf32>,
    %127 = vector.extract_strided_slice %114 {offsets = [24, 0], sizes = [8, 8], strides = [1, 1]} : vector<128x8xf32> to vector<8x8xf32>
    %128 = vector.extract_strided_slice %51 {offsets = [0, 24], sizes = [8, 8], strides = [1, 1]} : vector<16x64xf32> to vector<8x8xf32>
    %cst_57 = arith.constant dense<0.000000e+00> : vector<8x8xf32>
    %129 = tpu.matmul %127, %128, %cst_57 {dimension_numbers = #tpu.dot_dimension_numbers<[1], [0], [0], [1], [0, 0, 1, 1], [], []>} : vector<8x8xf32>, vector<8x8xf32>, vector<8x8xf32> -> vector<8x8xf32>
    %c0_58 = arith.constant 0 : index
    %c24 = arith.constant 24 : index
    %130 = vector.load %arg13[%c0_58, %c24] : memref<16x64xf32, #tpu.memory_space<vmem>>, vector<8x8xf32>
    tpu.vector_store %arg13[%c0_58, %c24], %129 {strides = array<i32>} : memref<16x64xf32, #tpu.memory_space<vmem>>, vector<8x8xf32>,
    %131 = vector.extract_strided_slice %114 {offsets = [32, 0], sizes = [8, 8], strides = [1, 1]} : vector<128x8xf32> to vector<8x8xf32>
    %132 = vector.extract_strided_slice %51 {offsets = [0, 32], sizes = [8, 8], strides = [1, 1]} : vector<16x64xf32> to vector<8x8xf32>
    %cst_59 = arith.constant dense<0.000000e+00> : vector<8x8xf32>
    %133 = tpu.matmul %131, %132, %cst_59 {dimension_numbers = #tpu.dot_dimension_numbers<[1], [0], [0], [1], [0, 0, 1, 1], [], []>} : vector<8x8xf32>, vector<8x8xf32>, vector<8x8xf32> -> vector<8x8xf32>
    %c0_60 = arith.constant 0 : index
    %c32 = arith.constant 32 : index
    %134 = vector.load %arg13[%c0_60, %c32] : memref<16x64xf32, #tpu.memory_space<vmem>>, vector<8x8xf32>
    tpu.vector_store %arg13[%c0_60, %c32], %133 {strides = array<i32>} : memref<16x64xf32, #tpu.memory_space<vmem>>, vector<8x8xf32>,
    %135 = vector.extract_strided_slice %114 {offsets = [40, 0], sizes = [8, 8], strides = [1, 1]} : vector<128x8xf32> to vector<8x8xf32>
    %136 = vector.extract_strided_slice %51 {offsets = [0, 40], sizes = [8, 8], strides = [1, 1]} : vector<16x64xf32> to vector<8x8xf32>
    %cst_61 = arith.constant dense<0.000000e+00> : vector<8x8xf32>
    %137 = tpu.matmul %135, %136, %cst_61 {dimension_numbers = #tpu.dot_dimension_numbers<[1], [0], [0], [1], [0, 0, 1, 1], [], []>} : vector<8x8xf32>, vector<8x8xf32>, vector<8x8xf32> -> vector<8x8xf32>
    %c0_62 = arith.constant 0 : index
    %c40 = arith.constant 40 : index
    %138 = vector.load %arg13[%c0_62, %c40] : memref<16x64xf32, #tpu.memory_space<vmem>>, vector<8x8xf32>
    tpu.vector_store %arg13[%c0_62, %c40], %137 {strides = array<i32>} : memref<16x64xf32, #tpu.memory_space<vmem>>, vector<8x8xf32>,
    %139 = vector.extract_strided_slice %114 {offsets = [48, 0], sizes = [8, 8], strides = [1, 1]} : vector<128x8xf32> to vector<8x8xf32>
    %140 = vector.extract_strided_slice %51 {offsets = [0, 48], sizes = [8, 8], strides = [1, 1]} : vector<16x64xf32> to vector<8x8xf32>
    %cst_63 = arith.constant dense<0.000000e+00> : vector<8x8xf32>
    %141 = tpu.matmul %139, %140, %cst_63 {dimension_numbers = #tpu.dot_dimension_numbers<[1], [0], [0], [1], [0, 0, 1, 1], [], []>} : vector<8x8xf32>, vector<8x8xf32>, vector<8x8xf32> -> vector<8x8xf32>
    %c0_64 = arith.constant 0 : index
    %c48 = arith.constant 48 : index
    %142 = vector.load %arg13[%c0_64, %c48] : memref<16x64xf32, #tpu.memory_space<vmem>>, vector<8x8xf32>
    tpu.vector_store %arg13[%c0_64, %c48], %141 {strides = array<i32>} : memref<16x64xf32, #tpu.memory_space<vmem>>, vector<8x8xf32>,
    %143 = vector.extract_strided_slice %114 {offsets = [56, 0], sizes = [8, 8], strides = [1, 1]} : vector<128x8xf32> to vector<8x8xf32>
    %144 = vector.extract_strided_slice %51 {offsets = [0, 56], sizes = [8, 8], strides = [1, 1]} : vector<16x64xf32> to vector<8x8xf32>
    %cst_65 = arith.constant dense<0.000000e+00> : vector<8x8xf32>
    %145 = tpu.matmul %143, %144, %cst_65 {dimension_numbers = #tpu.dot_dimension_numbers<[1], [0], [0], [1], [0, 0, 1, 1], [], []>} : vector<8x8xf32>, vector<8x8xf32>, vector<8x8xf32> -> vector<8x8xf32>
    %c0_66 = arith.constant 0 : index
    %c56 = arith.constant 56 : index
    %146 = vector.load %arg13[%c0_66, %c56] : memref<16x64xf32, #tpu.memory_space<vmem>>, vector<8x8xf32>
    tpu.vector_store %arg13[%c0_66, %c56], %145 {strides = array<i32>} : memref<16x64xf32, #tpu.memory_space<vmem>>, vector<8x8xf32>,
    %147 = vector.extract_strided_slice %114 {offsets = [64, 0], sizes = [8, 8], strides = [1, 1]} : vector<128x8xf32> to vector<8x8xf32>
    %148 = vector.extract_strided_slice %51 {offsets = [8, 0], sizes = [8, 8], strides = [1, 1]} : vector<16x64xf32> to vector<8x8xf32>
    %cst_67 = arith.constant dense<0.000000e+00> : vector<8x8xf32>
    %149 = tpu.matmul %147, %148, %cst_67 {dimension_numbers = #tpu.dot_dimension_numbers<[1], [0], [0], [1], [0, 0, 1, 1], [], []>} : vector<8x8xf32>, vector<8x8xf32>, vector<8x8xf32> -> vector<8x8xf32>
    %c8_68 = arith.constant 8 : index
    %c0_69 = arith.constant 0 : index
    %150 = vector.load %arg13[%c8_68, %c0_69] : memref<16x64xf32, #tpu.memory_space<vmem>>, vector<8x8xf32>
    tpu.vector_store %arg13[%c8_68, %c0_69], %149 {strides = array<i32>} : memref<16x64xf32, #tpu.memory_space<vmem>>, vector<8x8xf32>,
    %151 = vector.extract_strided_slice %114 {offsets = [72, 0], sizes = [8, 8], strides = [1, 1]} : vector<128x8xf32> to vector<8x8xf32>
    %152 = vector.extract_strided_slice %51 {offsets = [8, 8], sizes = [8, 8], strides = [1, 1]} : vector<16x64xf32> to vector<8x8xf32>
    %cst_70 = arith.constant dense<0.000000e+00> : vector<8x8xf32>
    %153 = tpu.matmul %151, %152, %cst_70 {dimension_numbers = #tpu.dot_dimension_numbers<[1], [0], [0], [1], [0, 0, 1, 1], [], []>} : vector<8x8xf32>, vector<8x8xf32>, vector<8x8xf32> -> vector<8x8xf32>
    %c8_71 = arith.constant 8 : index
    %c8_72 = arith.constant 8 : index
    %154 = vector.load %arg13[%c8_71, %c8_72] : memref<16x64xf32, #tpu.memory_space<vmem>>, vector<8x8xf32>
    tpu.vector_store %arg13[%c8_71, %c8_72], %153 {strides = array<i32>} : memref<16x64xf32, #tpu.memory_space<vmem>>, vector<8x8xf32>,
    %155 = vector.extract_strided_slice %114 {offsets = [80, 0], sizes = [8, 8], strides = [1, 1]} : vector<128x8xf32> to vector<8x8xf32>
    %156 = vector.extract_strided_slice %51 {offsets = [8, 16], sizes = [8, 8], strides = [1, 1]} : vector<16x64xf32> to vector<8x8xf32>
    %cst_73 = arith.constant dense<0.000000e+00> : vector<8x8xf32>
    %157 = tpu.matmul %155, %156, %cst_73 {dimension_numbers = #tpu.dot_dimension_numbers<[1], [0], [0], [1], [0, 0, 1, 1], [], []>} : vector<8x8xf32>, vector<8x8xf32>, vector<8x8xf32> -> vector<8x8xf32>
    %c8_74 = arith.constant 8 : index
    %c16_75 = arith.constant 16 : index
    %158 = vector.load %arg13[%c8_74, %c16_75] : memref<16x64xf32, #tpu.memory_space<vmem>>, vector<8x8xf32>
    tpu.vector_store %arg13[%c8_74, %c16_75], %157 {strides = array<i32>} : memref<16x64xf32, #tpu.memory_space<vmem>>, vector<8x8xf32>,
    %159 = vector.extract_strided_slice %114 {offsets = [88, 0], sizes = [8, 8], strides = [1, 1]} : vector<128x8xf32> to vector<8x8xf32>
    %160 = vector.extract_strided_slice %51 {offsets = [8, 24], sizes = [8, 8], strides = [1, 1]} : vector<16x64xf32> to vector<8x8xf32>
    %cst_76 = arith.constant dense<0.000000e+00> : vector<8x8xf32>
    %161 = tpu.matmul %159, %160, %cst_76 {dimension_numbers = #tpu.dot_dimension_numbers<[1], [0], [0], [1], [0, 0, 1, 1], [], []>} : vector<8x8xf32>, vector<8x8xf32>, vector<8x8xf32> -> vector<8x8xf32>
    %c8_77 = arith.constant 8 : index
    %c24_78 = arith.constant 24 : index
    %162 = vector.load %arg13[%c8_77, %c24_78] : memref<16x64xf32, #tpu.memory_space<vmem>>, vector<8x8xf32>
    tpu.vector_store %arg13[%c8_77, %c24_78], %161 {strides = array<i32>} : memref<16x64xf32, #tpu.memory_space<vmem>>, vector<8x8xf32>,
    %163 = vector.extract_strided_slice %114 {offsets = [96, 0], sizes = [8, 8], strides = [1, 1]} : vector<128x8xf32> to vector<8x8xf32>
    %164 = vector.extract_strided_slice %51 {offsets = [8, 32], sizes = [8, 8], strides = [1, 1]} : vector<16x64xf32> to vector<8x8xf32>
    %cst_79 = arith.constant dense<0.000000e+00> : vector<8x8xf32>
    %165 = tpu.matmul %163, %164, %cst_79 {dimension_numbers = #tpu.dot_dimension_numbers<[1], [0], [0], [1], [0, 0, 1, 1], [], []>} : vector<8x8xf32>, vector<8x8xf32>, vector<8x8xf32> -> vector<8x8xf32>
    %c8_80 = arith.constant 8 : index
    %c32_81 = arith.constant 32 : index
    %166 = vector.load %arg13[%c8_80, %c32_81] : memref<16x64xf32, #tpu.memory_space<vmem>>, vector<8x8xf32>
    tpu.vector_store %arg13[%c8_80, %c32_81], %165 {strides = array<i32>} : memref<16x64xf32, #tpu.memory_space<vmem>>, vector<8x8xf32>,
    %167 = vector.extract_strided_slice %114 {offsets = [104, 0], sizes = [8, 8], strides = [1, 1]} : vector<128x8xf32> to vector<8x8xf32>
    %168 = vector.extract_strided_slice %51 {offsets = [8, 40], sizes = [8, 8], strides = [1, 1]} : vector<16x64xf32> to vector<8x8xf32>
    %cst_82 = arith.constant dense<0.000000e+00> : vector<8x8xf32>
    %169 = tpu.matmul %167, %168, %cst_82 {dimension_numbers = #tpu.dot_dimension_numbers<[1], [0], [0], [1], [0, 0, 1, 1], [], []>} : vector<8x8xf32>, vector<8x8xf32>, vector<8x8xf32> -> vector<8x8xf32>
    %c8_83 = arith.constant 8 : index
    %c40_84 = arith.constant 40 : index
    %170 = vector.load %arg13[%c8_83, %c40_84] : memref<16x64xf32, #tpu.memory_space<vmem>>, vector<8x8xf32>
    tpu.vector_store %arg13[%c8_83, %c40_84], %169 {strides = array<i32>} : memref<16x64xf32, #tpu.memory_space<vmem>>, vector<8x8xf32>,
    %171 = vector.extract_strided_slice %114 {offsets = [112, 0], sizes = [8, 8], strides = [1, 1]} : vector<128x8xf32> to vector<8x8xf32>
    %172 = vector.extract_strided_slice %51 {offsets = [8, 48], sizes = [8, 8], strides = [1, 1]} : vector<16x64xf32> to vector<8x8xf32>
    %cst_85 = arith.constant dense<0.000000e+00> : vector<8x8xf32>
    %173 = tpu.matmul %171, %172, %cst_85 {dimension_numbers = #tpu.dot_dimension_numbers<[1], [0], [0], [1], [0, 0, 1, 1], [], []>} : vector<8x8xf32>, vector<8x8xf32>, vector<8x8xf32> -> vector<8x8xf32>
    %c8_86 = arith.constant 8 : index
    %c48_87 = arith.constant 48 : index
    %174 = vector.load %arg13[%c8_86, %c48_87] : memref<16x64xf32, #tpu.memory_space<vmem>>, vector<8x8xf32>
    tpu.vector_store %arg13[%c8_86, %c48_87], %173 {strides = array<i32>} : memref<16x64xf32, #tpu.memory_space<vmem>>, vector<8x8xf32>,
    %175 = vector.extract_strided_slice %114 {offsets = [120, 0], sizes = [8, 8], strides = [1, 1]} : vector<128x8xf32> to vector<8x8xf32>
    %176 = vector.extract_strided_slice %51 {offsets = [8, 56], sizes = [8, 8], strides = [1, 1]} : vector<16x64xf32> to vector<8x8xf32>
    %cst_88 = arith.constant dense<0.000000e+00> : vector<8x8xf32>
    %177 = tpu.matmul %175, %176, %cst_88 {dimension_numbers = #tpu.dot_dimension_numbers<[1], [0], [0], [1], [0, 0, 1, 1], [], []>} : vector<8x8xf32>, vector<8x8xf32>, vector<8x8xf32> -> vector<8x8xf32>
    %c8_89 = arith.constant 8 : index
    %c56_90 = arith.constant 56 : index
    %178 = vector.load %arg13[%c8_89, %c56_90] : memref<16x64xf32, #tpu.memory_space<vmem>>, vector<8x8xf32>
    tpu.vector_store %arg13[%c8_89, %c56_90], %177 {strides = array<i32>} : memref<16x64xf32, #tpu.memory_space<vmem>>, vector<8x8xf32>,
    %c0_91 = arith.constant 0 : index
    %c0_92 = arith.constant 0 : index
    %179 = vector.load %arg13[%c0_91, %c0_92] : memref<16x64xf32, #tpu.memory_space<vmem>>, vector<16x64xf32>
    %cst_93 = arith.constant dense<0.000000e+00> : vector<16x64xf32>
    %180 = tpu.matmul %179, %37, %cst_93 {dimension_numbers = #tpu.dot_dimension_numbers<[1], [0], [0], [1], [0, 0, 1, 1], [], []>} : vector<16x64xf32>, vector<64x64xbf16>, vector<16x64xf32> -> vector<16x64xf32>
    %181 = vector.broadcast %41 : vector<1x64xf32> to vector<16x64xf32>
    %182 = arith.addf %180, %181 : vector<16x64xf32>
    %183 = arith.addf %3, %182 : vector<16x64xf32>
    %184 = vector.extract_strided_slice %7 {offsets = [2, 0], sizes = [1, 64], strides = [1, 1]} : vector<16x64xf32> to vector<1x64xf32>
    %185 = vector.extract_strided_slice %7 {offsets = [3, 0], sizes = [1, 64], strides = [1, 1]} : vector<16x64xf32> to vector<1x64xf32>
    %cst_94 = arith.constant dense<0.000000e+00> : vector<16xf32>
    %186 = vector.multi_reduction <add>, %183, %cst_94 [1] : vector<16x64xf32> to vector<16xf32>
    %187 = vector.shape_cast %186 : vector<16xf32> to vector<16x1xf32>
    %cst_95 = arith.constant 1.562500e-02 : f32
    %188 = vector.broadcast %cst_95 : f32 to vector<16x1xf32>
    %189 = arith.mulf %187, %188 : vector<16x1xf32>
    %190 = vector.broadcast %189 : vector<16x1xf32> to vector<16x64xf32>
    %191 = arith.subf %183, %190 : vector<16x64xf32>
    %192 = arith.mulf %191, %191 : vector<16x64xf32>
    %cst_96 = arith.constant dense<0.000000e+00> : vector<16xf32>
    %193 = vector.multi_reduction <add>, %192, %cst_96 [1] : vector<16x64xf32> to vector<16xf32>
    %194 = vector.shape_cast %193 : vector<16xf32> to vector<16x1xf32>
    %cst_97 = arith.constant 1.562500e-02 : f32
    %195 = vector.broadcast %cst_97 : f32 to vector<16x1xf32>
    %196 = arith.mulf %194, %195 : vector<16x1xf32>
    %cst_98 = arith.constant 9.99999974E-6 : f32
    %197 = vector.broadcast %cst_98 : f32 to vector<16x1xf32>
    %198 = arith.addf %196, %197 : vector<16x1xf32>
    %199 = math.rsqrt %198 : vector<16x1xf32>
    %200 = vector.broadcast %199 : vector<16x1xf32> to vector<16x64xf32>
    %201 = arith.mulf %191, %200 : vector<16x64xf32>
    %202 = vector.broadcast %184 : vector<1x64xf32> to vector<16x64xf32>
    %203 = arith.mulf %201, %202 : vector<16x64xf32>
    %204 = vector.broadcast %185 : vector<1x64xf32> to vector<16x64xf32>
    %205 = arith.addf %203, %204 : vector<16x64xf32>
    %c0_99 = arith.constant 0 : index
    %c2 = arith.constant 2 : index
    %c0_100 = arith.constant 0 : index
    %c0_101 = arith.constant 0 : index
    %206 = vector.load %arg6[%c0_99, %c2, %c0_100, %c0_101] : memref<1x4x64x64xbf16, #tpu.memory_space<vmem>>, vector<1x1x64x64xbf16>
    %207 = vector.shape_cast %206 : vector<1x1x64x64xbf16> to vector<64x64xbf16>
    %c0_102 = arith.constant 0 : index
    %c2_103 = arith.constant 2 : index
    %c0_104 = arith.constant 0 : index
    %c0_105 = arith.constant 0 : index
    %208 = vector.load %arg7[%c0_102, %c2_103, %c0_104, %c0_105] : memref<1x4x64x64xbf16, #tpu.memory_space<vmem>>, vector<1x1x64x64xbf16>
    %209 = vector.shape_cast %208 : vector<1x1x64x64xbf16> to vector<64x64xbf16>
    %c0_106 = arith.constant 0 : index
    %c3 = arith.constant 3 : index
    %c0_107 = arith.constant 0 : index
    %c0_108 = arith.constant 0 : index
    %210 = vector.load %arg7[%c0_106, %c3, %c0_107, %c0_108] : memref<1x4x64x64xbf16, #tpu.memory_space<vmem>>, vector<1x1x64x64xbf16>
    %211 = vector.shape_cast %210 : vector<1x1x64x64xbf16> to vector<64x64xbf16>
    %c0_109 = arith.constant 0 : index
    %c3_110 = arith.constant 3 : index
    %c0_111 = arith.constant 0 : index
    %c0_112 = arith.constant 0 : index
    %212 = vector.load %arg6[%c0_109, %c3_110, %c0_111, %c0_112] : memref<1x4x64x64xbf16, #tpu.memory_space<vmem>>, vector<1x1x64x64xbf16>
    %213 = vector.shape_cast %212 : vector<1x1x64x64xbf16> to vector<64x64xbf16>
    %214 = vector.extract_strided_slice %7 {offsets = [10, 0], sizes = [1, 64], strides = [1, 1]} : vector<16x64xf32> to vector<1x64xf32>
    %215 = vector.extract_strided_slice %7 {offsets = [11, 0], sizes = [1, 64], strides = [1, 1]} : vector<16x64xf32> to vector<1x64xf32>
    %216 = vector.extract_strided_slice %7 {offsets = [12, 0], sizes = [1, 64], strides = [1, 1]} : vector<16x64xf32> to vector<1x64xf32>
    %217 = vector.extract_strided_slice %7 {offsets = [13, 0], sizes = [1, 64], strides = [1, 1]} : vector<16x64xf32> to vector<1x64xf32>
    %cst_113 = arith.constant dense<0.000000e+00> : vector<16x64xf32>
    %218 = tpu.matmul %205, %207, %cst_113 {dimension_numbers = #tpu.dot_dimension_numbers<[1], [0], [0], [1], [0, 0, 1, 1], [], []>} : vector<16x64xf32>, vector<64x64xbf16>, vector<16x64xf32> -> vector<16x64xf32>
    %219 = vector.broadcast %214 : vector<1x64xf32> to vector<16x64xf32>
    %220 = arith.addf %218, %219 : vector<16x64xf32>
    %cst_114 = arith.constant dense<0.000000e+00> : vector<16x64xf32>
    %221 = tpu.matmul %5, %209, %cst_114 {dimension_numbers = #tpu.dot_dimension_numbers<[1], [0], [0], [1], [0, 0, 1, 1], [], []>} : vector<16x64xf32>, vector<64x64xbf16>, vector<16x64xf32> -> vector<16x64xf32>
    %222 = vector.broadcast %215 : vector<1x64xf32> to vector<16x64xf32>
    %223 = arith.addf %221, %222 : vector<16x64xf32>
    %cst_115 = arith.constant dense<0.000000e+00> : vector<16x64xf32>
    %224 = tpu.matmul %5, %211, %cst_115 {dimension_numbers = #tpu.dot_dimension_numbers<[1], [0], [0], [1], [0, 0, 1, 1], [], []>} : vector<16x64xf32>, vector<64x64xbf16>, vector<16x64xf32> -> vector<16x64xf32>
    %225 = vector.broadcast %216 : vector<1x64xf32> to vector<16x64xf32>
    %226 = arith.addf %224, %225 : vector<16x64xf32>
    %227 = vector.extract_strided_slice %220 {offsets = [0, 0], sizes = [8, 64], strides = [1, 1]} : vector<16x64xf32> to vector<8x64xf32>
    %228 = vector.extract_strided_slice %223 {offsets = [0, 0], sizes = [8, 64], strides = [1, 1]} : vector<16x64xf32> to vector<8x64xf32>
    %229 = vector.extract_strided_slice %227 {offsets = [0, 0], sizes = [8, 8], strides = [1, 1]} : vector<8x64xf32> to vector<8x8xf32>
    %230 = vector.extract_strided_slice %228 {offsets = [0, 0], sizes = [8, 8], strides = [1, 1]} : vector<8x64xf32> to vector<8x8xf32>
    %cst_116 = arith.constant dense<0.000000e+00> : vector<8x8xf32>
    %231 = tpu.matmul %229, %230, %cst_116 {dimension_numbers = #tpu.dot_dimension_numbers<[1], [1], [0], [0], [0, 0, 1, 0], [], []>} : vector<8x8xf32>, vector<8x8xf32>, vector<8x8xf32> -> vector<8x8xf32>
    %232 = vector.extract_strided_slice %227 {offsets = [0, 8], sizes = [8, 8], strides = [1, 1]} : vector<8x64xf32> to vector<8x8xf32>
    %233 = vector.extract_strided_slice %228 {offsets = [0, 8], sizes = [8, 8], strides = [1, 1]} : vector<8x64xf32> to vector<8x8xf32>
    %cst_117 = arith.constant dense<0.000000e+00> : vector<8x8xf32>
    %234 = tpu.matmul %232, %233, %cst_117 {dimension_numbers = #tpu.dot_dimension_numbers<[1], [1], [0], [0], [0, 0, 1, 0], [], []>} : vector<8x8xf32>, vector<8x8xf32>, vector<8x8xf32> -> vector<8x8xf32>
    %235 = vector.extract_strided_slice %227 {offsets = [0, 16], sizes = [8, 8], strides = [1, 1]} : vector<8x64xf32> to vector<8x8xf32>
    %236 = vector.extract_strided_slice %228 {offsets = [0, 16], sizes = [8, 8], strides = [1, 1]} : vector<8x64xf32> to vector<8x8xf32>
    %cst_118 = arith.constant dense<0.000000e+00> : vector<8x8xf32>
    %237 = tpu.matmul %235, %236, %cst_118 {dimension_numbers = #tpu.dot_dimension_numbers<[1], [1], [0], [0], [0, 0, 1, 0], [], []>} : vector<8x8xf32>, vector<8x8xf32>, vector<8x8xf32> -> vector<8x8xf32>
    %238 = vector.extract_strided_slice %227 {offsets = [0, 24], sizes = [8, 8], strides = [1, 1]} : vector<8x64xf32> to vector<8x8xf32>
    %239 = vector.extract_strided_slice %228 {offsets = [0, 24], sizes = [8, 8], strides = [1, 1]} : vector<8x64xf32> to vector<8x8xf32>
    %cst_119 = arith.constant dense<0.000000e+00> : vector<8x8xf32>
    %240 = tpu.matmul %238, %239, %cst_119 {dimension_numbers = #tpu.dot_dimension_numbers<[1], [1], [0], [0], [0, 0, 1, 0], [], []>} : vector<8x8xf32>, vector<8x8xf32>, vector<8x8xf32> -> vector<8x8xf32>
    %241 = vector.extract_strided_slice %227 {offsets = [0, 32], sizes = [8, 8], strides = [1, 1]} : vector<8x64xf32> to vector<8x8xf32>
    %242 = vector.extract_strided_slice %228 {offsets = [0, 32], sizes = [8, 8], strides = [1, 1]} : vector<8x64xf32> to vector<8x8xf32>
    %cst_120 = arith.constant dense<0.000000e+00> : vector<8x8xf32>
    %243 = tpu.matmul %241, %242, %cst_120 {dimension_numbers = #tpu.dot_dimension_numbers<[1], [1], [0], [0], [0, 0, 1, 0], [], []>} : vector<8x8xf32>, vector<8x8xf32>, vector<8x8xf32> -> vector<8x8xf32>
    %244 = vector.extract_strided_slice %227 {offsets = [0, 40], sizes = [8, 8], strides = [1, 1]} : vector<8x64xf32> to vector<8x8xf32>
    %245 = vector.extract_strided_slice %228 {offsets = [0, 40], sizes = [8, 8], strides = [1, 1]} : vector<8x64xf32> to vector<8x8xf32>
    %cst_121 = arith.constant dense<0.000000e+00> : vector<8x8xf32>
    %246 = tpu.matmul %244, %245, %cst_121 {dimension_numbers = #tpu.dot_dimension_numbers<[1], [1], [0], [0], [0, 0, 1, 0], [], []>} : vector<8x8xf32>, vector<8x8xf32>, vector<8x8xf32> -> vector<8x8xf32>
    %247 = vector.extract_strided_slice %227 {offsets = [0, 48], sizes = [8, 8], strides = [1, 1]} : vector<8x64xf32> to vector<8x8xf32>
    %248 = vector.extract_strided_slice %228 {offsets = [0, 48], sizes = [8, 8], strides = [1, 1]} : vector<8x64xf32> to vector<8x8xf32>
    %cst_122 = arith.constant dense<0.000000e+00> : vector<8x8xf32>
    %249 = tpu.matmul %247, %248, %cst_122 {dimension_numbers = #tpu.dot_dimension_numbers<[1], [1], [0], [0], [0, 0, 1, 0], [], []>} : vector<8x8xf32>, vector<8x8xf32>, vector<8x8xf32> -> vector<8x8xf32>
    %250 = vector.extract_strided_slice %227 {offsets = [0, 56], sizes = [8, 8], strides = [1, 1]} : vector<8x64xf32> to vector<8x8xf32>
    %251 = vector.extract_strided_slice %228 {offsets = [0, 56], sizes = [8, 8], strides = [1, 1]} : vector<8x64xf32> to vector<8x8xf32>
    %cst_123 = arith.constant dense<0.000000e+00> : vector<8x8xf32>
    %252 = tpu.matmul %250, %251, %cst_123 {dimension_numbers = #tpu.dot_dimension_numbers<[1], [1], [0], [0], [0, 0, 1, 0], [], []>} : vector<8x8xf32>, vector<8x8xf32>, vector<8x8xf32> -> vector<8x8xf32>
    %253 = vector.extract_strided_slice %220 {offsets = [8, 0], sizes = [8, 64], strides = [1, 1]} : vector<16x64xf32> to vector<8x64xf32>
    %254 = vector.extract_strided_slice %223 {offsets = [8, 0], sizes = [8, 64], strides = [1, 1]} : vector<16x64xf32> to vector<8x64xf32>
    %255 = vector.extract_strided_slice %253 {offsets = [0, 0], sizes = [8, 8], strides = [1, 1]} : vector<8x64xf32> to vector<8x8xf32>
    %256 = vector.extract_strided_slice %254 {offsets = [0, 0], sizes = [8, 8], strides = [1, 1]} : vector<8x64xf32> to vector<8x8xf32>
    %cst_124 = arith.constant dense<0.000000e+00> : vector<8x8xf32>
    %257 = tpu.matmul %255, %256, %cst_124 {dimension_numbers = #tpu.dot_dimension_numbers<[1], [1], [0], [0], [0, 0, 1, 0], [], []>} : vector<8x8xf32>, vector<8x8xf32>, vector<8x8xf32> -> vector<8x8xf32>
    %258 = vector.extract_strided_slice %253 {offsets = [0, 8], sizes = [8, 8], strides = [1, 1]} : vector<8x64xf32> to vector<8x8xf32>
    %259 = vector.extract_strided_slice %254 {offsets = [0, 8], sizes = [8, 8], strides = [1, 1]} : vector<8x64xf32> to vector<8x8xf32>
    %cst_125 = arith.constant dense<0.000000e+00> : vector<8x8xf32>
    %260 = tpu.matmul %258, %259, %cst_125 {dimension_numbers = #tpu.dot_dimension_numbers<[1], [1], [0], [0], [0, 0, 1, 0], [], []>} : vector<8x8xf32>, vector<8x8xf32>, vector<8x8xf32> -> vector<8x8xf32>
    %261 = vector.extract_strided_slice %253 {offsets = [0, 16], sizes = [8, 8], strides = [1, 1]} : vector<8x64xf32> to vector<8x8xf32>
    %262 = vector.extract_strided_slice %254 {offsets = [0, 16], sizes = [8, 8], strides = [1, 1]} : vector<8x64xf32> to vector<8x8xf32>
    %cst_126 = arith.constant dense<0.000000e+00> : vector<8x8xf32>
    %263 = tpu.matmul %261, %262, %cst_126 {dimension_numbers = #tpu.dot_dimension_numbers<[1], [1], [0], [0], [0, 0, 1, 0], [], []>} : vector<8x8xf32>, vector<8x8xf32>, vector<8x8xf32> -> vector<8x8xf32>
    %264 = vector.extract_strided_slice %253 {offsets = [0, 24], sizes = [8, 8], strides = [1, 1]} : vector<8x64xf32> to vector<8x8xf32>
    %265 = vector.extract_strided_slice %254 {offsets = [0, 24], sizes = [8, 8], strides = [1, 1]} : vector<8x64xf32> to vector<8x8xf32>
    %cst_127 = arith.constant dense<0.000000e+00> : vector<8x8xf32>
    %266 = tpu.matmul %264, %265, %cst_127 {dimension_numbers = #tpu.dot_dimension_numbers<[1], [1], [0], [0], [0, 0, 1, 0], [], []>} : vector<8x8xf32>, vector<8x8xf32>, vector<8x8xf32> -> vector<8x8xf32>
    %267 = vector.extract_strided_slice %253 {offsets = [0, 32], sizes = [8, 8], strides = [1, 1]} : vector<8x64xf32> to vector<8x8xf32>
    %268 = vector.extract_strided_slice %254 {offsets = [0, 32], sizes = [8, 8], strides = [1, 1]} : vector<8x64xf32> to vector<8x8xf32>
    %cst_128 = arith.constant dense<0.000000e+00> : vector<8x8xf32>
    %269 = tpu.matmul %267, %268, %cst_128 {dimension_numbers = #tpu.dot_dimension_numbers<[1], [1], [0], [0], [0, 0, 1, 0], [], []>} : vector<8x8xf32>, vector<8x8xf32>, vector<8x8xf32> -> vector<8x8xf32>
    %270 = vector.extract_strided_slice %253 {offsets = [0, 40], sizes = [8, 8], strides = [1, 1]} : vector<8x64xf32> to vector<8x8xf32>
    %271 = vector.extract_strided_slice %254 {offsets = [0, 40], sizes = [8, 8], strides = [1, 1]} : vector<8x64xf32> to vector<8x8xf32>
    %cst_129 = arith.constant dense<0.000000e+00> : vector<8x8xf32>
    %272 = tpu.matmul %270, %271, %cst_129 {dimension_numbers = #tpu.dot_dimension_numbers<[1], [1], [0], [0], [0, 0, 1, 0], [], []>} : vector<8x8xf32>, vector<8x8xf32>, vector<8x8xf32> -> vector<8x8xf32>
    %273 = vector.extract_strided_slice %253 {offsets = [0, 48], sizes = [8, 8], strides = [1, 1]} : vector<8x64xf32> to vector<8x8xf32>
    %274 = vector.extract_strided_slice %254 {offsets = [0, 48], sizes = [8, 8], strides = [1, 1]} : vector<8x64xf32> to vector<8x8xf32>
    %cst_130 = arith.constant dense<0.000000e+00> : vector<8x8xf32>
    %275 = tpu.matmul %273, %274, %cst_130 {dimension_numbers = #tpu.dot_dimension_numbers<[1], [1], [0], [0], [0, 0, 1, 0], [], []>} : vector<8x8xf32>, vector<8x8xf32>, vector<8x8xf32> -> vector<8x8xf32>
    %276 = vector.extract_strided_slice %253 {offsets = [0, 56], sizes = [8, 8], strides = [1, 1]} : vector<8x64xf32> to vector<8x8xf32>
    %277 = vector.extract_strided_slice %254 {offsets = [0, 56], sizes = [8, 8], strides = [1, 1]} : vector<8x64xf32> to vector<8x8xf32>
    %cst_131 = arith.constant dense<0.000000e+00> : vector<8x8xf32>
    %278 = tpu.matmul %276, %277, %cst_131 {dimension_numbers = #tpu.dot_dimension_numbers<[1], [1], [0], [0], [0, 0, 1, 0], [], []>} : vector<8x8xf32>, vector<8x8xf32>, vector<8x8xf32> -> vector<8x8xf32>
    %279 = tpu.concatenate %231, %234, %237, %240, %243, %246, %249, %252, %257, %260, %263, %266, %269, %272, %275, %278 in 0 : vector<8x8xf32>, vector<8x8xf32>, vector<8x8xf32>, vector<8x8xf32>, vector<8x8xf32>, vector<8x8xf32>, vector<8x8xf32>, vector<8x8xf32>, vector<8x8xf32>, vector<8x8xf32>, vector<8x8xf32>, vector<8x8xf32>, vector<8x8xf32>, vector<8x8xf32>, vector<8x8xf32>, vector<8x8xf32> -> vector<128x8xf32>
    %cst_132 = arith.constant dense<0xFF800000> : vector<128xf32>
    %280 = vector.multi_reduction <maximumf>, %279, %cst_132 [1] : vector<128x8xf32> to vector<128xf32>
    %281 = vector.shape_cast %280 : vector<128xf32> to vector<128x1xf32>
    %282 = vector.broadcast %281 : vector<128x1xf32> to vector<128x8xf32>
    %283 = arith.subf %279, %282 : vector<128x8xf32>
    %284 = math.exp %283 : vector<128x8xf32>
    %cst_133 = arith.constant dense<0.000000e+00> : vector<128xf32>
    %285 = vector.multi_reduction <add>, %284, %cst_133 [1] : vector<128x8xf32> to vector<128xf32>
    %286 = vector.shape_cast %285 : vector<128xf32> to vector<128x1xf32>
    %287 = vector.broadcast %286 : vector<128x1xf32> to vector<128x8xf32>
    %288 = arith.divf %284, %287 : vector<128x8xf32>
    %289 = vector.extract_strided_slice %288 {offsets = [0, 0], sizes = [8, 8], strides = [1, 1]} : vector<128x8xf32> to vector<8x8xf32>
    %290 = vector.extract_strided_slice %226 {offsets = [0, 0], sizes = [8, 8], strides = [1, 1]} : vector<16x64xf32> to vector<8x8xf32>
    %cst_134 = arith.constant dense<0.000000e+00> : vector<8x8xf32>
    %291 = tpu.matmul %289, %290, %cst_134 {dimension_numbers = #tpu.dot_dimension_numbers<[1], [0], [0], [1], [0, 0, 1, 1], [], []>} : vector<8x8xf32>, vector<8x8xf32>, vector<8x8xf32> -> vector<8x8xf32>
    %c0_135 = arith.constant 0 : index
    %c0_136 = arith.constant 0 : index
    %292 = vector.load %arg13[%c0_135, %c0_136] : memref<16x64xf32, #tpu.memory_space<vmem>>, vector<8x8xf32>
    tpu.vector_store %arg13[%c0_135, %c0_136], %291 {strides = array<i32>} : memref<16x64xf32, #tpu.memory_space<vmem>>, vector<8x8xf32>,
    %293 = vector.extract_strided_slice %288 {offsets = [8, 0], sizes = [8, 8], strides = [1, 1]} : vector<128x8xf32> to vector<8x8xf32>
    %294 = vector.extract_strided_slice %226 {offsets = [0, 8], sizes = [8, 8], strides = [1, 1]} : vector<16x64xf32> to vector<8x8xf32>
    %cst_137 = arith.constant dense<0.000000e+00> : vector<8x8xf32>
    %295 = tpu.matmul %293, %294, %cst_137 {dimension_numbers = #tpu.dot_dimension_numbers<[1], [0], [0], [1], [0, 0, 1, 1], [], []>} : vector<8x8xf32>, vector<8x8xf32>, vector<8x8xf32> -> vector<8x8xf32>
    %c0_138 = arith.constant 0 : index
    %c8_139 = arith.constant 8 : index
    %296 = vector.load %arg13[%c0_138, %c8_139] : memref<16x64xf32, #tpu.memory_space<vmem>>, vector<8x8xf32>
    tpu.vector_store %arg13[%c0_138, %c8_139], %295 {strides = array<i32>} : memref<16x64xf32, #tpu.memory_space<vmem>>, vector<8x8xf32>,
    %297 = vector.extract_strided_slice %288 {offsets = [16, 0], sizes = [8, 8], strides = [1, 1]} : vector<128x8xf32> to vector<8x8xf32>
    %298 = vector.extract_strided_slice %226 {offsets = [0, 16], sizes = [8, 8], strides = [1, 1]} : vector<16x64xf32> to vector<8x8xf32>
    %cst_140 = arith.constant dense<0.000000e+00> : vector<8x8xf32>
    %299 = tpu.matmul %297, %298, %cst_140 {dimension_numbers = #tpu.dot_dimension_numbers<[1], [0], [0], [1], [0, 0, 1, 1], [], []>} : vector<8x8xf32>, vector<8x8xf32>, vector<8x8xf32> -> vector<8x8xf32>
    %c0_141 = arith.constant 0 : index
    %c16_142 = arith.constant 16 : index
    %300 = vector.load %arg13[%c0_141, %c16_142] : memref<16x64xf32, #tpu.memory_space<vmem>>, vector<8x8xf32>
    tpu.vector_store %arg13[%c0_141, %c16_142], %299 {strides = array<i32>} : memref<16x64xf32, #tpu.memory_space<vmem>>, vector<8x8xf32>,
    %301 = vector.extract_strided_slice %288 {offsets = [24, 0], sizes = [8, 8], strides = [1, 1]} : vector<128x8xf32> to vector<8x8xf32>
    %302 = vector.extract_strided_slice %226 {offsets = [0, 24], sizes = [8, 8], strides = [1, 1]} : vector<16x64xf32> to vector<8x8xf32>
    %cst_143 = arith.constant dense<0.000000e+00> : vector<8x8xf32>
    %303 = tpu.matmul %301, %302, %cst_143 {dimension_numbers = #tpu.dot_dimension_numbers<[1], [0], [0], [1], [0, 0, 1, 1], [], []>} : vector<8x8xf32>, vector<8x8xf32>, vector<8x8xf32> -> vector<8x8xf32>
    %c0_144 = arith.constant 0 : index
    %c24_145 = arith.constant 24 : index
    %304 = vector.load %arg13[%c0_144, %c24_145] : memref<16x64xf32, #tpu.memory_space<vmem>>, vector<8x8xf32>
    tpu.vector_store %arg13[%c0_144, %c24_145], %303 {strides = array<i32>} : memref<16x64xf32, #tpu.memory_space<vmem>>, vector<8x8xf32>,
    %305 = vector.extract_strided_slice %288 {offsets = [32, 0], sizes = [8, 8], strides = [1, 1]} : vector<128x8xf32> to vector<8x8xf32>
    %306 = vector.extract_strided_slice %226 {offsets = [0, 32], sizes = [8, 8], strides = [1, 1]} : vector<16x64xf32> to vector<8x8xf32>
    %cst_146 = arith.constant dense<0.000000e+00> : vector<8x8xf32>
    %307 = tpu.matmul %305, %306, %cst_146 {dimension_numbers = #tpu.dot_dimension_numbers<[1], [0], [0], [1], [0, 0, 1, 1], [], []>} : vector<8x8xf32>, vector<8x8xf32>, vector<8x8xf32> -> vector<8x8xf32>
    %c0_147 = arith.constant 0 : index
    %c32_148 = arith.constant 32 : index
    %308 = vector.load %arg13[%c0_147, %c32_148] : memref<16x64xf32, #tpu.memory_space<vmem>>, vector<8x8xf32>
    tpu.vector_store %arg13[%c0_147, %c32_148], %307 {strides = array<i32>} : memref<16x64xf32, #tpu.memory_space<vmem>>, vector<8x8xf32>,
    %309 = vector.extract_strided_slice %288 {offsets = [40, 0], sizes = [8, 8], strides = [1, 1]} : vector<128x8xf32> to vector<8x8xf32>
    %310 = vector.extract_strided_slice %226 {offsets = [0, 40], sizes = [8, 8], strides = [1, 1]} : vector<16x64xf32> to vector<8x8xf32>
    %cst_149 = arith.constant dense<0.000000e+00> : vector<8x8xf32>
    %311 = tpu.matmul %309, %310, %cst_149 {dimension_numbers = #tpu.dot_dimension_numbers<[1], [0], [0], [1], [0, 0, 1, 1], [], []>} : vector<8x8xf32>, vector<8x8xf32>, vector<8x8xf32> -> vector<8x8xf32>
    %c0_150 = arith.constant 0 : index
    %c40_151 = arith.constant 40 : index
    %312 = vector.load %arg13[%c0_150, %c40_151] : memref<16x64xf32, #tpu.memory_space<vmem>>, vector<8x8xf32>
    tpu.vector_store %arg13[%c0_150, %c40_151], %311 {strides = array<i32>} : memref<16x64xf32, #tpu.memory_space<vmem>>, vector<8x8xf32>,
    %313 = vector.extract_strided_slice %288 {offsets = [48, 0], sizes = [8, 8], strides = [1, 1]} : vector<128x8xf32> to vector<8x8xf32>
    %314 = vector.extract_strided_slice %226 {offsets = [0, 48], sizes = [8, 8], strides = [1, 1]} : vector<16x64xf32> to vector<8x8xf32>
    %cst_152 = arith.constant dense<0.000000e+00> : vector<8x8xf32>
    %315 = tpu.matmul %313, %314, %cst_152 {dimension_numbers = #tpu.dot_dimension_numbers<[1], [0], [0], [1], [0, 0, 1, 1], [], []>} : vector<8x8xf32>, vector<8x8xf32>, vector<8x8xf32> -> vector<8x8xf32>
    %c0_153 = arith.constant 0 : index
    %c48_154 = arith.constant 48 : index
    %316 = vector.load %arg13[%c0_153, %c48_154] : memref<16x64xf32, #tpu.memory_space<vmem>>, vector<8x8xf32>
    tpu.vector_store %arg13[%c0_153, %c48_154], %315 {strides = array<i32>} : memref<16x64xf32, #tpu.memory_space<vmem>>, vector<8x8xf32>,
    %317 = vector.extract_strided_slice %288 {offsets = [56, 0], sizes = [8, 8], strides = [1, 1]} : vector<128x8xf32> to vector<8x8xf32>
    %318 = vector.extract_strided_slice %226 {offsets = [0, 56], sizes = [8, 8], strides = [1, 1]} : vector<16x64xf32> to vector<8x8xf32>
    %cst_155 = arith.constant dense<0.000000e+00> : vector<8x8xf32>
    %319 = tpu.matmul %317, %318, %cst_155 {dimension_numbers = #tpu.dot_dimension_numbers<[1], [0], [0], [1], [0, 0, 1, 1], [], []>} : vector<8x8xf32>, vector<8x8xf32>, vector<8x8xf32> -> vector<8x8xf32>
    %c0_156 = arith.constant 0 : index
    %c56_157 = arith.constant 56 : index
    %320 = vector.load %arg13[%c0_156, %c56_157] : memref<16x64xf32, #tpu.memory_space<vmem>>, vector<8x8xf32>
    tpu.vector_store %arg13[%c0_156, %c56_157], %319 {strides = array<i32>} : memref<16x64xf32, #tpu.memory_space<vmem>>, vector<8x8xf32>,
    %321 = vector.extract_strided_slice %288 {offsets = [64, 0], sizes = [8, 8], strides = [1, 1]} : vector<128x8xf32> to vector<8x8xf32>
    %322 = vector.extract_strided_slice %226 {offsets = [8, 0], sizes = [8, 8], strides = [1, 1]} : vector<16x64xf32> to vector<8x8xf32>
    %cst_158 = arith.constant dense<0.000000e+00> : vector<8x8xf32>
    %323 = tpu.matmul %321, %322, %cst_158 {dimension_numbers = #tpu.dot_dimension_numbers<[1], [0], [0], [1], [0, 0, 1, 1], [], []>} : vector<8x8xf32>, vector<8x8xf32>, vector<8x8xf32> -> vector<8x8xf32>
    %c8_159 = arith.constant 8 : index
    %c0_160 = arith.constant 0 : index
    %324 = vector.load %arg13[%c8_159, %c0_160] : memref<16x64xf32, #tpu.memory_space<vmem>>, vector<8x8xf32>
    tpu.vector_store %arg13[%c8_159, %c0_160], %323 {strides = array<i32>} : memref<16x64xf32, #tpu.memory_space<vmem>>, vector<8x8xf32>,
    %325 = vector.extract_strided_slice %288 {offsets = [72, 0], sizes = [8, 8], strides = [1, 1]} : vector<128x8xf32> to vector<8x8xf32>
    %326 = vector.extract_strided_slice %226 {offsets = [8, 8], sizes = [8, 8], strides = [1, 1]} : vector<16x64xf32> to vector<8x8xf32>
    %cst_161 = arith.constant dense<0.000000e+00> : vector<8x8xf32>
    %327 = tpu.matmul %325, %326, %cst_161 {dimension_numbers = #tpu.dot_dimension_numbers<[1], [0], [0], [1], [0, 0, 1, 1], [], []>} : vector<8x8xf32>, vector<8x8xf32>, vector<8x8xf32> -> vector<8x8xf32>
    %c8_162 = arith.constant 8 : index
    %c8_163 = arith.constant 8 : index
    %328 = vector.load %arg13[%c8_162, %c8_163] : memref<16x64xf32, #tpu.memory_space<vmem>>, vector<8x8xf32>
    tpu.vector_store %arg13[%c8_162, %c8_163], %327 {strides = array<i32>} : memref<16x64xf32, #tpu.memory_space<vmem>>, vector<8x8xf32>,
    %329 = vector.extract_strided_slice %288 {offsets = [80, 0], sizes = [8, 8], strides = [1, 1]} : vector<128x8xf32> to vector<8x8xf32>
    %330 = vector.extract_strided_slice %226 {offsets = [8, 16], sizes = [8, 8], strides = [1, 1]} : vector<16x64xf32> to vector<8x8xf32>
    %cst_164 = arith.constant dense<0.000000e+00> : vector<8x8xf32>
    %331 = tpu.matmul %329, %330, %cst_164 {dimension_numbers = #tpu.dot_dimension_numbers<[1], [0], [0], [1], [0, 0, 1, 1], [], []>} : vector<8x8xf32>, vector<8x8xf32>, vector<8x8xf32> -> vector<8x8xf32>
    %c8_165 = arith.constant 8 : index
    %c16_166 = arith.constant 16 : index
    %332 = vector.load %arg13[%c8_165, %c16_166] : memref<16x64xf32, #tpu.memory_space<vmem>>, vector<8x8xf32>
    tpu.vector_store %arg13[%c8_165, %c16_166], %331 {strides = array<i32>} : memref<16x64xf32, #tpu.memory_space<vmem>>, vector<8x8xf32>,
    %333 = vector.extract_strided_slice %288 {offsets = [88, 0], sizes = [8, 8], strides = [1, 1]} : vector<128x8xf32> to vector<8x8xf32>
    %334 = vector.extract_strided_slice %226 {offsets = [8, 24], sizes = [8, 8], strides = [1, 1]} : vector<16x64xf32> to vector<8x8xf32>
    %cst_167 = arith.constant dense<0.000000e+00> : vector<8x8xf32>
    %335 = tpu.matmul %333, %334, %cst_167 {dimension_numbers = #tpu.dot_dimension_numbers<[1], [0], [0], [1], [0, 0, 1, 1], [], []>} : vector<8x8xf32>, vector<8x8xf32>, vector<8x8xf32> -> vector<8x8xf32>
    %c8_168 = arith.constant 8 : index
    %c24_169 = arith.constant 24 : index
    %336 = vector.load %arg13[%c8_168, %c24_169] : memref<16x64xf32, #tpu.memory_space<vmem>>, vector<8x8xf32>
    tpu.vector_store %arg13[%c8_168, %c24_169], %335 {strides = array<i32>} : memref<16x64xf32, #tpu.memory_space<vmem>>, vector<8x8xf32>,
    %337 = vector.extract_strided_slice %288 {offsets = [96, 0], sizes = [8, 8], strides = [1, 1]} : vector<128x8xf32> to vector<8x8xf32>
    %338 = vector.extract_strided_slice %226 {offsets = [8, 32], sizes = [8, 8], strides = [1, 1]} : vector<16x64xf32> to vector<8x8xf32>
    %cst_170 = arith.constant dense<0.000000e+00> : vector<8x8xf32>
    %339 = tpu.matmul %337, %338, %cst_170 {dimension_numbers = #tpu.dot_dimension_numbers<[1], [0], [0], [1], [0, 0, 1, 1], [], []>} : vector<8x8xf32>, vector<8x8xf32>, vector<8x8xf32> -> vector<8x8xf32>
    %c8_171 = arith.constant 8 : index
    %c32_172 = arith.constant 32 : index
    %340 = vector.load %arg13[%c8_171, %c32_172] : memref<16x64xf32, #tpu.memory_space<vmem>>, vector<8x8xf32>
    tpu.vector_store %arg13[%c8_171, %c32_172], %339 {strides = array<i32>} : memref<16x64xf32, #tpu.memory_space<vmem>>, vector<8x8xf32>,
    %341 = vector.extract_strided_slice %288 {offsets = [104, 0], sizes = [8, 8], strides = [1, 1]} : vector<128x8xf32> to vector<8x8xf32>
    %342 = vector.extract_strided_slice %226 {offsets = [8, 40], sizes = [8, 8], strides = [1, 1]} : vector<16x64xf32> to vector<8x8xf32>
    %cst_173 = arith.constant dense<0.000000e+00> : vector<8x8xf32>
    %343 = tpu.matmul %341, %342, %cst_173 {dimension_numbers = #tpu.dot_dimension_numbers<[1], [0], [0], [1], [0, 0, 1, 1], [], []>} : vector<8x8xf32>, vector<8x8xf32>, vector<8x8xf32> -> vector<8x8xf32>
    %c8_174 = arith.constant 8 : index
    %c40_175 = arith.constant 40 : index
    %344 = vector.load %arg13[%c8_174, %c40_175] : memref<16x64xf32, #tpu.memory_space<vmem>>, vector<8x8xf32>
    tpu.vector_store %arg13[%c8_174, %c40_175], %343 {strides = array<i32>} : memref<16x64xf32, #tpu.memory_space<vmem>>, vector<8x8xf32>,
    %345 = vector.extract_strided_slice %288 {offsets = [112, 0], sizes = [8, 8], strides = [1, 1]} : vector<128x8xf32> to vector<8x8xf32>
    %346 = vector.extract_strided_slice %226 {offsets = [8, 48], sizes = [8, 8], strides = [1, 1]} : vector<16x64xf32> to vector<8x8xf32>
    %cst_176 = arith.constant dense<0.000000e+00> : vector<8x8xf32>
    %347 = tpu.matmul %345, %346, %cst_176 {dimension_numbers = #tpu.dot_dimension_numbers<[1], [0], [0], [1], [0, 0, 1, 1], [], []>} : vector<8x8xf32>, vector<8x8xf32>, vector<8x8xf32> -> vector<8x8xf32>
    %c8_177 = arith.constant 8 : index
    %c48_178 = arith.constant 48 : index
    %348 = vector.load %arg13[%c8_177, %c48_178] : memref<16x64xf32, #tpu.memory_space<vmem>>, vector<8x8xf32>
    tpu.vector_store %arg13[%c8_177, %c48_178], %347 {strides = array<i32>} : memref<16x64xf32, #tpu.memory_space<vmem>>, vector<8x8xf32>,
    %349 = vector.extract_strided_slice %288 {offsets = [120, 0], sizes = [8, 8], strides = [1, 1]} : vector<128x8xf32> to vector<8x8xf32>
    %350 = vector.extract_strided_slice %226 {offsets = [8, 56], sizes = [8, 8], strides = [1, 1]} : vector<16x64xf32> to vector<8x8xf32>
    %cst_179 = arith.constant dense<0.000000e+00> : vector<8x8xf32>
    %351 = tpu.matmul %349, %350, %cst_179 {dimension_numbers = #tpu.dot_dimension_numbers<[1], [0], [0], [1], [0, 0, 1, 1], [], []>} : vector<8x8xf32>, vector<8x8xf32>, vector<8x8xf32> -> vector<8x8xf32>
    %c8_180 = arith.constant 8 : index
    %c56_181 = arith.constant 56 : index
    %352 = vector.load %arg13[%c8_180, %c56_181] : memref<16x64xf32, #tpu.memory_space<vmem>>, vector<8x8xf32>
    tpu.vector_store %arg13[%c8_180, %c56_181], %351 {strides = array<i32>} : memref<16x64xf32, #tpu.memory_space<vmem>>, vector<8x8xf32>,
    %c0_182 = arith.constant 0 : index
    %c0_183 = arith.constant 0 : index
    %353 = vector.load %arg13[%c0_182, %c0_183] : memref<16x64xf32, #tpu.memory_space<vmem>>, vector<16x64xf32>
    %cst_184 = arith.constant dense<0.000000e+00> : vector<16x64xf32>
    %354 = tpu.matmul %353, %213, %cst_184 {dimension_numbers = #tpu.dot_dimension_numbers<[1], [0], [0], [1], [0, 0, 1, 1], [], []>} : vector<16x64xf32>, vector<64x64xbf16>, vector<16x64xf32> -> vector<16x64xf32>
    %355 = vector.broadcast %217 : vector<1x64xf32> to vector<16x64xf32>
    %356 = arith.addf %354, %355 : vector<16x64xf32>
    %357 = arith.addf %183, %356 : vector<16x64xf32>
    %358 = vector.extract_strided_slice %7 {offsets = [4, 0], sizes = [1, 64], strides = [1, 1]} : vector<16x64xf32> to vector<1x64xf32>
    %359 = vector.extract_strided_slice %7 {offsets = [5, 0], sizes = [1, 64], strides = [1, 1]} : vector<16x64xf32> to vector<1x64xf32>
    %cst_185 = arith.constant dense<0.000000e+00> : vector<16xf32>
    %360 = vector.multi_reduction <add>, %357, %cst_185 [1] : vector<16x64xf32> to vector<16xf32>
    %361 = vector.shape_cast %360 : vector<16xf32> to vector<16x1xf32>
    %cst_186 = arith.constant 1.562500e-02 : f32
    %362 = vector.broadcast %cst_186 : f32 to vector<16x1xf32>
    %363 = arith.mulf %361, %362 : vector<16x1xf32>
    %364 = vector.broadcast %363 : vector<16x1xf32> to vector<16x64xf32>
    %365 = arith.subf %357, %364 : vector<16x64xf32>
    %366 = arith.mulf %365, %365 : vector<16x64xf32>
    %cst_187 = arith.constant dense<0.000000e+00> : vector<16xf32>
    %367 = vector.multi_reduction <add>, %366, %cst_187 [1] : vector<16x64xf32> to vector<16xf32>
    %368 = vector.shape_cast %367 : vector<16xf32> to vector<16x1xf32>
    %cst_188 = arith.constant 1.562500e-02 : f32
    %369 = vector.broadcast %cst_188 : f32 to vector<16x1xf32>
    %370 = arith.mulf %368, %369 : vector<16x1xf32>
    %cst_189 = arith.constant 9.99999974E-6 : f32
    %371 = vector.broadcast %cst_189 : f32 to vector<16x1xf32>
    %372 = arith.addf %370, %371 : vector<16x1xf32>
    %373 = math.rsqrt %372 : vector<16x1xf32>
    %374 = vector.broadcast %373 : vector<16x1xf32> to vector<16x64xf32>
    %375 = arith.mulf %365, %374 : vector<16x64xf32>
    %376 = vector.broadcast %358 : vector<1x64xf32> to vector<16x64xf32>
    %377 = arith.mulf %375, %376 : vector<16x64xf32>
    %378 = vector.broadcast %359 : vector<1x64xf32> to vector<16x64xf32>
    %379 = arith.addf %377, %378 : vector<16x64xf32>
    %c0_190 = arith.constant 0 : index
    %c0_191 = arith.constant 0 : index
    %c0_192 = arith.constant 0 : index
    %380 = vector.load %arg8[%c0_190, %c0_191, %c0_192] : memref<1x64x256xbf16, #tpu.memory_space<vmem>>, vector<1x64x256xbf16>
    %381 = vector.shape_cast %380 : vector<1x64x256xbf16> to vector<64x256xbf16>
    %cst_193 = arith.constant dense<0.000000e+00> : vector<16x256xf32>
    %382 = tpu.matmul %379, %381, %cst_193 {dimension_numbers = #tpu.dot_dimension_numbers<[1], [0], [0], [1], [0, 0, 1, 1], [], []>} : vector<16x64xf32>, vector<64x256xbf16>, vector<16x256xf32> -> vector<16x256xf32>
    %c0_194 = arith.constant 0 : index
    %c0_195 = arith.constant 0 : index
    %c0_196 = arith.constant 0 : index
    %383 = vector.load %arg9[%c0_194, %c0_195, %c0_196] : memref<1x1x256xf32, #tpu.memory_space<vmem>>, vector<1x1x256xf32>
    %384 = vector.shape_cast %383 : vector<1x1x256xf32> to vector<1x256xf32>
    %385 = vector.broadcast %384 : vector<1x256xf32> to vector<16x256xf32>
    %386 = arith.addf %382, %385 : vector<16x256xf32>
    %cst_197 = arith.constant 5.000000e-01 : f32
    %387 = vector.broadcast %cst_197 : f32 to vector<16x256xf32>
    %388 = arith.mulf %387, %386 : vector<16x256xf32>
    %cst_198 = arith.constant 0.707106769 : f32
    %389 = vector.broadcast %cst_198 : f32 to vector<16x256xf32>
    %390 = arith.mulf %386, %389 : vector<16x256xf32>
    %391 = math.absf %390 : vector<16x256xf32>
    %cst_199 = arith.constant 0.327591091 : f32
    %392 = vector.broadcast %cst_199 : f32 to vector<16x256xf32>
    %393 = arith.mulf %392, %391 : vector<16x256xf32>
    %cst_200 = arith.constant 1.000000e+00 : f32
    %394 = vector.broadcast %cst_200 : f32 to vector<16x256xf32>
    %395 = arith.addf %394, %393 : vector<16x256xf32>
    %cst_201 = arith.constant 1.000000e+00 : f32
    %396 = vector.broadcast %cst_201 : f32 to vector<16x256xf32>
    %397 = arith.divf %396, %395 : vector<16x256xf32>
    %cst_202 = arith.constant 1.06140542 : f32
    %398 = vector.broadcast %cst_202 : f32 to vector<16x256xf32>
    %399 = arith.mulf %397, %398 : vector<16x256xf32>
    %cst_203 = arith.constant -1.45315206 : f32
    %400 = vector.broadcast %cst_203 : f32 to vector<16x256xf32>
    %401 = arith.addf %400, %399 : vector<16x256xf32>
    %402 = arith.mulf %397, %401 : vector<16x256xf32>
    %cst_204 = arith.constant 1.42141378 : f32
    %403 = vector.broadcast %cst_204 : f32 to vector<16x256xf32>
    %404 = arith.addf %403, %402 : vector<16x256xf32>
    %405 = arith.mulf %397, %404 : vector<16x256xf32>
    %cst_205 = arith.constant -0.284496725 : f32
    %406 = vector.broadcast %cst_205 : f32 to vector<16x256xf32>
    %407 = arith.addf %406, %405 : vector<16x256xf32>
    %408 = arith.mulf %397, %407 : vector<16x256xf32>
    %cst_206 = arith.constant 0.254829586 : f32
    %409 = vector.broadcast %cst_206 : f32 to vector<16x256xf32>
    %410 = arith.addf %409, %408 : vector<16x256xf32>
    %411 = arith.mulf %397, %410 : vector<16x256xf32>
    %cst_207 = arith.constant 0.000000e+00 : f32
    %412 = vector.broadcast %cst_207 : f32 to vector<16x256xf32>
    %413 = arith.subf %412, %391 : vector<16x256xf32>
    %414 = arith.mulf %413, %391 : vector<16x256xf32>
    %415 = math.exp %414 : vector<16x256xf32>
    %416 = arith.mulf %411, %415 : vector<16x256xf32>
    %cst_208 = arith.constant 1.000000e+00 : f32
    %417 = vector.broadcast %cst_208 : f32 to vector<16x256xf32>
    %418 = arith.subf %417, %416 : vector<16x256xf32>
    %cst_209 = arith.constant 0.000000e+00 : f32
    %419 = vector.broadcast %cst_209 : f32 to vector<16x256xf32>
    %420 = arith.cmpf oge, %390, %419 : vector<16x256xf32>
    %cst_210 = arith.constant 0.000000e+00 : f32
    %421 = vector.broadcast %cst_210 : f32 to vector<16x256xf32>
    %422 = arith.subf %421, %418 : vector<16x256xf32>
    %423 = arith.select %420, %418, %422 : vector<16x256xi1>, vector<16x256xf32>
    %cst_211 = arith.constant 1.000000e+00 : f32
    %424 = vector.broadcast %cst_211 : f32 to vector<16x256xf32>
    %425 = arith.addf %424, %423 : vector<16x256xf32>
    %426 = arith.mulf %388, %425 : vector<16x256xf32>
    %c0_212 = arith.constant 0 : index
    %c0_213 = arith.constant 0 : index
    %c0_214 = arith.constant 0 : index
    %427 = vector.load %arg10[%c0_212, %c0_213, %c0_214] : memref<1x256x64xbf16, #tpu.memory_space<vmem>>, vector<1x256x64xbf16>
    %428 = vector.shape_cast %427 : vector<1x256x64xbf16> to vector<256x64xbf16>
    %cst_215 = arith.constant dense<0.000000e+00> : vector<16x64xf32>
    %429 = tpu.matmul %426, %428, %cst_215 {dimension_numbers = #tpu.dot_dimension_numbers<[1], [0], [0], [1], [0, 0, 1, 1], [], []>} : vector<16x256xf32>, vector<256x64xbf16>, vector<16x64xf32> -> vector<16x64xf32>
    %430 = arith.addf %357, %429 : vector<16x64xf32>
    %431 = vector.extract_strided_slice %7 {offsets = [14, 0], sizes = [1, 64], strides = [1, 1]} : vector<16x64xf32> to vector<1x64xf32>
    %432 = vector.broadcast %431 : vector<1x64xf32> to vector<16x64xf32>
    %433 = arith.addf %430, %432 : vector<16x64xf32>
    %c0_216 = arith.constant 0 : index
    %c0_217 = arith.constant 0 : index
    %434 = vector.load %arg12[%c0_216, %c0_217] : memref<16x64xf32, #tpu.memory_space<vmem>>, vector<16x64xf32>
    tpu.vector_store %arg12[%c0_216, %c0_217], %433 {strides = array<i32>} : memref<16x64xf32, #tpu.memory_space<vmem>>, vector<16x64xf32>,
    %c1_i32 = arith.constant 1 : i32
    %435 = arith.cmpi eq, %arg1, %c1_i32 : i32
    %436 = arith.extui %435 : i1 to i32
    %c0_i32_218 = arith.constant 0 : i32
    %437 = arith.cmpi ne, %436, %c0_i32_218 : i32
    scf.if %437 {
      %c0_219 = arith.constant 0 : index
      %c0_220 = arith.constant 0 : index
      %c0_221 = arith.constant 0 : index
      %438 = vector.load %arg11[%c0_219, %c0_220, %c0_221] : memref<1x16x64xf32, #tpu.memory_space<vmem>>, vector<1x16x64xf32>
      %439 = vector.shape_cast %438 : vector<1x16x64xf32> to vector<16x64xf32>
      %440 = vector.shape_cast %433 : vector<16x64xf32> to vector<1x16x64xf32>
      tpu.vector_store %arg11[%c0_219, %c0_220, %c0_221], %440 {strides = array<i32>} : memref<1x16x64xf32, #tpu.memory_space<vmem>>, vector<1x16x64xf32>,
    } else {
    }
    return
  }
  func.func @transform_0(%arg0: i32, %arg1: i32) -> (i32, i32, i32) {
    %c0_i32 = arith.constant 0 : i32
    %c0_i32_0 = arith.constant 0 : i32
    %c0_i32_1 = arith.constant 0 : i32
    return %arg0, %c0_i32, %c0_i32_0 : i32, i32, i32
  }
  func.func @transform_1(%arg0: i32, %arg1: i32) -> (i32, i32, i32) {
    %c0_i32 = arith.constant 0 : i32
    %c0_i32_0 = arith.constant 0 : i32
    %c0_i32_1 = arith.constant 0 : i32
    return %arg0, %c0_i32, %c0_i32_0 : i32, i32, i32
  }
  func.func @transform_2(%arg0: i32, %arg1: i32) -> (i32, i32) {
    %c0_i32 = arith.constant 0 : i32
    %c0_i32_0 = arith.constant 0 : i32
    %c0_i32_1 = arith.constant 0 : i32
    return %c0_i32, %c0_i32_0 : i32, i32
  }
  func.func @transform_3(%arg0: i32, %arg1: i32) -> (i32, i32, i32) {
    %c0_i32 = arith.constant 0 : i32
    %c0_i32_0 = arith.constant 0 : i32
    %c0_i32_1 = arith.constant 0 : i32
    return %arg1, %c0_i32, %c0_i32_0 : i32, i32, i32
  }
  func.func @transform_4(%arg0: i32, %arg1: i32) -> (i32, i32, i32, i32) {
    %c0_i32 = arith.constant 0 : i32
    %c0_i32_0 = arith.constant 0 : i32
    %c0_i32_1 = arith.constant 0 : i32
    %c0_i32_2 = arith.constant 0 : i32
    return %arg1, %c0_i32, %c0_i32_0, %c0_i32_1 : i32, i32, i32, i32
  }
  func.func @transform_5(%arg0: i32, %arg1: i32) -> (i32, i32, i32, i32) {
    %c0_i32 = arith.constant 0 : i32
    %c0_i32_0 = arith.constant 0 : i32
    %c0_i32_1 = arith.constant 0 : i32
    %c0_i32_2 = arith.constant 0 : i32
    return %arg1, %c0_i32, %c0_i32_0, %c0_i32_1 : i32, i32, i32, i32
  }
  func.func @transform_6(%arg0: i32, %arg1: i32) -> (i32, i32, i32) {
    %c0_i32 = arith.constant 0 : i32
    %c0_i32_0 = arith.constant 0 : i32
    %c0_i32_1 = arith.constant 0 : i32
    return %arg1, %c0_i32, %c0_i32_0 : i32, i32, i32
  }
  func.func @transform_7(%arg0: i32, %arg1: i32) -> (i32, i32, i32) {
    %c0_i32 = arith.constant 0 : i32
    %c0_i32_0 = arith.constant 0 : i32
    %c0_i32_1 = arith.constant 0 : i32
    return %arg1, %c0_i32, %c0_i32_0 : i32, i32, i32
  }
  func.func @transform_8(%arg0: i32, %arg1: i32) -> (i32, i32, i32) {
    %c0_i32 = arith.constant 0 : i32
    %c0_i32_0 = arith.constant 0 : i32
    %c0_i32_1 = arith.constant 0 : i32
    return %arg1, %c0_i32, %c0_i32_0 : i32, i32, i32
  }
  func.func @transform_9(%arg0: i32, %arg1: i32) -> (i32, i32, i32) {
    %c0_i32 = arith.constant 0 : i32
    %c0_i32_0 = arith.constant 0 : i32
    %c0_i32_1 = arith.constant 0 : i32
    return %arg0, %c0_i32, %c0_i32_0 : i32, i32, i32
  }
}

</mosaic_0001>

<bundles_post_ra>
// kernel: tpu_custom_call.1
= control target key start
LH: loop header
LB: loop body
LE: loop exit
PB: predicated region body
PF: predicated region fallthrough
CT: control target
= control target key end

     0   :  { %s6634_s0 = inlined_call_operand.hbm [shape: f32[1,16,64], index: 0, kind: input, shape index: {}]   ;;  %s6635_s1 = inlined_call_operand.hbm [shape: f32[1,16,64], index: 1, kind: input, shape index: {}]   ;;  %s6636_s2 = inlined_call_operand.vmem [shape: f32[128,8], index: 2, kind: input, shape index: {}]   ;;  %s6637_s3 = inlined_call_operand.hbm [shape: f32[2,16,64], index: 3, kind: input, shape index: {}]   ;;  %s6638_s4 = inlined_call_operand.vmem [shape: bf16[2,4,64,64], index: 4, kind: input, shape index: {}]   ;;  %s6639_s5 = inlined_call_operand.hbm [shape: bf16[2,4,64,64], index: 5, kind: input, shape index: {}]   ;;  %s6640_s6 = inlined_call_operand.vmem [shape: bf16[2,64,256], index: 6, kind: input, shape index: {}]   ;;  %s6641_s7 = inlined_call_operand.vmem [shape: f32[2,1,256], index: 7, kind: input, shape index: {}]   ;;  %s6642_s8 = inlined_call_operand.vmem [shape: bf16[2,256,64], index: 8, kind: input, shape index: {}]   ;;  %s6643_s9 = inlined_call_operand.hbm [shape: f32[1,16,64], index: 9, kind: output, shape index: {}]  }
   0x1   :  { %6656 = sst [smem:[#allocation19_spill]] %s6634_s0 }
   0x2   :  { %6657 = sst [smem:[#allocation20_spill]] %s6635_s1 }
   0x3   :  { %6658 = sst [smem:[#allocation21_spill]] %s6636_s2 }
   0x4   :  { %6659 = sst [smem:[#allocation22_spill]] %s6637_s3 }
   0x5   :  { %6660 = sst [smem:[#allocation23_spill]] %s6643_s9 }
   0x6   :  { %14 = vsyncpa [#allocation5], 0 }
   0x7   :  { %15 = vsyncpa [#allocation8], 0 }
   0x8   :  { %16 = vsyncpa [#allocation6], 0  ;;  %s5398_s30 = smov 0   ;;  %s5400_s10 = smov 0  }
   0x9   :  { %s5402_s11 = smov 0   ;;  %s5404_s12 = smov 0  }
   0xa   :  { %s5406_s13 = smov 0   ;;  %s5408_s14 = smov 0  }
   0xb LB: > { %6661 = sst [smem:[#allocation16_spill]] %s5312_s11  ;;  %s5427_s15 = sadd.s32 4294967295, %s5324_s14   ;;  %s5324_s14 = sphi %s5408_s14, %s22_s14   ;;  %s5320_s13 = sphi %s5406_s13, %s6716_s13   ;;  %s5316_s12 = sphi %s5404_s12, %s6715_s12   ;;  %s5312_s11 = sphi %s5402_s11, %s6711_s11   ;;  %s5308_s10 = sphi %s5400_s10, %s6714_s10   ;;  %s5304_s30 = sphi %s5398_s30, %s6713_s30  }
   0xc   : > { %p127_p0 = scmp.ne.s32.totalorder %s5308_s10, %s5304_s30  ;;  %p128_p1 = scmp.eq.s32.totalorder %s5427_s15, 0 }
   0xd   : > { %p4368_p2 = scmp.ge.s32.totalorder %s5324_s14, 1  ;;  %p294_p3 = scmp.lt.s32.totalorder %s5324_s14, 3 }
   0xe   : > { %p5435_p4 = por %p128_p1, %p127_p0  ;;  %s6663_s0 = sld [smem:[#allocation19_spill]] }
   0xf   : > { %p5442_p5 = pnand %p4368_p2, %p294_p3  ;;  %s5326_s21 = smov [#allocation4]  }
  0x10   : > { %s310_s22 = sshll.u32 %s5326_s21, 4  ;;  %s6644_s24 = smov 128   ;;  %s311_s22 = int_to_ptr.vmem [resolvable:$true] %s310_s22 }
  0x11   : > { %p4861_p6 = pneg %p5442_p5  ;;  %s6646_s25 = smov 8  }
  0x12   : > { %s31_s26 = sadd.s32 1, %s5320_s13  ;;  %s114_s27 = sadd.s32 1, %s5312_s11 }
  0x13   : > { %p5450_p7 = pnand %p4861_p6, %p128_p1  ;;  %p32_p8 = scmp.ge.s32.totalorder %s31_s26, 2 }
  0x14   : > { %s308_s19 = sshll.u32 %s6663_s0, 4  ;;  %p121_p9 = scmp.ne.s32.totalorder %s5312_s11, %s5308_s10  ;;  %s309_s19 = int_to_ptr.hbm [resolvable:$true] %s308_s19 }
  0x15   : > { %4864 = dma.hbm_to_vmem [thread:$0]  (!%p5450_p7), %s309_s19, 256, %s311_s22, [#allocation5], %s6644_s24, %s6644_s24, %s6646_s25  }
  0x16   : > { %p122_p10 = scmp.eq.s32.totalorder %s5324_s14, 0  ;;  %s6718_s26 = smov (%p32_p8, %s31_s26), 0 }
  0x17   : > { %6666 = sst [smem:[#allocation17_spill]] %s6718_s26  ;;  %p4877_p12 = scmp.lt.s32.totalorder %s5324_s14, 2 }
  0x18   : > { %p5466_p11 = por %p122_p10, %p121_p9  ;;  %s111_s29 = ssub.s32 %s5320_s13, %s6718_s26 }
  0x19   : > { %s344_s30 = sand.u32 1, %s5324_s14   ;;  %p112_p13 = scmp.eq.s32.totalorder %s111_s29, 0 }
  0x1a   : > { %s346_s17 = sand.u32 1, %s5312_s11   ;;  %s4784_s18 = sshll.u32 %s5320_s13, 4 }
  0x1b   : > { %s5477_s19 = scalar_select %p112_p13, %s5312_s11, %s114_s27  }
  0x1c   : > { %s4372_s21 = sshll.u32 %s346_s17, 4  ;;  %s6669_s3 = sld [smem:[#allocation22_spill]] }
  0x1d   : > { %6668 = sst [smem:[#allocation18_spill]] %s5477_s19  ;;  %s348_s9 = scalar_lea.vmem [#allocation9], %s4372_s21 }
  0x1e   : > { %s356_s2 = sshll.u32 %s348_s9, 4  ;;  %p5486_p0 = pnand %p4877_p12, %p5466_p11  ;;  %s357_s2 = int_to_ptr.vmem [resolvable:$true] %s356_s2 }
  0x1f   : > { %s6671_s1 = sld [smem:[#allocation20_spill]]  ;;  %s345_s24 = scalar_lea.sflag [#allocation5], %s344_s30 }
  0x20   : > { %s5329_s9 = smov [#allocation7]   ;;  %s4375_s21 = sshll.u32 %s346_s17, 7 }
  0x21   : > { %s327_s28 = sshll.u32 %s5329_s9, 4  ;;  %s4785_s26 = sshll.u32 %s5320_s13, 7  ;;  %s328_s28 = int_to_ptr.vmem [resolvable:$true] %s327_s28 }
  0x22   : > { %s353_s25 = scalar_lea.hbm %s6669_s3, %s4784_s18  ;;  %s6672_s18 = smov 8  }
  0x23   : > { %s354_s0 = sshll.u32 %s353_s25, 4  ;;  %s6673_s25 = smov 128   ;;  %s355_s0 = int_to_ptr.hbm [resolvable:$true] %s354_s0 }
  0x24   : > { %4871 = dma.hbm_to_vmem [thread:$0]  (!%p5486_p0), %s355_s0, 256, %s357_s2, %s345_s24, %s6673_s25, %s6673_s25, %s6672_s18  }
  0x25   : > { %s325_s19 = sshll.u32 %s6671_s1, 4  ;;  %s378_s22 = scalar_lea.vmem [#allocation10], %s4375_s21  ;;  %s326_s19 = int_to_ptr.hbm [resolvable:$true] %s325_s19 }
  0x26   : > { %4867 = dma.hbm_to_vmem [thread:$0]  (!%p5450_p7), %s326_s19, 256, %s328_s28, [#allocation8], %s6673_s25, %s6673_s25, %s6672_s18  }
  0x27   : > { %s386_s27 = sshll.u32 %s378_s22, 4  ;;  %s383_s3 = scalar_lea.hbm %s6639_s5, %s4785_s26  ;;  %s387_s27 = int_to_ptr.vmem [resolvable:$true] %s386_s27 }
  0x28   : > { %s384_s11 = sshll.u32 %s383_s3, 4  ;;  %s5330_s0 = smov 64   ;;  %s385_s11 = int_to_ptr.hbm [resolvable:$true] %s384_s11 }
  0x29   : > { %s5331_s2 = smov 4   ;;  %421 = sbr.rel (%p5442_p5) target bundleno = 3525 (0xdc5), region = 56 }
  0x2a   : > { %4874 = dma.hbm_to_vmem [thread:$0]  (!%p5486_p0), %s385_s11, 2048, %s387_s27, %s345_s24, %s5330_s0, %s5330_s0, %s5331_s2  }
  0x2e   : > { %5287 = dma.done.wait (%p128_p1), [#allocation5], 256  }
  0x2f   : > { %5289 = vsyncadd (%p128_p1), [#allocation5], 4294967040 }
  0x30   : > { %5291 = dma.done.wait (%p128_p1), [#allocation8], 256  }
  0x31   : > { %5293 = vsyncadd (%p128_p1), [#allocation8], 4294967040  ;;  %s433_s1 = sand.u32 1, %s5427_s15   ;;  %s435_s3 = sand.u32 1, %s5308_s10  }
  0x32   : > { %s4381_s11 = sshll.u32 %s435_s3, 4  ;;  %s434_s20 = scalar_lea.sflag [#allocation5], %s433_s1 }
  0x33   : > { %s5521_s23 = scalar_lea.vmem [#allocation9], %s4381_s11 }
  0x34   : > { %5295 = dma.done.wait (%p5435_p4), %s434_s20, 2304  }
  0x35   : > { %5297 = vsyncadd (%p5435_p4), %s434_s20, 4294964992  ;;  %s4382_s17 = sshll.u32 %s435_s3, 7  ;;  %p502_p2 = scmp.lt.s32.totalorder %s5316_s12, 1 }
  0x36   : > { %s5549_s3 = scalar_lea.vmem [#allocation10], %s4382_s17  ;;  %p4390_p1 = scmp.ne.s32.totalorder %s5316_s12, 0 }
  0x37   : > { %s503_s19 = scalar_select %p502_p2, %s5316_s12, 1 }
  0x38   : > { %525 = sbr.rel (%p4390_p1) target bundleno = 64 (0x40), region = 76 }
  0x39   : > { %s4786_s29 = sshll.u32 %s503_s19, 7  ;;  %s4787_s24 = sshll.u32 %s503_s19, 6 }
  0x3a   : > { %s5532_s9 = scalar_lea.vmem %s6638_s4, %s4786_s29  ;;  %s5537_s26 = scalar_lea.vmem %s6640_s6, %s4787_s24 }
  0x3b   : > { %s4387_s22 = sshll.u32 %s503_s19, 1  ;;  %s5542_s30 = scalar_lea.vmem %s6642_s8, %s4786_s29 }
  0x3c   : > { %s5547_s1 = scalar_lea.vmem %s6641_s7, %s4387_s22 }
  0x3d   : > { %v526_v0 = vld [vmem:[#allocation4] sm:$0xff]  ;;  %vm528_vm0 = vcmask 523264   ;;  %v527_v1 = vld [vmem:[#allocation4 + $0x8] sm:$0xff] }
  0x3e   : > { %529 = vst.msk [vmem:[#allocation2] sm:$0xff] %vm528_vm0, %v526_v0 }
  0x3f   : > { %530 = vst.msk [vmem:[#allocation2 + $0x8] sm:$0xff] %vm528_vm0, %v527_v1 }
  0x40 PF: > { %vm6651_vm1 = vcmask 523264   ;;  %v4792_v16 = vld [vmem:[%s5532_s9 + $0x18] sm:$0xff]  ;;  %v4791_v18 = vld [vmem:[%s5532_s9 + $0x10] sm:$0xff]  ;;  %v4790_v20 = vld [vmem:[%s5532_s9 + $0x8] sm:$0xff]  ;;  %s5332_s11 = smov 72   ;;  %s5333_s20 = smov 120  }
  0x41   : > { %v4800_v17 = vld [vmem:[%s5549_s3 + $0x38] sm:$0xff]  ;;  %673 = vmatpush.bf16.msra.mxu1 %v4792_v16  ;;  %v4799_v19 = vld [vmem:[%s5549_s3 + $0x30] sm:$0xff]  ;;  %v4798_v21 = vld [vmem:[%s5549_s3 + $0x28] sm:$0xff]  ;;  %s5334_s17 = smov 112   ;;  %s5335_s19 = smov 104   ;;  %vm764_vm8 = vcmask 64512  }
  0x42   : > { %753 = vmatpush.bf16.msra.mxu2 %v4800_v17  ;;  %v4789_v22 = vld [vmem:[%s5532_s9] sm:$0xff]  ;;  %v4796_v24 = vld [vmem:[%s5549_s3 + $0x18] sm:$0xff]  ;;  %v4795_v25 = vld [vmem:[%s5549_s3 + $0x10] sm:$0xff]  ;;  %s5336_s29 = smov 80   ;;  %s5337_s24 = smov 96  }
  0x43   : > { %v4797_v23 = vld [vmem:[%s5549_s3 + $0x20] sm:$0xff]  ;;  %v4794_v29 = vld [vmem:[%s5549_s3 + $0x8] sm:$0xff]  ;;  %s5338_s18 = smov 88   ;;  %s6674_s21 = sld [smem:[#allocation21_spill]] }
  0x44   : > { %v4793_v30 = vld [vmem:[%s5549_s3] sm:$0xff]  ;;  %s5339_s27 = smov 32   ;;  %s5340_s0 = smov 8  }
  0x45   : > { %v531_v2 = vld [vmem:[#allocation2] sm:$0xff]  ;;  %674 = vmatpush.bf16.msra.mxu1 %v4791_v18  ;;  %s5341_s2 = smov 40   ;;  %s5342_s25 = smov 16  }
  0x46   : > { %v538_v3 = vsel %vm6651_vm1, %v531_v2, 0.0  ;;  %v532_v4 = vld [vmem:[#allocation2 + $0x8] sm:$0xff]  ;;  %754 = vmatpush.bf16.msra.mxu2 %v4799_v19  ;;  %v535_v39 = vld [vmem:[%s5521_s23] sm:$0xff]  ;;  %s5343_s28 = smov 24   ;;  %s5344_s22 = smov 48  }
  0x47   : > { %539 = vadd.xlane.f32.xlu0 %v538_v3  ;;  %v541_v5 = vsel %vm6651_vm1, %v532_v4, 0.0  ;;  %v582_v43 = vperm.slane %v535_v39, 0  ;;  %v585_v47 = vperm.slane %v535_v39, 1  ;;  %v638_v57 = vperm.slane %v535_v39, 6  ;;  %v5617_v3 = vld [vmem:[%s5521_s23 + $0x8] sm:$0xff]  ;;  %s5345_s16 = smov 56  }
  0x48   : > { %v684_v62 = vperm.slane %v535_v39, 7  ;;  %p4779_p3 = scmp.ne.s32.totalorder %s5316_s12, 1 }
  0x49   : > { %675 = vmatpush.bf16.msra.mxu1 %v4790_v20 }
  0x4a   : > { %755 = vmatpush.bf16.msra.mxu2 %v4798_v21 }
  0x4d   : > { %676 = vmatpush.bf16.msra.mxu1 %v4789_v22 }
  0x4e   : > { %756 = vmatpush.bf16.msra.mxu2 %v4797_v23 }
  0x4f   : > { %542 = vadd.xlane.f32.xlu0 %v541_v5 }
  0x51   : > { %713 = vmatpush.bf16.msrb.mxu1 %v4796_v24 }
  0x55   : > { %714 = vmatpush.bf16.msrb.mxu1 %v4795_v25 }
  0x59   : > { %715 = vmatpush.bf16.msrb.mxu1 %v4794_v29 }
  0x5d   : > { %716 = vmatpush.bf16.msrb.mxu1 %v4793_v30 }
  0xba   : > { %v540_v6 = vpop.xlane.xlu0 %539 }
  0xbb   : > { %v544_v7 = vmul.f32 0.015625, %v540_v6 }
  0xbd   : > { %v546_v8 = vsub.f32 %v531_v2, %v544_v7 }
  0xbf   : > { %v548_v9 = vmul.f32 %v546_v8, %v546_v8 }
  0xc1   : > { %v550_v10 = vsel %vm6651_vm1, %v548_v9, 0.0 }
  0xc2   : > { %551 = vadd.xlane.f32.xlu1 %v550_v10  ;;  %v543_v11 = vpop.xlane.xlu0 %542 }
  0xc3   : > { %v545_v12 = vmul.f32 0.015625, %v543_v11 }
  0xc5   : > { %v5555_v13 = vsub.f32 %v532_v4, %v545_v12  ;;  %v724_v4 = vperm.slane %v5617_v3, 0 }
  0xc7   : > { %v549_v14 = vmul.f32 %v5555_v13, %v5555_v13 }
  0xc9   : > { %v553_v15 = vsel %vm6651_vm1, %v549_v14, 0.0 }
  0xca   : > { %554 = vadd.xlane.f32.xlu1 %v553_v15 }
 0x135   : > { %v552_v26 = vpop.xlane.xlu1 %551 }
 0x136   : > { %v556_v27 = vmul.f32 0.015625, %v552_v26  ;;  %v622_v26 = vld [vmem:[%s6674_s21] sm:$0xff] }
 0x138   : > { %v558_v28 = vadd.f32 1e-05, %v556_v27 }
 0x13a   : > { %4952 = vrsqrt.f32 %v558_v28  ;;  %vm566_vm3 = vweird.f32 %v558_v28 }
 0x13d   : > { %v555_v31 = vpop.xlane.xlu1 %554 }
 0x13e   : > { %v557_v32 = vmul.f32 0.015625, %v555_v31 }
 0x140   : > { %v4953_v33 = vpop.eup %4952  ;;  %v559_v34 = vadd.f32 1e-05, %v557_v32 }
 0x141   : > { %v561_v35 = vmul.f32 %v4953_v33, %v558_v28  ;;  %vm567_vm2 = vweird.f32 %v4953_v33 }
 0x142   : > { %4954 = vrsqrt.f32 %v559_v34  ;;  %vm568_vm4 = vmor %vm566_vm3, %vm567_vm2  ;;  %vm576_vm6 = vweird.f32 %v559_v34 }
 0x143   : > { %v562_v36 = vmul.f32 %v4953_v33, %v561_v35 }
 0x145   : > { %v563_v37 = vmul.f32 0.5, %v562_v36 }
 0x147   : > { %v564_v38 = vsub.f32 1.5, %v563_v37 }
 0x148   : > { %v4955_v40 = vpop.eup %4954 }
 0x149   : > { %v565_v41 = vmul.f32 %v4953_v33, %v564_v38  ;;  %v571_v42 = vmul.f32 %v4955_v40, %v559_v34  ;;  %vm577_vm5 = vweird.f32 %v4955_v40 }
 0x14a   : > { %vm578_vm7 = vmor %vm576_vm6, %vm577_vm5 }
 0x14b   : > { %v572_v44 = vmul.f32 %v4955_v40, %v571_v42  ;;  %v569_v45 = vsel %vm568_vm4, %v4953_v33, %v565_v41 }
 0x14c   : > { %v580_v46 = vmul.f32 %v569_v45, %v546_v8  ;;  %v626_v45 = vld [vmem:[%s6674_s21 + $0x20] sm:$0xff] }
 0x14d   : > { %v573_v48 = vmul.f32 0.5, %v572_v44 }
 0x14e   : > { %v583_v49 = vmul.f32 %v582_v43, %v580_v46 }
 0x14f   : > { %v574_v50 = vsub.f32 1.5, %v573_v48 }
 0x150   : > { %v586_v51 = vadd.f32 %v585_v47, %v583_v49 }
 0x151   : > { %v575_v52 = vmul.f32 %v4955_v40, %v574_v50 }
 0x152   : > { %4423 = vmatmul.msk.f32.vlgmr.msra.gmra.mxu1 %vm6651_vm1, %v586_v51  ;;  %4459 = vmatmul.msk.f32.vlgmr.msra.gmra.mxu2 %vm6651_vm1, %v586_v51 }
 0x153   : > { %v579_v53 = vsel %vm578_vm7, %v4955_v40, %v575_v52  ;;  %v623_v52 = vld [vmem:[%s6674_s21 + $0x8] sm:$0xff] }
 0x154   : > { %v581_v54 = vmul.f32 %v579_v53, %v5555_v13  ;;  %v627_v53 = vld [vmem:[%s6674_s21 + $0x28] sm:$0xff] }
 0x156   : > { %v584_v55 = vmul.f32 %v582_v43, %v581_v54  ;;  %v628_v43 = vld [vmem:[%s6674_s21 + $0x30] sm:$0xff] }
 0x158   : > { %v587_v56 = vadd.f32 %v585_v47, %v584_v55 }
 0x15a   : > { %4424 = vmatmul.msk.f32.gmra.mxu1 %vm6651_vm1, %v587_v56  ;;  %4460 = vmatmul.msk.f32.gmra.mxu2 %vm6651_vm1, %v587_v56 }
 0x162   : > { %4441 = vmatmul.msk.f32.vlgmr.msrb.gmra.mxu1 %vm6651_vm1, %v586_v51 }
 0x16a   : > { %4442 = vmatmul.msk.f32.gmra.mxu1 %vm6651_vm1, %v587_v56 }
 0x1cf   : > { %v678_v58 = vpop.f32.mrf.mxu1 }
 0x1d0   : > { %v679_v59 = vadd.f32 %v678_v58, %v638_v57 }
 0x1d2   : > { %959 = vrot.lane.b32.xlu0 %v679_v59, %s5332_s11  ;;  %791 = vrot.lane.b32.xlu2 %v679_v59, %s5333_s20 }
 0x1d3   : > { %819 = vrot.lane.b32.xlu1 %v679_v59, %s5334_s17 }
 0x1d5   : > { %v758_v5 = vpop.f32.mrf.mxu2 }
 0x1d6   : > { %v5627_v6 = vadd.f32 %v758_v5, %v724_v4  ;;  %v631_v5 = vld [vmem:[%s6674_s21 + $0x48] sm:$0xff] }
 0x1d7   : > { %v681_v60 = vpop.f32.mrf.mxu1 }
 0x1d8   : > { %v5583_v61 = vadd.f32 %v681_v60, %v638_v57  ;;  %v624_v60 = vld [vmem:[%s6674_s21 + $0x10] sm:$0xff] }
 0x1da   : > { %847 = vrot.lane.b32.xlu2 %v679_v59, %s5335_s19  ;;  %1069 = vrot.lane.b32.xlu0 %v5583_v61, %s5335_s19 }
 0x1db   : > { %931 = vrot.lane.b32.xlu1 %v679_v59, %s5336_s29 }
 0x1dd   : > { %v5647_v22 = vpop.f32.mrf.mxu2 }
 0x1df   : > { %v718_v63 = vpop.f32.mrf.mxu1 }
 0x1e0   : > { %v719_v0 = vadd.f32 %v718_v63, %v684_v62 }
 0x1e2   : > { %875 = vrot.lane.b32.xlu2 %v679_v59, %s5337_s24  ;;  %4461 = vmatpush.xpose.msk.msrb.mxu2 %vm764_vm8, %v719_v0 }
 0x1e3   : > { %1181 = vrot.lane.b32.xlu0 %v5583_v61, %s5332_s11  ;;  %1041 = vrot.lane.b32.xlu1 %v5583_v61, %s5334_s17 }
 0x1e5   : > { %4462 = vmatmul.msk.f32.vlgmr.msrb.gmra.mxu2 %vm764_vm8, %v679_v59 }
 0x1e7   : > { %v721_v1 = vpop.f32.mrf.mxu1 }
 0x1e8   : > { %v5600_v2 = vadd.f32 %v721_v1, %v684_v62 }
 0x1ea   : > { %903 = vrot.lane.b32.xlu2 %v679_v59, %s5338_s18 }
 0x1eb   : > { %821 = vrot.lane.b32.xlu0 %v719_v0, %s5334_s17  ;;  %1153 = vrot.lane.b32.xlu1 %v5583_v61, %s5336_s29 }
 0x1f2   : > { %793 = vrot.lane.b32.xlu2 %v719_v0, %s5333_s20 }
 0x1f3   : > { %961 = vrot.lane.b32.xlu0 %v719_v0, %s5332_s11  ;;  %1043 = vrot.lane.b32.xlu1 %v5600_v2, %s5334_s17 }
 0x1fa   : > { %849 = vrot.lane.b32.xlu2 %v719_v0, %s5335_s19 }
 0x1fb   : > { %1071 = vrot.lane.b32.xlu0 %v5600_v2, %s5335_s19  ;;  %1155 = vrot.lane.b32.xlu1 %v5600_v2, %s5336_s29 }
 0x202   : > { %933 = vrot.lane.b32.xlu2 %v719_v0, %s5336_s29 }
 0x203   : > { %1183 = vrot.lane.b32.xlu0 %v5600_v2, %s5332_s11  ;;  %1099 = vrot.lane.b32.xlu1 %v5600_v2, %s5337_s24 }
 0x20a   : > { %877 = vrot.lane.b32.xlu2 %v719_v0, %s5337_s24 }
 0x20b   : > { %1127 = vrot.lane.b32.xlu0 %v5600_v2, %s5338_s18  ;;  %1125 = vrot.lane.b32.xlu1 %v5583_v61, %s5338_s18 }
 0x212   : > { %905 = vrot.lane.b32.xlu2 %v719_v0, %s5338_s18 }
 0x213   : > { %1666 = vrot.lane.b32.xlu1 %v5627_v6, %s5334_s17 }
 0x21a   : > { %1015 = vrot.lane.b32.xlu2 %v5600_v2, %s5333_s20 }
 0x21b   : > { %1634 = vrot.lane.b32.xlu1 %v5627_v6, %s5333_s20 }
 0x222   : > { %1013 = vrot.lane.b32.xlu2 %v5583_v61, %s5333_s20 }
 0x22a   : > { %1097 = vrot.lane.b32.xlu2 %v5583_v61, %s5337_s24 }
 0x22c   : > { %v792_v7 = vpop.permute.xlu2 %791 }
 0x232   : > { %1698 = vrot.lane.b32.xlu2 %v5627_v6, %s5335_s19 }
 0x234   : > { %v848_v8 = vpop.permute.xlu2 %847 }
 0x23c   : > { %v876_v9 = vpop.permute.xlu2 %875 }
 0x244   : > { %v904_v10 = vpop.permute.xlu2 %903  ;;  %v960_v11 = vpop.permute.xlu0 %959 }
 0x245   : > { %v820_v12 = vpop.permute.xlu1 %819 }
 0x24c   : > { %v794_v13 = vpop.permute.xlu2 %793  ;;  %v1070_v14 = vpop.permute.xlu0 %1069 }
 0x24d   : > { %v932_v15 = vpop.permute.xlu1 %931  ;;  %4463 = vmatpush.xpose.msk.msra.mxu3 %vm764_vm8, %v794_v13 }
 0x250   : > { %4464 = vmatmul.msk.f32.vlgmr.msra.gmra.mxu3 %vm764_vm8, %v792_v7 }
 0x254   : > { %v850_v16 = vpop.permute.xlu2 %849 }
 0x255   : > { %v1042_v17 = vpop.permute.xlu1 %1041  ;;  %v1182_v18 = vpop.permute.xlu0 %1181 }
 0x25c   : > { %v934_v19 = vpop.permute.xlu2 %933 }
 0x25d   : > { %v1154_v20 = vpop.permute.xlu1 %1153  ;;  %v822_v21 = vpop.permute.xlu0 %821  ;;  %4473 = vmatpush.xpose.msk.msra.mxu2 %vm764_vm8, %v934_v19  ;;  %v635_v19 = vld [vmem:[%s6674_s21 + $0x68] sm:$0xff] }
 0x25e   : > { %4465 = vmatpush.xpose.msk.msrb.mxu3 %vm764_vm8, %v822_v21 }
 0x260   : > { %4474 = vmatmul.msk.f32.vlgmr.msra.gmra.mxu2 %vm764_vm8, %v932_v15  ;;  %v632_v15 = vld [vmem:[%s6674_s21 + $0x50] sm:$0xff] }
 0x261   : > { %4466 = vmatmul.msk.f32.vlgmr.msrb.gmra.mxu3 %vm764_vm8, %v820_v12 }
 0x262   : > { %4467 = vmatpush.xpose.msk.msra.mxu3 %vm764_vm8, %v850_v16 }
 0x264   : > { %v878_v23 = vpop.permute.xlu2 %877 }
 0x265   : > { %v1044_v24 = vpop.permute.xlu1 %1043  ;;  %v962_v25 = vpop.permute.xlu0 %961  ;;  %4469 = vmatpush.xpose.msk.msra.mxu0 %vm764_vm8, %v878_v23 }
 0x266   : > { %4475 = vmatpush.xpose.msk.msrb.mxu3 %vm764_vm8, %v962_v25  ;;  %4481 = vmatpush.xpose.msk.msrb.mxu2 %vm764_vm8, %v1044_v24 }
 0x268   : > { %v788_v27 = vpop.f32.mrf.mxu2  ;;  %4470 = vmatmul.msk.f32.vlgmr.msra.gmra.mxu0 %vm764_vm8, %v876_v9 }
 0x269   : > { %v5658_v28 = vadd.f32 %v788_v27, %v622_v26  ;;  %4468 = vmatmul.msk.f32.vlgmr.msra.gmra.mxu3 %vm764_vm8, %v848_v8  ;;  %4482 = vmatmul.msk.f32.vlgmr.msrb.gmra.mxu2 %vm764_vm8, %v1042_v17  ;;  %v625_v8 = vld [vmem:[%s6674_s21 + $0x18] sm:$0xff]  ;;  %v634_v26 = vld [vmem:[%s6674_s21 + $0x60] sm:$0xff] }
 0x26b   : > { %v1225_v29 = vsel %vm764_vm8, %v5658_v28, -inf }
 0x26c   : > { %v906_v30 = vpop.permute.xlu2 %905  ;;  %1226 = vmax.xlane.f32.xlu1 %v1225_v29 }
 0x26d   : > { %v1156_v31 = vpop.permute.xlu1 %1155  ;;  %v1072_v32 = vpop.permute.xlu0 %1071  ;;  %4471 = vmatpush.xpose.msk.msrb.mxu0 %vm764_vm8, %v906_v30 }
 0x26e   : > { %4483 = vmatpush.xpose.msk.msra.mxu3 %vm764_vm8, %v1072_v32  ;;  %4489 = vmatpush.xpose.msk.msra.mxu2 %vm764_vm8, %v1156_v31  ;;  %v629_v32 = vld [vmem:[%s6674_s21 + $0x38] sm:$0xff] }
 0x270   : > { %4472 = vmatmul.msk.f32.vlgmr.msrb.gmra.mxu0 %vm764_vm8, %v904_v10 }
 0x271   : > { %4477 = vmatpush.xpose.msk.msra.mxu0 %vm764_vm8, %v5600_v2  ;;  %4476 = vmatmul.msk.f32.vlgmr.msrb.gmra.mxu3 %vm764_vm8, %v960_v11 }
 0x272   : > { %4490 = vmatmul.msk.f32.vlgmr.msra.gmra.mxu2 %vm764_vm8, %v1154_v20 }
 0x274   : > { %v1016_v33 = vpop.permute.xlu2 %1015 }
 0x275   : > { %v1100_v34 = vpop.permute.xlu1 %1099  ;;  %v1184_v35 = vpop.permute.xlu0 %1183  ;;  %4479 = vmatpush.xpose.msk.msra.mxu1 %vm764_vm8, %v1016_v33 }
 0x276   : > { %4485 = vmatpush.xpose.msk.msrb.mxu0 %vm764_vm8, %v1100_v34  ;;  %4491 = vmatpush.xpose.msk.msrb.mxu3 %vm764_vm8, %v1184_v35 }
 0x278   : > { %4478 = vmatmul.msk.f32.vlgmr.msra.gmra.mxu0 %vm764_vm8, %v5583_v61  ;;  %v630_v61 = vld [vmem:[%s6674_s21 + $0x40] sm:$0xff] }
 0x279   : > { %4484 = vmatmul.msk.f32.vlgmr.msra.gmra.mxu3 %vm764_vm8, %v1070_v14 }
 0x27a   : > { %1627 = vmatpush.msra.mxu0 %v5627_v6 }
 0x27c   : > { %v1014_v36 = vpop.permute.xlu2 %1013 }
 0x27d   : > { %v1126_v37 = vpop.permute.xlu1 %1125  ;;  %v1128_v38 = vpop.permute.xlu0 %1127  ;;  %4480 = vmatmul.msk.f32.vlgmr.msra.gmra.mxu1 %vm764_vm8, %v1014_v36  ;;  %v5782_v36 = vadd.f32 %v5647_v22, %v724_v4 }
 0x27e   : > { %4487 = vmatpush.xpose.msk.msrb.mxu1 %vm764_vm8, %v1128_v38  ;;  %v637_v38 = vld [vmem:[%s6674_s21 + $0x78] sm:$0xff] }
 0x281   : > { %4492 = vmatmul.msk.f32.vlgmr.msrb.gmra.mxu3 %vm764_vm8, %v1182_v18 }
 0x284   : > { %v1098_v39 = vpop.permute.xlu2 %1097 }
 0x285   : > { %v1667_v40 = vpop.permute.xlu1 %1666  ;;  %4486 = vmatmul.msk.f32.vlgmr.msrb.gmra.mxu0 %vm764_vm8, %v1098_v39  ;;  %4488 = vmatmul.msk.f32.vlgmr.msrb.gmra.mxu1 %vm764_vm8, %v1126_v37 }
 0x286   : > { %1687 = vmatpush.msrb.mxu2 %v1667_v40 }
 0x28c   : > { %v1699_v41 = vpop.permute.xlu2 %1698 }
 0x28d   : > { %v1635_v42 = vpop.permute.xlu1 %1634  ;;  %1719 = vmatpush.msra.mxu3 %v1699_v41 }
 0x28e   : > { %1655 = vmatpush.msra.mxu1 %v1635_v42 }
 0x2d3   : > { %v816_v50 = vpop.f32.mrf.mxu3 }
 0x2d4   : > { %v5704_v54 = vadd.f32 %v816_v50, %v623_v52 }
 0x2d6   : > { %v1228_v58 = vsel %vm764_vm8, %v5704_v54, -inf }
 0x2df   : > { %v1227_v7 = vpop.xlane.xlu1 %1226 }
 0x2e0   : > { %v1273_v12 = vsub.f32 %v5658_v28, %v1227_v7 }
 0x2e2   : > { %v1289_v17 = vmul.f32 1.442695, %v1273_v12 }
 0x2e3   : > { %v956_v44 = vpop.f32.mrf.mxu2 }
 0x2e4   : > { %v5690_v46 = vadd.f32 %v956_v44, %v628_v43  ;;  %v844_v57 = vpop.f32.mrf.mxu3  ;;  %4956 = vpow2.f32 %v1289_v17 }
 0x2e5   : > { %v900_v47 = vpop.f32.mrf.mxu0  ;;  %v5718_v62 = vadd.f32 %v844_v57, %v624_v60 }
 0x2e6   : > { %v5692_v48 = vadd.f32 %v900_v47, %v626_v45  ;;  %v1243_v49 = vsel %vm764_vm8, %v5690_v46, -inf }
 0x2e7   : > { %1244 = vmax.xlane.f32.xlu2 %v1243_v49  ;;  %v1231_v2 = vsel %vm764_vm8, %v5718_v62, -inf }
 0x2e8   : > { %v1237_v51 = vsel %vm764_vm8, %v5692_v48, -inf }
 0x2e9   : > { %1238 = vmax.xlane.f32.xlu0 %v1237_v51 }
 0x2ea   : > { %v5760_v29 = vpop.eup %4956 }
 0x2eb   : > { %v1321_v31 = vsel %vm764_vm8, %v5760_v29, 0.0 }
 0x2ec   : > { %v872_v9 = vpop.f32.mrf.mxu3  ;;  %v1066_v16 = vpop.f32.mrf.mxu2 }
 0x2ed   : > { %v928_v55 = vpop.f32.mrf.mxu0  ;;  %v5735_v13 = vadd.f32 %v872_v9, %v625_v8  ;;  %v5747_v20 = vadd.f32 %v1066_v16, %v632_v15 }
 0x2ee   : > { %v5706_v56 = vadd.f32 %v928_v55, %v627_v53 }
 0x2ef   : > { %v1234_v18 = vsel %vm764_vm8, %v5735_v13, -inf  ;;  %v1255_v24 = vsel %vm764_vm8, %v5747_v20, -inf }
 0x2f0   : > { %v1240_v59 = vsel %vm764_vm8, %v5706_v56, -inf }
 0x2f1   : > { %1229 = vmax.xlane.f32.xlu0 %v1228_v58  ;;  %1241 = vmax.xlane.f32.xlu2 %v1240_v59 }
 0x2f4   : > { %v984_v33 = vpop.f32.mrf.mxu3 }
 0x2f5   : > { %v1010_v63 = vpop.f32.mrf.mxu0  ;;  %v5769_v34 = vadd.f32 %v984_v33, %v629_v32  ;;  %v1178_v41 = vpop.f32.mrf.mxu2 }
 0x2f6   : > { %v5720_v0 = vadd.f32 %v1010_v63, %v630_v61 }
 0x2f7   : > { %v1246_v35 = vsel %vm764_vm8, %v5769_v34, -inf }
 0x2f8   : > { %v1249_v1 = vsel %vm764_vm8, %v5720_v0, -inf }
 0x2f9   : > { %1250 = vmax.xlane.f32.xlu2 %v1249_v1  ;;  %1232 = vmax.xlane.f32.xlu0 %v1231_v2 }
 0x2fa   : > { %v1038_v10 = vpop.f32.mrf.mxu1 }
 0x2fb   : > { %v5732_v11 = vadd.f32 %v1038_v10, %v631_v5 }
 0x2fc   : > { %v5786_v37 = vpop.f32.mrf.mxu3 }
 0x2fd   : > { %v1252_v14 = vsel %vm764_vm8, %v5732_v11, -inf }
 0x2fe   : > { %1253 = vmax.xlane.f32.xlu1 %v1252_v14 }
 0x301   : > { %1235 = vmax.xlane.f32.xlu2 %v1234_v18 }
 0x302   : > { %v1150_v21 = vpop.f32.mrf.mxu1  ;;  %v1122_v27 = vpop.f32.mrf.mxu0 }
 0x303   : > { %v5749_v23 = vadd.f32 %v1150_v21, %v635_v19  ;;  %v5758_v28 = vadd.f32 %v1122_v27, %v634_v26 }
 0x304   : > { %v1206_v39 = vpop.f32.mrf.mxu3 }
 0x305   : > { %v1264_v25 = vsel %vm764_vm8, %v5749_v23, -inf  ;;  %v1261_v30 = vsel %vm764_vm8, %v5758_v28, -inf  ;;  %v5795_v3 = vadd.f32 %v1206_v39, %v637_v38 }
 0x306   : > { %1256 = vmax.xlane.f32.xlu1 %v1255_v24  ;;  %1265 = vmax.xlane.f32.xlu0 %v1264_v25 }
 0x307   : > { %v1270_v4 = vsel %vm764_vm8, %v5795_v3, -inf }
 0x30e   : > { %1262 = vmax.xlane.f32.xlu1 %v1261_v30  ;;  %1322 = vadd.xlane.f32.xlu0 %v1321_v31 }
 0x316   : > { %1247 = vmax.xlane.f32.xlu1 %v1246_v35 }
 0x319   : > { %1794 = vrot.lane.b32.xlu2 %v5627_v6, %s5336_s29 }
 0x322   : > { %1826 = vrot.lane.b32.xlu0 %v5627_v6, %s5332_s11 }
 0x32a   : > { %1730 = vrot.lane.b32.xlu0 %v5627_v6, %s5337_s24 }
 0x32f   : > { %1945 = vrot.lane.b32.xlu1 %v5782_v36, %s5335_s19 }
 0x332   : > { %1762 = vrot.lane.b32.xlu0 %v5627_v6, %s5338_s18  ;;  %v636_v6 = vld [vmem:[%s6674_s21 + $0x70] sm:$0xff] }
 0x333   : > { %v5804_v45 = vadd.f32 %v1178_v41, %v636_v6 }
 0x335   : > { %v1267_v49 = vsel %vm764_vm8, %v5804_v45, -inf }
 0x33a   : > { %1914 = vrot.lane.b32.xlu0 %v5782_v36, %s5334_s17 }
 0x342   : > { %1271 = vmax.xlane.f32.xlu2 %v1270_v4 }
 0x35a   : > { %v1245_v22 = vpop.xlane.xlu2 %1244 }
 0x35b   : > { %v1279_v40 = vsub.f32 %v5690_v46, %v1245_v22 }
 0x35c   : > { %v1239_v42 = vpop.xlane.xlu0 %1238 }
 0x35d   : > { %v1301_v43 = vmul.f32 1.442695, %v1279_v40  ;;  %v1277_v44 = vsub.f32 %v5692_v48, %v1239_v42 }
 0x35f   : > { %4958 = vpow2.f32 %v1301_v43  ;;  %v1297_v47 = vmul.f32 1.442695, %v1277_v44  ;;  %v633_v44 = vld [vmem:[%s6674_s21 + $0x58] sm:$0xff] }
 0x361   : > { %4960 = vpow2.f32 %v1297_v47 }
 0x364   : > { %v1242_v50 = vpop.xlane.xlu2 %1241  ;;  %1268 = vmax.xlane.f32.xlu0 %v1267_v49  ;;  %v1230_v46 = vpop.xlane.xlu0 %1229 }
 0x365   : > { %v5808_v51 = vpop.eup %4958  ;;  %v1278_v52 = vsub.f32 %v5706_v56, %v1242_v50  ;;  %v1274_v53 = vsub.f32 %v5704_v54, %v1230_v46  ;;  %v5857_v50 = vadd.f32 %v5786_v37, %v633_v44 }
 0x366   : > { %v1339_v48 = vsel %vm764_vm8, %v5808_v51, 0.0 }
 0x367   : > { %v5814_v55 = vpop.eup %4960  ;;  %v1299_v57 = vmul.f32 1.442695, %v1278_v52  ;;  %v1291_v58 = vmul.f32 1.442695, %v1274_v53  ;;  %1340 = vadd.xlane.f32.xlu1 %v1339_v48  ;;  %v1258_v46 = vsel %vm764_vm8, %v5857_v50, -inf }
 0x368   : > { %v1333_v59 = vsel %vm764_vm8, %v5814_v55, 0.0 }
 0x369   : > { %4962 = vpow2.f32 %v1299_v57  ;;  %1334 = vadd.xlane.f32.xlu2 %v1333_v59 }
 0x36a   : > { %4964 = vpow2.f32 %v1291_v58 }
 0x36c   : > { %v5818_v60 = vpop.xlane.xlu2 %1250  ;;  %v1233_v61 = vpop.xlane.xlu0 %1232 }
 0x36d   : > { %v1275_v56 = vsub.f32 %v5718_v62, %v1233_v61  ;;  %v1281_v37 = vsub.f32 %v5720_v0, %v5818_v60 }
 0x36f   : > { %v5821_v54 = vpop.eup %4962  ;;  %v1293_v63 = vmul.f32 1.442695, %v1275_v56 }
 0x370   : > { %v5823_v1 = vpop.eup %4964  ;;  %v1336_v2 = vsel %vm764_vm8, %v5821_v54, 0.0 }
 0x371   : > { %v1254_v5 = vpop.xlane.xlu1 %1253  ;;  %1337 = vadd.xlane.f32.xlu1 %v1336_v2  ;;  %v1324_v7 = vsel %vm764_vm8, %v5823_v1, 0.0  ;;  %4966 = vpow2.f32 %v1293_v63 }
 0x372   : > { %1325 = vadd.xlane.f32.xlu2 %v1324_v7  ;;  %v1282_v43 = vsub.f32 %v5732_v11, %v1254_v5 }
 0x374   : > { %v1236_v8 = vpop.xlane.xlu2 %1235  ;;  %v1307_v47 = vmul.f32 1.442695, %v1282_v43 }
 0x375   : > { %v1276_v9 = vsub.f32 %v5735_v13, %v1236_v8 }
 0x377   : > { %v1295_v10 = vmul.f32 1.442695, %v1276_v9  ;;  %v5830_v62 = vpop.eup %4966 }
 0x378   : > { %1883 = vrot.lane.b32.xlu0 %v5782_v36, %s5333_s20  ;;  %v1327_v14 = vsel %vm764_vm8, %v5830_v62, 0.0 }
 0x379   : > { %4968 = vpow2.f32 %v1295_v10  ;;  %v1257_v12 = vpop.xlane.xlu1 %1256  ;;  %v1266_v15 = vpop.xlane.xlu0 %1265 }
 0x37a   : > { %1328 = vadd.xlane.f32.xlu2 %v1327_v14  ;;  %v1286_v16 = vsub.f32 %v5749_v23, %v1266_v15 }
 0x37c   : > { %v1315_v17 = vmul.f32 1.442695, %v1286_v16  ;;  %v1795_v18 = vpop.permute.xlu2 %1794 }
 0x37d   : > { %1815 = vmatpush.msra.mxu2 %v1795_v18 }
 0x37e   : > { %4970 = vpow2.f32 %v1315_v17 }
 0x37f   : > { %v5837_v19 = vpop.eup %4968 }
 0x380   : > { %v1330_v13 = vsel %vm764_vm8, %v5837_v19, 0.0 }
 0x381   : > { %v1263_v21 = vpop.xlane.xlu1 %1262  ;;  %1331 = vadd.xlane.f32.xlu1 %v1330_v13  ;;  %v1323_v24 = vpop.xlane.xlu0 %1322 }
 0x382   : > { %v1285_v25 = vsub.f32 %v5758_v28, %v1263_v21  ;;  %4972 = vrcp.f32 %v1323_v24  ;;  %v1380_v35 = vand.u32 2147483648, %v1323_v24  ;;  %v1378_v39 = vand.u32 2147483647, %v1323_v24 }
 0x383   : > { %vm1374_vm10 = vweird.f32 %v1323_v24 }
 0x384   : > { %v1313_v26 = vmul.f32 1.442695, %v1285_v25  ;;  %v5842_v27 = vpop.eup %4970  ;;  %v1381_v22 = vor.u32 1.1754944e-38, %v1380_v35  ;;  %vm1379_vm12 = vcmp.eq.f32.partialorder %v1378_v39, 8.507059e+37 }
 0x385   : > { %v1360_v23 = vsel %vm764_vm8, %v5842_v27, 0.0 }
 0x386   : > { %4974 = vpow2.f32 %v1313_v26  ;;  %1361 = vadd.xlane.f32.xlu2 %v1360_v23 }
 0x387   : > { %4976 = vpow2.f32 %v1307_v47 }
 0x388   : > { %v4973_v30 = vpop.eup %4972 }
 0x389   : > { %v1370_v31 = vmul.f32 %v4973_v30, %v1323_v24  ;;  %vm1375_vm9 = vweird.f32 %v4973_v30  ;;  %v1248_v0 = vpop.xlane.xlu1 %1247 }
 0x38a   : > { %vm1376_vm11 = vmor %vm1374_vm10, %vm1375_vm9  ;;  %v1280_v7 = vsub.f32 %v5769_v34, %v1248_v0 }
 0x38b   : > { %v1371_v32 = vsub.f32 1.0, %v1370_v31 }
 0x38c   : > { %v5846_v33 = vpop.eup %4974 }
 0x38d   : > { %v1372_v38 = vmul.f32 %v4973_v30, %v1371_v32  ;;  %v1357_v28 = vsel %vm764_vm8, %v5846_v33, 0.0  ;;  %v5863_v53 = vpop.eup %4976 }
 0x38e   : > { %1358 = vadd.xlane.f32.xlu1 %v1357_v28  ;;  %v1348_v48 = vsel %vm764_vm8, %v5863_v53, 0.0 }
 0x38f   : > { %v1373_v4 = vadd.f32 %v4973_v30, %v1372_v38 }
 0x391   : > { %v1377_v40 = vsel %vm1376_vm11, %v4973_v30, %v1373_v4 }
 0x392   : > { %v1382_v6 = vsel %vm1379_vm12, %v1381_v22, %v1377_v40 }
 0x393   : > { %v1383_v41 = vmul.f32 %v5760_v29, %v1382_v6  ;;  %v1283_v29 = vsub.f32 %v5747_v20, %v1257_v12  ;;  %v1305_v20 = vmul.f32 1.442695, %v1281_v37  ;;  %v1303_v12 = vmul.f32 1.442695, %v1280_v7 }
 0x394   : > { %v1827_v42 = vpop.permute.xlu0 %1826 }
 0x395   : > { %4493 = vmatmul.msk.f32.vlgmr.msra.gmra.mxu0 %vm764_vm8, %v1383_v41  ;;  %1847 = vmatpush.msrb.mxu3 %v1827_v42  ;;  %v1309_v11 = vmul.f32 1.442695, %v1283_v29 }
 0x397   : > { %4978 = vpow2.f32 %v1309_v11 }
 0x398   : > { %4980 = vpow2.f32 %v1305_v20 }
 0x39c   : > { %v1731_v49 = vpop.permute.xlu0 %1730 }
 0x39d   : > { %1751 = vmatpush.msrb.mxu0 %v1731_v49  ;;  %v5871_v57 = vpop.eup %4978 }
 0x39e   : > { %v1351_v58 = vsel %vm764_vm8, %v5871_v57, 0.0  ;;  %v5875_v59 = vpop.eup %4980 }
 0x39f   : > { %1876 = vmatpush.msra.mxu0 %v5782_v36  ;;  %v1345_v61 = vsel %vm764_vm8, %v5875_v59, 0.0 }
 0x3a1   : > { %v5881_v56 = vpop.permute.xlu1 %1945 }
 0x3a2   : > { %1259 = vmax.xlane.f32.xlu0 %v1258_v46 }
 0x3a4   : > { %v1763_v52 = vpop.permute.xlu0 %1762 }
 0x3a5   : > { %1783 = vmatpush.msrb.mxu1 %v1763_v52 }
 0x3a7   : > { %2007 = vrot.lane.b32.xlu1 %v5782_v36, %s5338_s18 }
 0x3aa   : > { %1349 = vadd.xlane.f32.xlu0 %v1348_v48 }
 0x3ac   : > { %v5879_v60 = vpop.permute.xlu0 %1914 }
 0x3b2   : > { %1352 = vadd.xlane.f32.xlu0 %v1351_v58 }
 0x3b5   : > { %v5883_v63 = vpop.xlane.xlu2 %1271 }
 0x3ba   : > { %1346 = vadd.xlane.f32.xlu0 %v1345_v61 }
 0x3d7   : > { %v1269_v2 = vpop.xlane.xlu0 %1268 }
 0x3d8   : > { %v1287_v5 = vsub.f32 %v5804_v45, %v1269_v2 }
 0x3da   : > { %v1317_v8 = vmul.f32 1.442695, %v1287_v5  ;;  %v5887_v9 = vpop.xlane.xlu1 %1340 }
 0x3dc   : > { %4982 = vpow2.f32 %v1317_v8  ;;  %v1335_v10 = vpop.xlane.xlu2 %1334 }
 0x3dd   : > { %4984 = vrcp.f32 %v1335_v10  ;;  %v1440_v13 = vand.u32 2147483648, %v1335_v10  ;;  %v1438_v25 = vand.u32 2147483647, %v1335_v10  ;;  %vm1434_vm14 = vweird.f32 %v1335_v10 }
 0x3de   : > { %4986 = vpow2.f32 %v1303_v12 }
 0x3df   : > { %v1441_v30 = vor.u32 1.1754944e-38, %v1440_v13  ;;  %vm1439_vm0 = vcmp.eq.f32.partialorder %v1438_v25, 8.507059e+37 }
 0x3e2   : > { %v5889_v14 = vpop.eup %4982 }
 0x3e3   : > { %v4985_v15 = vpop.eup %4984  ;;  %v1363_v16 = vsel %vm764_vm8, %v5889_v14, 0.0 }
 0x3e4   : > { %v1430_v17 = vmul.f32 %v4985_v15, %v1335_v10  ;;  %v5893_v18 = vpop.xlane.xlu1 %1337  ;;  %1364 = vadd.xlane.f32.xlu0 %v1363_v16  ;;  %v5897_v21 = vpop.eup %4986  ;;  %vm1435_vm13 = vweird.f32 %v4985_v15 }
 0x3e5   : > { %4988 = vrcp.f32 %v5893_v18  ;;  %v1326_v34 = vpop.xlane.xlu2 %1325  ;;  %vm1436_vm15 = vmor %vm1434_vm14, %vm1435_vm13  ;;  %v1342_v31 = vsel %vm764_vm8, %v5897_v21, 0.0  ;;  %v1455_v58 = vand.u32 2147483648, %v5893_v18  ;;  %vm1449_vm7 = vweird.f32 %v5893_v18 }
 0x3e6   : > { %v1431_v45 = vsub.f32 1.0, %v1430_v17  ;;  %4990 = vrcp.f32 %v1326_v34  ;;  %v1393_v43 = vand.u32 2147483647, %v1326_v34  ;;  %v1395_v44 = vand.u32 2147483648, %v1326_v34 }
 0x3e7   : > { %4992 = vrcp.f32 %v5887_v9  ;;  %vm1389_vm3 = vweird.f32 %v1326_v34  ;;  %v1453_v0 = vand.u32 2147483647, %v5893_v18 }
 0x3e8   : > { %v1432_v24 = vmul.f32 %v4985_v15, %v1431_v45  ;;  %vm1394_vm5 = vcmp.eq.f32.partialorder %v1393_v43, 8.507059e+37  ;;  %v1396_v52 = vor.u32 1.1754944e-38, %v1395_v44 }
 0x3e9   : > { %vm1454_vm11 = vcmp.eq.f32.partialorder %v1453_v0, 8.507059e+37 }
 0x3ea   : > { %v1433_v26 = vadd.f32 %v4985_v15, %v1432_v24 }
 0x3eb   : > { %v4989_v23 = vpop.eup %4988 }
 0x3ec   : > { %v4991_v32 = vpop.eup %4990  ;;  %v1437_v35 = vsel %vm1436_vm15, %v4985_v15, %v1433_v26  ;;  %v1445_v38 = vmul.f32 %v4989_v23, %v5893_v18  ;;  %1343 = vadd.xlane.f32.xlu0 %v1342_v31  ;;  %vm1450_vm6 = vweird.f32 %v4989_v23  ;;  %v1884_v15 = vpop.permute.xlu0 %1883  ;;  %v1456_v18 = vor.u32 1.1754944e-38, %v1455_v58 }
 0x3ed   : > { %v5902_v39 = vpop.eup %4992  ;;  %v1442_v28 = vsel %vm1439_vm0, %v1441_v30, %v1437_v35  ;;  %v1385_v4 = vmul.f32 %v4991_v32, %v1326_v34  ;;  %v1329_v22 = vpop.xlane.xlu2 %1328  ;;  %vm1390_vm2 = vweird.f32 %v4991_v32  ;;  %vm5913_vm9 = vmor %vm1449_vm7, %vm1450_vm6  ;;  %vm1464_vm0 = vweird.f32 %v5887_v9 }
 0x3ee   : > { %v1446_v40 = vsub.f32 1.0, %v1445_v38  ;;  %4994 = vrcp.f32 %v1329_v22  ;;  %v1443_v41 = vmul.f32 %v5814_v55, %v1442_v28  ;;  %v1460_v42 = vmul.f32 %v5902_v39, %v5887_v9  ;;  %vm1391_vm4 = vmor %vm1389_vm3, %vm1390_vm2 }
 0x3ef   : > { %v1386_v6 = vsub.f32 1.0, %v1385_v4  ;;  %v1410_v10 = vand.u32 2147483648, %v1329_v22  ;;  %v1408_v17 = vand.u32 2147483647, %v1329_v22  ;;  %vm1404_vm12 = vweird.f32 %v1329_v22 }
 0x3f0   : > { %v1447_v47 = vmul.f32 %v4989_v23, %v1446_v40  ;;  %4497 = vmatmul.msk.f32.vlgmr.msrb.gmra.mxu0 %vm764_vm8, %v1443_v41  ;;  %v1461_v11 = vsub.f32 1.0, %v1460_v42  ;;  %vm1465_vm13 = vweird.f32 %v5902_v39  ;;  %v1468_v31 = vand.u32 2147483647, %v5887_v9 }
 0x3f1   : > { %v1387_v49 = vmul.f32 %v4991_v32, %v1386_v6  ;;  %v1411_v13 = vor.u32 1.1754944e-38, %v1410_v10  ;;  %vm1409_vm15 = vcmp.eq.f32.partialorder %v1408_v17, 8.507059e+37  ;;  %vm1466_vm2 = vmor %vm1464_vm0, %vm1465_vm13 }
 0x3f2   : > { %v1448_v48 = vadd.f32 %v4989_v23, %v1447_v47  ;;  %v1462_v7 = vmul.f32 %v5902_v39, %v1461_v11 }
 0x3f3   : > { %v1388_v29 = vadd.f32 %v4991_v32, %v1387_v49 }
 0x3f4   : > { %v4995_v46 = vpop.eup %4994  ;;  %v1332_v37 = vpop.xlane.xlu1 %1331  ;;  %v1452_v12 = vsel %vm5913_vm9, %v4989_v23, %v1448_v48  ;;  %v1463_v24 = vadd.f32 %v5902_v39, %v1462_v7  ;;  %v1470_v23 = vand.u32 2147483648, %v5887_v9 }
 0x3f5   : > { %v1392_v55 = vsel %vm1391_vm4, %v4991_v32, %v1388_v29  ;;  %v1400_v20 = vmul.f32 %v4995_v46, %v1329_v22  ;;  %4996 = vrcp.f32 %v1332_v37  ;;  %vm1405_vm10 = vweird.f32 %v4995_v46 }
 0x3f6   : > { %v1397_v61 = vsel %vm1394_vm5, %v1396_v52, %v1392_v55  ;;  %v1457_v45 = vsel %vm1454_vm11, %v1456_v18, %v1452_v12  ;;  %vm1406_vm14 = vmor %vm1404_vm12, %vm1405_vm10  ;;  %v1425_v28 = vand.u32 2147483648, %v1332_v37  ;;  %v1467_v4 = vsel %vm1466_vm2, %v5902_v39, %v1463_v24 }
 0x3f7   : > { %v1401_v2 = vsub.f32 1.0, %v1400_v20  ;;  %v1398_v5 = vmul.f32 %v5823_v1, %v1397_v61  ;;  %v1458_v38 = vmul.f32 %v5821_v54, %v1457_v45  ;;  %v1423_v40 = vand.u32 2147483647, %v1332_v37 }
 0x3f8   : > { %v1471_v9 = vor.u32 1.1754944e-38, %v1470_v23  ;;  %vm1469_vm4 = vcmp.eq.f32.partialorder %v1468_v31, 8.507059e+37  ;;  %vm1419_vm5 = vweird.f32 %v1332_v37  ;;  %v1426_v6 = vor.u32 1.1754944e-38, %v1425_v28 }
 0x3f9   : > { %v1402_v16 = vmul.f32 %v4995_v46, %v1401_v2  ;;  %4494 = vmatmul.msk.f32.vlgmr.msra.gmra.mxu1 %vm764_vm8, %v1398_v5  ;;  %vm1424_vm7 = vcmp.eq.f32.partialorder %v1423_v40, 8.507059e+37  ;;  %v1362_v47 = vpop.xlane.xlu2 %1361 }
 0x3fa   : > { %1904 = vmatpush.msra.mxu1 %v1884_v15  ;;  %4998 = vrcp.f32 %v1362_v47 }
 0x3fb   : > { %v1403_v1 = vadd.f32 %v4995_v46, %v1402_v16  ;;  %v4997_v34 = vpop.eup %4996 }
 0x3fc   : > { %v1415_v26 = vmul.f32 %v4997_v34, %v1332_v37  ;;  %vm1420_vm3 = vweird.f32 %v4997_v34 }
 0x3fd   : > { %v1407_v25 = vsel %vm1406_vm14, %v4995_v46, %v1403_v1  ;;  %vm1421_vm6 = vmor %vm1419_vm5, %vm1420_vm3  ;;  %vm1569_vm14 = vweird.f32 %v1362_v47 }
 0x3fe   : > { %v1412_v30 = vsel %vm1409_vm15, %v1411_v13, %v1407_v25  ;;  %v1416_v32 = vsub.f32 1.0, %v1415_v26  ;;  %v1573_v13 = vand.u32 2147483647, %v1362_v47 }
 0x3ff   : > { %v1413_v35 = vmul.f32 %v5830_v62, %v1412_v30  ;;  %v1472_v62 = vsel %vm1469_vm4, %v1471_v9, %v1467_v4 }
 0x400   : > { %2069 = vrot.lane.b32.xlu0 %v5782_v36, %s5332_s11  ;;  %v1417_v22 = vmul.f32 %v4997_v34, %v1416_v32  ;;  %v1473_v43 = vmul.f32 %v5808_v51, %v1472_v62  ;;  %vm1574_vm2 = vcmp.eq.f32.partialorder %v1573_v13, 8.507059e+37 }
 0x401   : > { %4495 = vmatmul.msk.f32.vlgmr.msrb.gmra.mxu2 %vm764_vm8, %v1413_v35  ;;  %4498 = vmatmul.msk.f32.vlgmr.msrb.gmra.mxu1 %vm764_vm8, %v1458_v38 }
 0x402   : > { %1935 = vmatpush.msrb.mxu2 %v5879_v60  ;;  %v1418_v54 = vadd.f32 %v4997_v34, %v1417_v22  ;;  %v5940_v60 = vpop.xlane.xlu1 %1358 }
 0x404   : > { %v1422_v41 = vsel %vm1421_vm6, %v4997_v34, %v1418_v54  ;;  %v1575_v34 = vand.u32 2147483648, %v1362_v47 }
 0x405   : > { %v1427_v42 = vsel %vm1424_vm7, %v1426_v6, %v1422_v41 }
 0x406   : > { %v1428_v39 = vmul.f32 %v5837_v19, %v1427_v42  ;;  %v1288_v19 = vsub.f32 %v5795_v3, %v5883_v63  ;;  %v1576_v32 = vor.u32 1.1754944e-38, %v1575_v34 }
 0x408   : > { %4496 = vmatmul.msk.f32.vlgmr.msra.gmra.mxu3 %vm764_vm8, %v1428_v39  ;;  %v1319_v11 = vmul.f32 1.442695, %v1288_v19 }
 0x409   : > { %4499 = vmatmul.msk.f32.vlgmr.msra.gmra.mxu2 %vm764_vm8, %v1473_v43  ;;  %1966 = vmatpush.msra.mxu3 %v5881_v56  ;;  %v4999_v56 = vpop.eup %4998 }
 0x40a   : > { %v1565_v48 = vmul.f32 %v4999_v56, %v1362_v47  ;;  %vm1570_vm11 = vweird.f32 %v4999_v56 }
 0x40b   : > { %vm1571_vm15 = vmor %vm1569_vm14, %vm1570_vm11 }
 0x40c   : > { %v1566_v3 = vsub.f32 1.0, %v1565_v48 }
 0x40e   : > { %v1567_v5 = vmul.f32 %v4999_v56, %v1566_v3 }
 0x410   : > { %v1568_v16 = vadd.f32 %v4999_v56, %v1567_v5 }
 0x412   : > { %v1629_v44 = vpop.f32.mrf.mxu0  ;;  %v1572_v23 = vsel %vm1571_vm15, %v4999_v56, %v1568_v16 }
 0x413   : > { %1632 = vst.msk [vmem:[#allocation3] sm:$0xff] %vm764_vm8, %v1629_v44  ;;  %v1577_v28 = vsel %vm1574_vm2, %v1576_v32, %v1572_v23 }
 0x414   : > { %v1578_v62 = vmul.f32 %v5842_v27, %v1577_v28 }
 0x415   : > { %v1260_v49 = vpop.xlane.xlu0 %1259 }
 0x416   : > { %v1284_v29 = vsub.f32 %v5857_v50, %v1260_v49 }
 0x418   : > { %v1311_v51 = vmul.f32 1.442695, %v1284_v29 }
 0x419   : > { %v2008_v46 = vpop.permute.xlu1 %2007 }
 0x41a   : > { %5000 = vpow2.f32 %v1311_v51  ;;  %2028 = vmatpush.msrb.mxu1 %v2008_v46 }
 0x41d   : > { %v1350_v52 = vpop.xlane.xlu0 %1349 }
 0x41e   : > { %5002 = vrcp.f32 %v1350_v52  ;;  %v1515_v0 = vand.u32 2147483648, %v1350_v52  ;;  %v1513_v8 = vand.u32 2147483647, %v1350_v52  ;;  %vm1509_vm10 = vweird.f32 %v1350_v52 }
 0x41f   : > { %5004 = vpow2.f32 %v1319_v11 }
 0x420   : > { %v5946_v37 = vpop.eup %5000  ;;  %v1516_v15 = vor.u32 1.1754944e-38, %v1515_v0  ;;  %vm1514_vm13 = vcmp.eq.f32.partialorder %v1513_v8, 8.507059e+37 }
 0x421   : > { %v1354_v55 = vsel %vm764_vm8, %v5946_v37, 0.0 }
 0x422   : > { %1355 = vadd.xlane.f32.xlu2 %v1354_v55 }
 0x424   : > { %v5003_v50 = vpop.eup %5002 }
 0x425   : > { %v5950_v20 = vpop.eup %5004  ;;  %v1505_v63 = vmul.f32 %v5003_v50, %v1350_v52  ;;  %v1353_v58 = vpop.xlane.xlu0 %1352  ;;  %vm1510_vm9 = vweird.f32 %v5003_v50 }
 0x426   : > { %5006 = vrcp.f32 %v1353_v58  ;;  %v1366_v2 = vsel %vm764_vm8, %v5950_v20, 0.0  ;;  %vm1511_vm12 = vmor %vm1509_vm10, %vm1510_vm9  ;;  %v1530_v26 = vand.u32 2147483648, %v1353_v58  ;;  %v1528_v31 = vand.u32 2147483647, %v1353_v58 }
 0x427   : > { %v1506_v61 = vsub.f32 1.0, %v1505_v63  ;;  %vm1524_vm3 = vweird.f32 %v1353_v58 }
 0x428   : > { %v1531_v4 = vor.u32 1.1754944e-38, %v1530_v26  ;;  %vm1529_vm5 = vcmp.eq.f32.partialorder %v1528_v31, 8.507059e+37 }
 0x429   : > { %v1507_v7 = vmul.f32 %v5003_v50, %v1506_v61 }
 0x42a   : > { %1367 = vadd.xlane.f32.xlu0 %v1366_v2 }
 0x42b   : > { %v1508_v10 = vadd.f32 %v5003_v50, %v1507_v7 }
 0x42c   : > { %v5007_v12 = vpop.eup %5006 }
 0x42d   : > { %v1512_v17 = vsel %vm1511_vm12, %v5003_v50, %v1508_v10  ;;  %v1520_v18 = vmul.f32 %v5007_v12, %v1353_v58  ;;  %v1347_v1 = vpop.xlane.xlu0 %1346  ;;  %vm1525_vm0 = vweird.f32 %v5007_v12 }
 0x42e   : > { %v1517_v45 = vsel %vm1514_vm13, %v1516_v15, %v1512_v17  ;;  %5008 = vrcp.f32 %v1347_v1  ;;  %vm1526_vm4 = vmor %vm1524_vm3, %vm1525_vm0  ;;  %v1500_v6 = vand.u32 2147483648, %v1347_v1  ;;  %v1498_v42 = vand.u32 2147483647, %v1347_v1 }
 0x42f   : > { %v1521_v24 = vsub.f32 1.0, %v1520_v18  ;;  %v1518_v25 = vmul.f32 %v5863_v53, %v1517_v45  ;;  %vm1494_vm7 = vweird.f32 %v1347_v1 }
 0x430   : > { %v1501_v43 = vor.u32 1.1754944e-38, %v1500_v6  ;;  %vm1499_vm10 = vcmp.eq.f32.partialorder %v1498_v42, 8.507059e+37  ;;  %v1558_v42 = vand.u32 2147483647, %v5940_v60 }
 0x431   : > { %v1522_v30 = vmul.f32 %v5007_v12, %v1521_v24  ;;  %4502 = vmatmul.msk.f32.vlgmr.msra.gmra.mxu1 %vm764_vm8, %v1518_v25 }
 0x433   : > { %v1523_v35 = vadd.f32 %v5007_v12, %v1522_v30 }
 0x434   : > { %v5009_v38 = vpop.eup %5008 }
 0x435   : > { %v1527_v22 = vsel %vm1526_vm4, %v5007_v12, %v1523_v35  ;;  %v1490_v53 = vmul.f32 %v5009_v38, %v1347_v1  ;;  %vm1495_vm6 = vweird.f32 %v5009_v38 }
 0x436   : > { %v1532_v40 = vsel %vm1529_vm5, %v1531_v4, %v1527_v22  ;;  %vm1496_vm9 = vmor %vm1494_vm7, %vm1495_vm6 }
 0x437   : > { %v1491_v9 = vsub.f32 1.0, %v1490_v53  ;;  %v1533_v54 = vmul.f32 %v5871_v57, %v1532_v40 }
 0x439   : > { %v1492_v41 = vmul.f32 %v5009_v38, %v1491_v9  ;;  %4503 = vmatmul.msk.f32.vlgmr.msrb.gmra.mxu2 %vm764_vm8, %v1533_v54  ;;  %4506 = vmatmul.msk.f32.vlgmr.msrb.gmra.mxu1 %vm764_vm8, %v1578_v62  ;;  %v1560_v62 = vand.u32 2147483648, %v5940_v60 }
 0x43a   : > { %2038 = vrot.lane.b32.xlu2 %v5782_v36, %s5336_s29 }
 0x43b   : > { %v1493_v39 = vadd.f32 %v5009_v38, %v1492_v41 }
 0x43d   : > { %v1497_v44 = vsel %vm1496_vm9, %v5009_v38, %v1493_v39 }
 0x43e   : > { %v1502_v57 = vsel %vm1499_vm10, %v1501_v43, %v1497_v44  ;;  %1976 = vrot.lane.b32.xlu0 %v5782_v36, %s5337_s24  ;;  %vm1554_vm10 = vweird.f32 %v5940_v60 }
 0x43f   : > { %v1503_v27 = vmul.f32 %v5875_v59, %v1502_v57 }
 0x441   : > { %4501 = vmatmul.msk.f32.vlgmr.msra.gmra.mxu0 %vm764_vm8, %v1503_v27  ;;  %v1561_v27 = vor.u32 1.1754944e-38, %v1560_v62 }
 0x457   : > { %v1365_v47 = vpop.xlane.xlu0 %1364 }
 0x458   : > { %v1590_v10 = vand.u32 2147483648, %v1365_v47  ;;  %vm1584_vm0 = vweird.f32 %v1365_v47  ;;  %v1588_v15 = vand.u32 2147483647, %v1365_v47 }
 0x45a   : > { %v1591_v1 = vor.u32 1.1754944e-38, %v1590_v10  ;;  %vm1589_vm3 = vcmp.eq.f32.partialorder %v1588_v15, 8.507059e+37  ;;  %v4801_v10 = vld [vmem:[%s5532_s9 + $0x20] sm:$0xff] }
 0x45f   : > { %v1344_v49 = vpop.xlane.xlu0 %1343 }
 0x460   : > { %5010 = vrcp.f32 %v1344_v49  ;;  %v1485_v46 = vand.u32 2147483648, %v1344_v49  ;;  %v1483_v52 = vand.u32 2147483647, %v1344_v49  ;;  %vm1479_vm12 = vweird.f32 %v1344_v49 }
 0x461   : > { %5012 = vrcp.f32 %v1365_v47 }
 0x462   : > { %v1486_v48 = vor.u32 1.1754944e-38, %v1485_v46  ;;  %vm1484_vm14 = vcmp.eq.f32.partialorder %v1483_v52, 8.507059e+37  ;;  %5014 = vrcp.f32 %v5940_v60 }
 0x466   : > { %v5011_v29 = vpop.eup %5010 }
 0x467   : > { %v1475_v19 = vmul.f32 %v5011_v29, %v1344_v49  ;;  %vm1480_vm11 = vweird.f32 %v5011_v29  ;;  %v5013_v61 = vpop.eup %5012 }
 0x468   : > { %vm1481_vm13 = vmor %vm1479_vm12, %vm1480_vm11  ;;  %v1580_v2 = vmul.f32 %v5013_v61, %v1365_v47  ;;  %vm1585_vm15 = vweird.f32 %v5013_v61  ;;  %v5015_v17 = vpop.eup %5014 }
 0x469   : > { %v1476_v51 = vsub.f32 1.0, %v1475_v19  ;;  %vm1586_vm2 = vmor %vm1584_vm0, %vm1585_vm15  ;;  %v1550_v34 = vmul.f32 %v5015_v17, %v5940_v60  ;;  %vm1555_vm9 = vweird.f32 %v5015_v17 }
 0x46a   : > { %vm1556_vm11 = vmor %vm1554_vm10, %vm1555_vm9  ;;  %vm6652_vm9 = vcmask 523712  }
 0x46b   : > { %v1477_v11 = vmul.f32 %v5011_v29, %v1476_v51  ;;  %v1551_v30 = vsub.f32 1.0, %v1550_v34 }
 0x46d   : > { %v1478_v56 = vadd.f32 %v5011_v29, %v1477_v11  ;;  %v1753_v55 = vpop.f32.mrf.mxu0  ;;  %v1552_v28 = vmul.f32 %v5015_v17, %v1551_v30 }
 0x46e   : > { %1757 = vrot.lane.b32.xlu0 %v1753_v55, %s5339_s27 }
 0x46f   : > { %v1482_v36 = vsel %vm1481_vm13, %v5011_v29, %v1478_v56 }
 0x470   : > { %v1487_v59 = vsel %vm1484_vm14, %v1486_v48, %v1482_v36  ;;  %vm1559_vm14 = vcmp.eq.f32.partialorder %v1558_v42, 8.507059e+37 }
 0x471   : > { %v1488_v50 = vmul.f32 %v5897_v21, %v1487_v59  ;;  %v1581_v21 = vsub.f32 1.0, %v1580_v2 }
 0x472   : > { %v2070_v3 = vpop.permute.xlu0 %2069 }
 0x473   : > { %4500 = vmatmul.msk.f32.vlgmr.msrb.gmra.mxu3 %vm764_vm8, %v1488_v50  ;;  %v1582_v7 = vmul.f32 %v5013_v61, %v1581_v21 }
 0x474   : > { %2090 = vmatpush.msrb.mxu3 %v2070_v3 }
 0x475   : > { %v1583_v8 = vadd.f32 %v5013_v61, %v1582_v7 }
 0x476   : > { %v1657_v63 = vpop.f32.mrf.mxu1 }
 0x477   : > { %1661 = vrot.lane.b32.xlu0 %v1657_v63, %s5340_s0  ;;  %v1587_v18 = vsel %vm1586_vm2, %v5013_v61, %v1583_v8  ;;  %vm1664_vm2 = vcmask 130112   ;;  %v4803_v61 = vld [vmem:[%s5532_s9 + $0x30] sm:$0xff]  ;;  %v4802_v8 = vld [vmem:[%s5532_s9 + $0x28] sm:$0xff] }
 0x478   : > { %v1592_v45 = vsel %vm1589_vm3, %v1591_v1, %v1587_v18  ;;  %vm1696_vm3 = vcmask 195712  }
 0x479   : > { %v1593_v23 = vmul.f32 %v5889_v14, %v1592_v45  ;;  %v1553_v14 = vadd.f32 %v5015_v17, %v1552_v28 }
 0x47b   : > { %v1557_v57 = vsel %vm1556_vm11, %v5015_v17, %v1553_v14  ;;  %v6033_v14 = vld [vmem:[#allocation7] sm:$0xff] }
 0x47c   : > { %v1562_v29 = vsel %vm1559_vm14, %v1561_v27, %v1557_v57 }
 0x47d   : > { %v1563_v11 = vmul.f32 %v5846_v33, %v1562_v29  ;;  %v4807_v29 = vld [vmem:[%s5532_s9 + $0x50] sm:$0xff] }
 0x47e   : > { %v1785_v58 = vpop.f32.mrf.mxu1 }
 0x47f   : > { %1789 = vrot.lane.b32.xlu2 %v1785_v58, %s5341_s2  ;;  %v4804_v58 = vld [vmem:[%s5532_s9 + $0x38] sm:$0xff] }
 0x484   : > { %v1689_v0 = vpop.f32.mrf.mxu2 }
 0x487   : > { %1693 = vrot.lane.b32.xlu2 %v1689_v0, %s5342_s25 }
 0x48b   : > { %v1721_v5 = vpop.f32.mrf.mxu3 }
 0x48c   : > { %1725 = vrot.lane.b32.xlu1 %v1721_v5, %s5343_s28  ;;  %v1817_v12 = vpop.f32.mrf.mxu2 }
 0x494   : > { %1821 = vrot.lane.b32.xlu1 %v1817_v12, %s5344_s22 }
 0x495   : > { %v1356_v16 = vpop.xlane.xlu2 %1355 }
 0x496   : > { %5016 = vrcp.f32 %v1356_v16  ;;  %v1545_v32 = vand.u32 2147483648, %v1356_v16  ;;  %v1543_v38 = vand.u32 2147483647, %v1356_v16  ;;  %vm1539_vm5 = vweird.f32 %v1356_v16 }
 0x498   : > { %v1546_v53 = vor.u32 1.1754944e-38, %v1545_v32  ;;  %vm1544_vm7 = vcmp.eq.f32.partialorder %v1543_v38, 8.507059e+37  ;;  %v5110_v38 = vld [vmem:[#allocation2 + $0x8] sm:$0xff] }
 0x49c   : > { %v5017_v13 = vpop.eup %5016 }
 0x49d   : > { %v1535_v24 = vmul.f32 %v5017_v13, %v1356_v16  ;;  %v2039_v25 = vpop.permute.xlu2 %2038  ;;  %v1368_v26 = vpop.xlane.xlu0 %1367  ;;  %vm1540_vm4 = vweird.f32 %v5017_v13 }
 0x49e   : > { %5018 = vrcp.f32 %v1368_v26  ;;  %2059 = vmatpush.msra.mxu2 %v2039_v25  ;;  %vm1541_vm6 = vmor %vm1539_vm5, %vm1540_vm4  ;;  %v1605_v39 = vand.u32 2147483648, %v1368_v26  ;;  %v1603_v44 = vand.u32 2147483647, %v1368_v26  ;;  %vm1599_vm13 = vweird.f32 %v1368_v26 }
 0x49f   : > { %v1536_v31 = vsub.f32 1.0, %v1535_v24  ;;  %4507 = vmatmul.msk.f32.vlgmr.msra.gmra.mxu2 %vm764_vm8, %v1593_v23  ;;  %vm1728_vm4 = vcmask 261312   ;;  %vm6655_vm5 = vcmask 326912   ;;  %v5109_v23 = vld [vmem:[#allocation2] sm:$0xff] }
 0x4a0   : > { %v1606_v49 = vor.u32 1.1754944e-38, %v1605_v39  ;;  %vm1604_vm0 = vcmp.eq.f32.partialorder %v1603_v44, 8.507059e+37  ;;  %v6039_v39 = vld [vmem:[#allocation7 + $0x8] sm:$0xff] }
 0x4a1   : > { %v1537_v35 = vmul.f32 %v5017_v13, %v1536_v31 }
 0x4a3   : > { %v1538_v4 = vadd.f32 %v5017_v13, %v1537_v35 }
 0x4a4   : > { %v5019_v22 = vpop.eup %5018 }
 0x4a5   : > { %v1542_v40 = vsel %vm1541_vm6, %v5017_v13, %v1538_v4  ;;  %v1595_v9 = vmul.f32 %v5019_v22, %v1368_v26  ;;  %vm1600_vm12 = vweird.f32 %v5019_v22  ;;  %vm6654_vm6 = vcmask 392512   ;;  %v6018_v13 = vld [vmem:[%s5521_s23 + $0x8] sm:$0xff] }
 0x4a6   : > { %v1547_v54 = vsel %vm1544_vm7, %v1546_v53, %v1542_v40  ;;  %vm1601_vm15 = vmor %vm1599_vm13, %vm1600_vm12  ;;  %vm6653_vm7 = vcmask 458112   ;;  %v2102_v24 = vperm.slane %v6018_v13, 1  ;;  %v4811_v53 = vld [vmem:[%s5549_s3 + $0x50] sm:$0xff]  ;;  %v4810_v40 = vld [vmem:[%s5549_s3 + $0x48] sm:$0xff] }
 0x4a7   : > { %v1596_v6 = vsub.f32 1.0, %v1595_v9  ;;  %v1548_v41 = vmul.f32 %v5946_v37, %v1547_v54  ;;  %v4809_v9 = vld [vmem:[%s5549_s3 + $0x40] sm:$0xff] }
 0x4a9   : > { %v1597_v43 = vmul.f32 %v5019_v22, %v1596_v6  ;;  %4504 = vmatmul.msk.f32.vlgmr.msra.gmra.mxu3 %vm764_vm8, %v1548_v41 }
 0x4ab   : > { %v1598_v47 = vadd.f32 %v5019_v22, %v1597_v43 }
 0x4ad   : > { %v1602_v37 = vsel %vm1601_vm15, %v5019_v22, %v1598_v47  ;;  %v4812_v22 = vld [vmem:[%s5549_s3 + $0x58] sm:$0xff] }
 0x4ae   : > { %v1607_v19 = vsel %vm1604_vm0, %v1606_v49, %v1602_v37  ;;  %v1906_v51 = vpop.f32.mrf.mxu1  ;;  %2317 = vmatpush.bf16.msrb.mxu2 %v4812_v22  ;;  %v4808_v49 = vld [vmem:[%s5532_s9 + $0x58] sm:$0xff]  ;;  %v4806_v37 = vld [vmem:[%s5532_s9 + $0x48] sm:$0xff] }
 0x4af   : > { %1910 = vrot.lane.b32.xlu2 %v1906_v51, %s5340_s0  ;;  %v1608_v60 = vmul.f32 %v5950_v20, %v1607_v19  ;;  %2271 = vmatpush.bf16.msra.mxu1 %v4808_v49  ;;  %v4805_v19 = vld [vmem:[%s5532_s9 + $0x40] sm:$0xff]  ;;  %v2282_v51 = vperm.slane %v6018_v13, 3 }
 0x4b0   : > { %v1977_v46 = vpop.permute.xlu0 %1976 }
 0x4b1   : > { %1997 = vmatpush.msrb.mxu0 %v1977_v46  ;;  %4508 = vmatmul.msk.f32.vlgmr.msrb.gmra.mxu3 %vm764_vm8, %v1608_v60 }
 0x4b2   : > { %4505 = vmatmul.msk.f32.vlgmr.msrb.gmra.mxu0 %vm764_vm8, %v1563_v11  ;;  %2318 = vmatpush.bf16.msrb.mxu2 %v4811_v53  ;;  %v2236_v53 = vperm.slane %v6018_v13, 2 }
 0x4b3   : > { %2137 = vmatpush.bf16.msra.mxu0 %v4804_v58  ;;  %2272 = vmatpush.bf16.msra.mxu1 %v4807_v29 }
 0x4b6   : > { %v2030_v48 = vpop.f32.mrf.mxu1  ;;  %2319 = vmatpush.bf16.msrb.mxu2 %v4810_v40 }
 0x4b7   : > { %2138 = vmatpush.bf16.msra.mxu0 %v4803_v61  ;;  %2273 = vmatpush.bf16.msra.mxu1 %v4806_v37 }
 0x4ba   : > { %2320 = vmatpush.bf16.msrb.mxu2 %v4809_v9 }
 0x4bb   : > { %2139 = vmatpush.bf16.msra.mxu0 %v4802_v8  ;;  %2274 = vmatpush.bf16.msra.mxu1 %v4805_v19  ;;  %v4815_v8 = vld [vmem:[%s5549_s3 + $0x70] sm:$0xff] }
 0x4bc   : > { %v1937_v52 = vpop.f32.mrf.mxu2 }
 0x4bd   : > { %1941 = vrot.lane.b32.xlu1 %v1937_v52, %s5342_s25  ;;  %4593 = vmatmul.msk.f32.vlgmr.msrb.gmra.mxu2 %vm6651_vm1, %v6033_v14 }
 0x4be   : > { %v1878_v56 = vpop.f32.mrf.mxu0 }
 0x4bf   : > { %1881 = vst.msk [vmem:[#allocation3 + $0x8] sm:$0xff] %vm764_vm8, %v1878_v56  ;;  %2140 = vmatpush.bf16.msra.mxu0 %v4801_v10 }
 0x4c5   : > { %2034 = vrot.lane.b32.xlu1 %v2030_v48, %s5341_s2  ;;  %4594 = vmatmul.msk.f32.gmra.mxu2 %vm6651_vm1, %v6039_v39 }
 0x4d9   : > { %v1790_v55 = vpop.permute.xlu2 %1789 }
 0x4e0   : > { %v1758_v36 = vpop.permute.xlu0 %1757 }
 0x4e1   : > { %v1694_v33 = vpop.permute.xlu2 %1693 }
 0x4e9   : > { %v1662_v20 = vpop.permute.xlu0 %1661 }
 0x4ea   : > { %1665 = vst.msk [vmem:[#allocation3] sm:$0xff] %vm1664_vm2, %v1662_v20 }
 0x4eb   : > { %1697 = vst.msk [vmem:[#allocation3] sm:$0xff] %vm1696_vm3, %v1694_v33 }
 0x4f6   : > { %v1849_v59 = vpop.f32.mrf.mxu3 }
 0x4f7   : > { %1853 = vrot.lane.b32.xlu0 %v1849_v59, %s5345_s16 }
 0x4fe   : > { %v1726_v50 = vpop.permute.xlu1 %1725 }
 0x4ff   : > { %1729 = vst.msk [vmem:[#allocation3] sm:$0xff] %vm1728_vm4, %v1726_v50  ;;  %v5111_v50 = vld [vmem:[%s5521_s23] sm:$0xff] }
 0x500   : > { %1761 = vst.msk [vmem:[#allocation3] sm:$0xff] %vm6655_vm5, %v1758_v36  ;;  %v2197_v61 = vperm.slane %v5111_v50, 3 }
 0x501   : > { %1793 = vst.msk [vmem:[#allocation3] sm:$0xff] %vm6654_vm6, %v1790_v55 }
 0x506   : > { %v1822_v3 = vpop.permute.xlu1 %1821 }
 0x507   : > { %1825 = vst.msk [vmem:[#allocation3] sm:$0xff] %vm6653_vm7, %v1822_v3  ;;  %v2194_v3 = vperm.slane %v5111_v50, 2 }
 0x509   : > { %v1911_v63 = vpop.permute.xlu2 %1910 }
 0x50a   : > { %1913 = vst.msk [vmem:[#allocation3 + $0x8] sm:$0xff] %vm1664_vm2, %v1911_v63 }
 0x522   : > { %v2061_v5 = vpop.f32.mrf.mxu2 }
 0x52c   : > { %v1968_v0 = vpop.f32.mrf.mxu3 }
 0x52d   : > { %1972 = vrot.lane.b32.xlu0 %v1968_v0, %s5343_s28 }
 0x52f   : > { %v1942_v2 = vpop.permute.xlu1 %1941  ;;  %v1999_v21 = vpop.f32.mrf.mxu0 }
 0x530   : > { %1944 = vst.msk [vmem:[#allocation3 + $0x8] sm:$0xff] %vm1696_vm3, %v1942_v2  ;;  %2003 = vrot.lane.b32.xlu2 %v1999_v21, %s5339_s27  ;;  %v4816_v21 = vld [vmem:[%s5549_s3 + $0x78] sm:$0xff] }
 0x531   : > { %2357 = vmatpush.bf16.msra.mxu3 %v4816_v21 }
 0x534   : > { %v2092_v7 = vpop.f32.mrf.mxu3 }
 0x535   : > { %2065 = vrot.lane.b32.xlu0 %v2061_v5, %s5344_s22  ;;  %2358 = vmatpush.bf16.msra.mxu3 %v4815_v8 }
 0x537   : > { %v2035_v18 = vpop.permute.xlu1 %2034 }
 0x538   : > { %2096 = vrot.lane.b32.xlu2 %v2092_v7, %s5345_s16 }
 0x540   : > { %v2322_v60 = vpop.f32.mrf.mxu2 }
 0x541   : > { %v2323_v46 = vadd.f32 %v2322_v60, %v2282_v51 }
 0x543   : > { %4613 = vmatpush.xpose.msk.msrb.mxu0 %vm764_vm8, %v2323_v46 }
 0x548   : > { %v2325_v5 = vpop.f32.mrf.mxu2 }
 0x549   : > { %v6064_v7 = vadd.f32 %v2325_v5, %v2282_v51 }
 0x569   : > { %v1854_v12 = vpop.permute.xlu0 %1853 }
 0x56a   : > { %1857 = vst.msk [vmem:[#allocation3] sm:$0xff] %vm6652_vm9, %v1854_v12 }
 0x571   : > { %v2100_v15 = vld [vmem:[#allocation3] sm:$0xff] }
 0x572   : > { %4525 = vmatmul.msk.f32.vlgmr.msra.gmra.mxu0 %vm6651_vm1, %v2100_v15 }
 0x58a   : > { %v2004_v16 = vpop.permute.xlu2 %2003 }
 0x592   : > { %v2097_v34 = vpop.permute.xlu2 %2096 }
 0x59f   : > { %v1973_v17 = vpop.permute.xlu0 %1972 }
 0x5a0   : > { %1975 = vst.msk [vmem:[#allocation3 + $0x8] sm:$0xff] %vm1728_vm4, %v1973_v17  ;;  %v4813_v17 = vld [vmem:[%s5549_s3 + $0x60] sm:$0xff] }
 0x5a1   : > { %2006 = vst.msk [vmem:[#allocation3 + $0x8] sm:$0xff] %vm6655_vm5, %v2004_v16  ;;  %v4814_v16 = vld [vmem:[%s5549_s3 + $0x68] sm:$0xff] }
 0x5a2   : > { %2037 = vst.msk [vmem:[#allocation3 + $0x8] sm:$0xff] %vm6654_vm6, %v2035_v18  ;;  %2359 = vmatpush.bf16.msra.mxu3 %v4814_v16 }
 0x5a6   : > { %2360 = vmatpush.bf16.msra.mxu3 %v4813_v17 }
 0x5a7   : > { %v2066_v1 = vpop.permute.xlu0 %2065 }
 0x5a8   : > { %2068 = vst.msk [vmem:[#allocation3 + $0x8] sm:$0xff] %vm6653_vm7, %v2066_v1 }
 0x5a9   : > { %2099 = vst.msk [vmem:[#allocation3 + $0x8] sm:$0xff] %vm6652_vm9, %v2097_v34  ;;  %4611 = vmatmul.msk.f32.vlgmr.msra.gmra.mxu3 %vm6651_vm1, %v6033_v14 }
 0x5b0   : > { %v2101_v45 = vld [vmem:[#allocation3 + $0x8] sm:$0xff] }
 0x5b1   : > { %4526 = vmatmul.msk.f32.gmra.mxu0 %vm6651_vm1, %v2101_v45  ;;  %4612 = vmatmul.msk.f32.gmra.mxu3 %vm6651_vm1, %v6039_v39  ;;  %v2328_v39 = vperm.slane %v6018_v13, 4 }
 0x5ef   : > { %v2142_v25 = vpop.f32.mrf.mxu0 }
 0x5f0   : > { %v2143_v26 = vadd.f32 %v2142_v25, %v2102_v24 }
 0x5f2   : > { %v6021_v30 = vadd.f32 %v5109_v23, %v2143_v26 }
 0x5f4   : > { %v2150_v31 = vsel %vm6651_vm1, %v6021_v30, 0.0 }
 0x5f5   : > { %2151 = vadd.xlane.f32.xlu1 %v2150_v31 }
 0x62e   : > { %v2145_v32 = vpop.f32.mrf.mxu0 }
 0x62f   : > { %v2146_v35 = vadd.f32 %v2145_v32, %v2102_v24 }
 0x631   : > { %v6025_v28 = vadd.f32 %v5110_v38, %v2146_v35 }
 0x633   : > { %v2153_v4 = vsel %vm6651_vm1, %v6025_v28, 0.0 }
 0x634   : > { %2154 = vadd.xlane.f32.xlu0 %v2153_v4 }
 0x648   : > { %2452 = vrot.lane.b32.xlu0 %v2323_v46, %s5335_s19 }
 0x650   : > { %2564 = vrot.lane.b32.xlu0 %v2323_v46, %s5332_s11 }
 0x658   : > { %2674 = vrot.lane.b32.xlu0 %v6064_v7, %s5335_s19 }
 0x668   : > { %v2152_v54 = vpop.xlane.xlu1 %2151 }
 0x669   : > { %v2156_v62 = vmul.f32 0.015625, %v2152_v54 }
 0x66b   : > { %v2158_v6 = vsub.f32 %v6021_v30, %v2156_v62 }
 0x66d   : > { %v2160_v41 = vmul.f32 %v2158_v6, %v2158_v6 }
 0x66f   : > { %v2162_v42 = vsel %vm6651_vm1, %v2160_v41, 0.0 }
 0x670   : > { %2163 = vadd.xlane.f32.xlu2 %v2162_v42 }
 0x688   : > { %2424 = vrot.lane.b32.xlu2 %v2323_v46, %s5334_s17 }
 0x690   : > { %2536 = vrot.lane.b32.xlu2 %v2323_v46, %s5336_s29 }
 0x698   : > { %2646 = vrot.lane.b32.xlu2 %v6064_v7, %s5334_s17 }
 0x6a0   : > { %2508 = vrot.lane.b32.xlu2 %v2323_v46, %s5338_s18 }
 0x6a7   : > { %v2155_v43 = vpop.xlane.xlu0 %2154 }
 0x6a8   : > { %v2157_v44 = vmul.f32 0.015625, %v2155_v43  ;;  %2786 = vrot.lane.b32.xlu2 %v6064_v7, %s5332_s11  ;;  %v2362_v43 = vpop.f32.mrf.mxu3 }
 0x6aa   : > { %v6044_v57 = vsub.f32 %v6025_v28, %v2157_v44  ;;  %v2363_v44 = vadd.f32 %v2362_v43, %v2328_v39 }
 0x6ac   : > { %v2161_v27 = vmul.f32 %v6044_v57, %v6044_v57 }
 0x6ae   : > { %v2165_v47 = vsel %vm6651_vm1, %v2161_v27, 0.0 }
 0x6af   : > { %2166 = vadd.xlane.f32.xlu1 %v2165_v47 }
 0x6b0   : > { %v2365_v47 = vpop.f32.mrf.mxu3 }
 0x6b1   : > { %v6124_v37 = vadd.f32 %v2365_v47, %v2328_v39 }
 0x6ba   : > { %v2453_v62 = vpop.permute.xlu0 %2452 }
 0x6bb   : > { %4619 = vmatpush.xpose.msk.msrb.mxu3 %vm764_vm8, %v2453_v62 }
 0x6c2   : > { %v2565_v42 = vpop.permute.xlu0 %2564 }
 0x6c3   : > { %4627 = vmatpush.xpose.msk.msra.mxu3 %vm764_vm8, %v2565_v42 }
 0x6c8   : > { %2396 = vrot.lane.b32.xlu1 %v2323_v46, %s5333_s20 }
 0x6ca   : > { %v2675_v29 = vpop.permute.xlu0 %2674 }
 0x6d0   : > { %2480 = vrot.lane.b32.xlu1 %v2323_v46, %s5337_s24 }
 0x6d8   : > { %2758 = vrot.lane.b32.xlu1 %v6064_v7, %s5336_s29 }
 0x6e3   : > { %v2164_v11 = vpop.xlane.xlu2 %2163 }
 0x6e4   : > { %v2168_v52 = vmul.f32 0.015625, %v2164_v11 }
 0x6e6   : > { %v2170_v56 = vadd.f32 1e-05, %v2168_v52 }
 0x6e8   : > { %5020 = vrsqrt.f32 %v2170_v56  ;;  %vm2178_vm11 = vweird.f32 %v2170_v56 }
 0x6eb   : > { %v2425_v4 = vpop.permute.xlu2 %2424 }
 0x6ec   : > { %4617 = vmatpush.xpose.msk.msra.mxu2 %vm764_vm8, %v2425_v4 }
 0x6ee   : > { %v5021_v48 = vpop.eup %5020 }
 0x6ef   : > { %v2173_v55 = vmul.f32 %v5021_v48, %v2170_v56  ;;  %vm2179_vm10 = vweird.f32 %v5021_v48 }
 0x6f0   : > { %vm2180_vm12 = vmor %vm2178_vm11, %vm2179_vm10 }
 0x6f1   : > { %v2174_v36 = vmul.f32 %v5021_v48, %v2173_v55 }
 0x6f3   : > { %v2175_v20 = vmul.f32 0.5, %v2174_v36  ;;  %v2537_v22 = vpop.permute.xlu2 %2536 }
 0x6f4   : > { %4625 = vmatpush.xpose.msk.msrb.mxu2 %vm764_vm8, %v2537_v22 }
 0x6f5   : > { %v2176_v33 = vsub.f32 1.5, %v2175_v20 }
 0x6f7   : > { %v2177_v59 = vmul.f32 %v5021_v48, %v2176_v33 }
 0x6f9   : > { %v2181_v63 = vsel %vm2180_vm12, %v5021_v48, %v2177_v59 }
 0x6fa   : > { %v2192_v58 = vmul.f32 %v2181_v63, %v2158_v6 }
 0x6fb   : > { %v2647_v14 = vpop.permute.xlu2 %2646 }
 0x6fc   : > { %v2195_v0 = vmul.f32 %v2194_v3, %v2192_v58 }
 0x6fe   : > { %v2198_v2 = vadd.f32 %v2197_v61, %v2195_v0 }
 0x700   : > { %4575 = vmatmul.msk.f32.vlgmr.msra.gmra.mxu1 %vm6651_vm1, %v2198_v2 }
 0x703   : > { %v2509_v54 = vpop.permute.xlu2 %2508 }
 0x722   : > { %v2167_v10 = vpop.xlane.xlu1 %2166 }
 0x723   : > { %v2169_v12 = vmul.f32 0.015625, %v2167_v10 }
 0x725   : > { %v2171_v15 = vadd.f32 1e-05, %v2169_v12 }
 0x727   : > { %5022 = vrsqrt.f32 %v2171_v15  ;;  %vm2188_vm14 = vweird.f32 %v2171_v15 }
 0x72d   : > { %v5023_v18 = vpop.eup %5022 }
 0x72e   : > { %v2183_v1 = vmul.f32 %v5023_v18, %v2171_v15  ;;  %vm2189_vm13 = vweird.f32 %v5023_v18 }
 0x72f   : > { %vm2190_vm15 = vmor %vm2188_vm14, %vm2189_vm13 }
 0x730   : > { %v2184_v34 = vmul.f32 %v5023_v18, %v2183_v1 }
 0x732   : > { %v2185_v45 = vmul.f32 0.5, %v2184_v34 }
 0x734   : > { %v2186_v24 = vsub.f32 1.5, %v2185_v45 }
 0x736   : > { %v2187_v25 = vmul.f32 %v5023_v18, %v2186_v24 }
 0x738   : > { %v2191_v26 = vsel %vm2190_vm15, %v5023_v18, %v2187_v25 }
 0x739   : > { %v2193_v23 = vmul.f32 %v2191_v26, %v6044_v57  ;;  %v2787_v57 = vpop.permute.xlu2 %2786 }
 0x73a   : > { %v2397_v35 = vpop.permute.xlu1 %2396 }
 0x73b   : > { %v2196_v31 = vmul.f32 %v2194_v3, %v2193_v23  ;;  %4615 = vmatpush.xpose.msk.msrb.mxu1 %vm764_vm8, %v2397_v35 }
 0x73d   : > { %v2199_v32 = vadd.f32 %v2197_v61, %v2196_v31 }
 0x73f   : > { %4576 = vmatmul.msk.f32.gmra.mxu1 %vm6651_vm1, %v2199_v32 }
 0x740   : > { %4623 = vmatpush.xpose.msk.msra.mxu1 %vm764_vm8, %v2509_v54 }
 0x742   : > { %v2481_v38 = vpop.permute.xlu1 %2480 }
 0x743   : > { %4621 = vmatpush.xpose.msk.msra.mxu0 %vm764_vm8, %v2481_v38 }
 0x74a   : > { %v2759_v49 = vpop.permute.xlu1 %2758 }
 0x77d   : > { %v2276_v40 = vpop.f32.mrf.mxu1 }
 0x77e   : > { %v2277_v9 = vadd.f32 %v2276_v40, %v2236_v53 }
 0x780   : > { %2534 = vrot.lane.b32.xlu2 %v2277_v9, %s5336_s29  ;;  %4614 = vmatmul.msk.f32.vlgmr.msrb.gmra.mxu0 %vm764_vm8, %v2277_v9 }
 0x781   : > { %2450 = vrot.lane.b32.xlu0 %v2277_v9, %s5335_s19  ;;  %2422 = vrot.lane.b32.xlu1 %v2277_v9, %s5334_s17 }
 0x782   : > { %4629 = vmatpush.xpose.msk.msrb.mxu0 %vm764_vm8, %v6064_v7 }
 0x788   : > { %2478 = vrot.lane.b32.xlu2 %v2277_v9, %s5337_s24 }
 0x789   : > { %2562 = vrot.lane.b32.xlu0 %v2277_v9, %s5332_s11  ;;  %2394 = vrot.lane.b32.xlu1 %v2277_v9, %s5333_s20 }
 0x791   : > { %2506 = vrot.lane.b32.xlu0 %v2277_v9, %s5338_s18 }
 0x7bc   : > { %v2279_v6 = vpop.f32.mrf.mxu1 }
 0x7bd   : > { %v2280_v41 = vadd.f32 %v2279_v6, %v2236_v53 }
 0x7bf   : > { %2784 = vrot.lane.b32.xlu2 %v2280_v41, %s5332_s11  ;;  %2672 = vrot.lane.b32.xlu1 %v2280_v41, %s5335_s19 }
 0x7c0   : > { %2644 = vrot.lane.b32.xlu0 %v2280_v41, %s5334_s17 }
 0x7c7   : > { %2730 = vrot.lane.b32.xlu2 %v6064_v7, %s5338_s18  ;;  %2756 = vrot.lane.b32.xlu1 %v2280_v41, %s5336_s29 }
 0x7c8   : > { %2618 = vrot.lane.b32.xlu0 %v6064_v7, %s5333_s20 }
 0x7cf   : > { %2702 = vrot.lane.b32.xlu1 %v6064_v7, %s5337_s24  ;;  %3221 = vrot.lane.b32.xlu2 %v2363_v44, %s5333_s20 }
 0x7d0   : > { %2616 = vrot.lane.b32.xlu0 %v2280_v41, %s5333_s20 }
 0x7d7   : > { %2728 = vrot.lane.b32.xlu1 %v2280_v41, %s5338_s18  ;;  %3407 = vrot.lane.b32.xlu2 %v2363_v44, %s5332_s11 }
 0x7d8   : > { %2700 = vrot.lane.b32.xlu0 %v2280_v41, %s5337_s24 }
 0x7da   : > { %v2535_v27 = vpop.permute.xlu2 %2534 }
 0x7df   : > { %3252 = vrot.lane.b32.xlu1 %v2363_v44, %s5334_s17 }
 0x7e0   : > { %3283 = vrot.lane.b32.xlu0 %v2363_v44, %s5335_s19 }
 0x7e2   : > { %v2479_v13 = vpop.permute.xlu2 %2478 }
 0x7e3   : > { %4622 = vmatmul.msk.f32.vlgmr.msra.gmra.mxu0 %vm764_vm8, %v2479_v13 }
 0x7e7   : > { %3314 = vrot.lane.b32.xlu1 %v2363_v44, %s5337_s24 }
 0x7e8   : > { %3376 = vrot.lane.b32.xlu0 %v2363_v44, %s5336_s29 }
 0x7eb   : > { %4630 = vmatmul.msk.f32.vlgmr.msrb.gmra.mxu0 %vm764_vm8, %v2280_v41 }
 0x7ef   : > { %3494 = vrot.lane.b32.xlu1 %v6124_v37, %s5334_s17 }
 0x7f0   : > { %3345 = vrot.lane.b32.xlu0 %v2363_v44, %s5338_s18 }
 0x7f3   : > { %v2423_v19 = vpop.permute.xlu1 %2422  ;;  %v2451_v51 = vpop.permute.xlu0 %2450 }
 0x7f4   : > { %4618 = vmatmul.msk.f32.vlgmr.msra.gmra.mxu2 %vm764_vm8, %v2423_v19  ;;  %4620 = vmatmul.msk.f32.vlgmr.msrb.gmra.mxu3 %vm764_vm8, %v2451_v51 }
 0x7f5   : > { %4633 = vmatpush.xpose.msk.msra.mxu2 %vm764_vm8, %v2647_v14  ;;  %4635 = vmatpush.xpose.msk.msrb.mxu3 %vm764_vm8, %v2675_v29 }
 0x7f8   : > { %3525 = vrot.lane.b32.xlu0 %v6124_v37, %s5335_s19 }
 0x7fb   : > { %v2395_v60 = vpop.permute.xlu1 %2394  ;;  %v2563_v46 = vpop.permute.xlu0 %2562 }
 0x7fc   : > { %4616 = vmatmul.msk.f32.vlgmr.msrb.gmra.mxu1 %vm764_vm8, %v2395_v60  ;;  %4626 = vmatmul.msk.f32.vlgmr.msrb.gmra.mxu2 %vm764_vm8, %v2535_v27 }
 0x7fd   : > { %4628 = vmatmul.msk.f32.vlgmr.msra.gmra.mxu3 %vm764_vm8, %v2563_v46  ;;  %4641 = vmatpush.xpose.msk.msrb.mxu2 %vm764_vm8, %v2759_v49  ;;  %v6141_v52 = vpop.f32.mrf.mxu0 }
 0x7fe   : > { %4643 = vmatpush.xpose.msk.msra.mxu3 %vm764_vm8, %v2787_v57  ;;  %v2812_v56 = vsel %vm764_vm8, %v6141_v52, -inf }
 0x803   : > { %v2507_v11 = vpop.permute.xlu0 %2506 }
 0x804   : > { %4624 = vmatmul.msk.f32.vlgmr.msra.gmra.mxu1 %vm764_vm8, %v2507_v11 }
 0x819   : > { %2813 = vmax.xlane.f32.xlu1 %v2812_v56  ;;  %v2785_v48 = vpop.permute.xlu2 %2784 }
 0x821   : > { %v2731_v59 = vpop.permute.xlu2 %2730 }
 0x829   : > { %v3222_v63 = vpop.permute.xlu2 %3221 }
 0x831   : > { %v2673_v55 = vpop.permute.xlu1 %2672  ;;  %v3408_v0 = vpop.permute.xlu2 %3407 }
 0x832   : > { %v2645_v36 = vpop.permute.xlu0 %2644  ;;  %4636 = vmatmul.msk.f32.vlgmr.msrb.gmra.mxu3 %vm764_vm8, %v2673_v55 }
 0x833   : > { %4634 = vmatmul.msk.f32.vlgmr.msra.gmra.mxu2 %vm764_vm8, %v2645_v36 }
 0x839   : > { %v2757_v20 = vpop.permute.xlu1 %2756 }
 0x83a   : > { %v2619_v33 = vpop.permute.xlu0 %2618  ;;  %4644 = vmatmul.msk.f32.vlgmr.msra.gmra.mxu3 %vm764_vm8, %v2785_v48 }
 0x83b   : > { %4631 = vmatpush.xpose.msk.msrb.mxu1 %vm764_vm8, %v2619_v33  ;;  %4642 = vmatmul.msk.f32.vlgmr.msrb.gmra.mxu2 %vm764_vm8, %v2757_v20 }
 0x83f   : > { %4639 = vmatpush.xpose.msk.msra.mxu1 %vm764_vm8, %v2731_v59 }
 0x841   : > { %v2703_v50 = vpop.permute.xlu1 %2702 }
 0x842   : > { %v2617_v3 = vpop.permute.xlu0 %2616  ;;  %4637 = vmatpush.xpose.msk.msra.mxu0 %vm764_vm8, %v2703_v50 }
 0x843   : > { %4632 = vmatmul.msk.f32.vlgmr.msrb.gmra.mxu1 %vm764_vm8, %v2617_v3 }
 0x844   : > { %3242 = vmatpush.msrb.mxu1 %v3222_v63 }
 0x846   : > { %3214 = vmatpush.msrb.mxu0 %v2363_v44 }
 0x849   : > { %v2729_v58 = vpop.permute.xlu1 %2728 }
 0x84a   : > { %v2701_v61 = vpop.permute.xlu0 %2700 }
 0x84b   : > { %4638 = vmatmul.msk.f32.vlgmr.msra.gmra.mxu0 %vm764_vm8, %v2701_v61  ;;  %4640 = vmatmul.msk.f32.vlgmr.msra.gmra.mxu1 %vm764_vm8, %v2729_v58 }
 0x851   : > { %v3253_v2 = vpop.permute.xlu1 %3252 }
 0x852   : > { %v3284_v21 = vpop.permute.xlu0 %3283  ;;  %3273 = vmatpush.msra.mxu2 %v3253_v2 }
 0x853   : > { %3304 = vmatpush.msrb.mxu3 %v3284_v21 }
 0x855   : > { %3428 = vmatpush.msra.mxu3 %v3408_v0 }
 0x859   : > { %v3315_v7 = vpop.permute.xlu1 %3314 }
 0x85a   : > { %v3377_v5 = vpop.permute.xlu0 %3376  ;;  %3335 = vmatpush.msra.mxu0 %v3315_v7 }
 0x85b   : > { %3397 = vmatpush.msrb.mxu2 %v3377_v5 }
 0x860   : > { %v6157_v17 = vpop.f32.mrf.mxu0 }
 0x861   : > { %v2824_v45 = vsel %vm764_vm8, %v6157_v17, -inf  ;;  %v6166_v25 = vpop.permute.xlu1 %3494 }
 0x862   : > { %v3346_v8 = vpop.permute.xlu0 %3345 }
 0x863   : > { %3366 = vmatpush.msra.mxu1 %v3346_v8 }
 0x868   : > { %v6170_v23 = vpop.f32.mrf.mxu0 }
 0x869   : > { %v2836_v32 = vsel %vm764_vm8, %v6170_v23, -inf }
 0x86a   : > { %v6213_v29 = vpop.permute.xlu0 %3525 }
 0x877   : > { %v2475_v10 = vpop.f32.mrf.mxu3  ;;  %v6168_v26 = vpop.f32.mrf.mxu2 }
 0x878   : > { %v2821_v12 = vsel %vm764_vm8, %v2475_v10, -inf  ;;  %v2818_v31 = vsel %vm764_vm8, %v6168_v26, -inf }
 0x879   : > { %v2419_v15 = vpop.f32.mrf.mxu1  ;;  %2822 = vmax.xlane.f32.xlu0 %v2821_v12 }
 0x87a   : > { %v2815_v16 = vsel %vm764_vm8, %v2419_v15, -inf }
 0x87b   : > { %2816 = vmax.xlane.f32.xlu2 %v2815_v16 }
 0x87f   : > { %v6177_v4 = vpop.f32.mrf.mxu2 }
 0x880   : > { %v6159_v18 = vpop.f32.mrf.mxu3  ;;  %v2830_v53 = vsel %vm764_vm8, %v6177_v4, -inf }
 0x881   : > { %v2833_v1 = vsel %vm764_vm8, %v6159_v18, -inf  ;;  %v2531_v34 = vpop.f32.mrf.mxu1 }
 0x882   : > { %2834 = vmax.xlane.f32.xlu1 %v2833_v1  ;;  %v2827_v24 = vsel %vm764_vm8, %v2531_v34, -inf }
 0x883   : > { %2825 = vmax.xlane.f32.xlu2 %v2824_v45  ;;  %2828 = vmax.xlane.f32.xlu0 %v2827_v24 }
 0x88b   : > { %2819 = vmax.xlane.f32.xlu2 %v2818_v31  ;;  %2837 = vmax.xlane.f32.xlu0 %v2836_v32 }
 0x88c   : > { %v2814_v35 = vpop.xlane.xlu1 %2813 }
 0x88d   : > { %v2860_v38 = vsub.f32 %v6141_v52, %v2814_v35 }
 0x88f   : > { %v2876_v22 = vmul.f32 1.442695, %v2860_v38 }
 0x891   : > { %5024 = vpow2.f32 %v2876_v22 }
 0x893   : > { %2831 = vmax.xlane.f32.xlu0 %v2830_v53 }
 0x897   : > { %v6181_v40 = vpop.eup %5024 }
 0x898   : > { %v2908_v9 = vsel %vm764_vm8, %v6181_v40, 0.0 }
 0x899   : > { %2909 = vadd.xlane.f32.xlu2 %v2908_v9 }
 0x8b5   : > { %v6185_v14 = vpop.f32.mrf.mxu3 }
 0x8b6   : > { %v2845_v54 = vsel %vm764_vm8, %v6185_v14, -inf  ;;  %v6197_v39 = vpop.f32.mrf.mxu2 }
 0x8b7   : > { %2846 = vmax.xlane.f32.xlu2 %v2845_v54  ;;  %v2842_v49 = vsel %vm764_vm8, %v6197_v39, -inf }
 0x8bd   : > { %v6189_v62 = vpop.f32.mrf.mxu3 }
 0x8be   : > { %v2857_v6 = vsel %vm764_vm8, %v6189_v62, -inf  ;;  %v6207_v13 = vpop.f32.mrf.mxu2 }
 0x8bf   : > { %2858 = vmax.xlane.f32.xlu0 %v2857_v6  ;;  %v2854_v47 = vsel %vm764_vm8, %v6207_v13, -inf }
 0x8c0   : > { %v6193_v41 = vpop.f32.mrf.mxu1 }
 0x8c1   : > { %v2839_v42 = vsel %vm764_vm8, %v6193_v41, -inf }
 0x8c2   : > { %2840 = vmax.xlane.f32.xlu1 %v2839_v42 }
 0x8c8   : > { %v6199_v43 = vpop.f32.mrf.mxu0  ;;  %v6201_v44 = vpop.f32.mrf.mxu1 }
 0x8c9   : > { %v2851_v57 = vsel %vm764_vm8, %v6201_v44, -inf  ;;  %v2848_v27 = vsel %vm764_vm8, %v6199_v43, -inf }
 0x8ca   : > { %2852 = vmax.xlane.f32.xlu2 %v2851_v57  ;;  %2849 = vmax.xlane.f32.xlu1 %v2848_v27 }
 0x8d2   : > { %2855 = vmax.xlane.f32.xlu2 %v2854_v47  ;;  %2843 = vmax.xlane.f32.xlu1 %v2842_v49 }
 0x8ec   : > { %v2823_v19 = vpop.xlane.xlu0 %2822 }
 0x8ed   : > { %v2863_v51 = vsub.f32 %v2475_v10, %v2823_v19 }
 0x8ee   : > { %v2817_v60 = vpop.xlane.xlu2 %2816 }
 0x8ef   : > { %v2882_v46 = vmul.f32 1.442695, %v2863_v51  ;;  %v2861_v11 = vsub.f32 %v2419_v15, %v2817_v60 }
 0x8f1   : > { %5026 = vpow2.f32 %v2882_v46  ;;  %v2878_v52 = vmul.f32 1.442695, %v2861_v11 }
 0x8f3   : > { %5028 = vpow2.f32 %v2878_v52 }
 0x8f5   : > { %v2835_v0 = vpop.xlane.xlu1 %2834 }
 0x8f6   : > { %v2826_v56 = vpop.xlane.xlu2 %2825  ;;  %v2829_v48 = vpop.xlane.xlu0 %2828  ;;  %v2867_v12 = vsub.f32 %v6159_v18, %v2835_v0 }
 0x8f7   : > { %v6215_v55 = vpop.eup %5026  ;;  %v2864_v36 = vsub.f32 %v6157_v17, %v2826_v56  ;;  %v2865_v20 = vsub.f32 %v2531_v34, %v2829_v48 }
 0x8f8   : > { %v2917_v33 = vsel %vm764_vm8, %v6215_v55, 0.0  ;;  %v2890_v17 = vmul.f32 1.442695, %v2867_v12 }
 0x8f9   : > { %v6220_v59 = vpop.eup %5028  ;;  %v2884_v50 = vmul.f32 1.442695, %v2864_v36  ;;  %v2886_v3 = vmul.f32 1.442695, %v2865_v20  ;;  %2918 = vadd.xlane.f32.xlu1 %v2917_v33 }
 0x8fa   : > { %v2911_v63 = vsel %vm764_vm8, %v6220_v59, 0.0 }
 0x8fb   : > { %5030 = vpow2.f32 %v2884_v50  ;;  %2912 = vadd.xlane.f32.xlu0 %v2911_v63 }
 0x8fc   : > { %5032 = vpow2.f32 %v2886_v3 }
 0x8fe   : > { %v2820_v58 = vpop.xlane.xlu2 %2819  ;;  %v2838_v61 = vpop.xlane.xlu0 %2837 }
 0x8ff   : > { %v2862_v2 = vsub.f32 %v6168_v26, %v2820_v58  ;;  %v2868_v21 = vsub.f32 %v6170_v23, %v2838_v61 }
 0x901   : > { %v6226_v5 = vpop.eup %5030  ;;  %v2880_v7 = vmul.f32 1.442695, %v2862_v2  ;;  %v2892_v8 = vmul.f32 1.442695, %v2868_v21 }
 0x902   : > { %v6228_v10 = vpop.eup %5032  ;;  %v2920_v15 = vsel %vm764_vm8, %v6226_v5, 0.0 }
 0x903   : > { %5034 = vpow2.f32 %v2880_v7  ;;  %2921 = vadd.xlane.f32.xlu0 %v2920_v15  ;;  %v2923_v16 = vsel %vm764_vm8, %v6228_v10, 0.0 }
 0x904   : > { %5036 = vpow2.f32 %v2892_v8  ;;  %2924 = vadd.xlane.f32.xlu1 %v2923_v16 }
 0x905   : > { %5038 = vpow2.f32 %v2890_v17 }
 0x906   : > { %v2832_v1 = vpop.xlane.xlu0 %2831 }
 0x907   : > { %v2866_v34 = vsub.f32 %v6177_v4, %v2832_v1 }
 0x909   : > { %v6236_v45 = vpop.eup %5034  ;;  %v2888_v24 = vmul.f32 1.442695, %v2866_v34 }
 0x90a   : > { %v6238_v26 = vpop.eup %5036  ;;  %v2914_v18 = vsel %vm764_vm8, %v6236_v45, 0.0 }
 0x90b   : > { %5040 = vpow2.f32 %v2888_v24  ;;  %2915 = vadd.xlane.f32.xlu0 %v2914_v18  ;;  %v2932_v23 = vsel %vm764_vm8, %v6238_v26, 0.0  ;;  %v6244_v32 = vpop.eup %5038 }
 0x90c   : > { %2933 = vadd.xlane.f32.xlu2 %v2932_v23  ;;  %v2910_v31 = vpop.xlane.xlu2 %2909  ;;  %v2929_v22 = vsel %vm764_vm8, %v6244_v32, 0.0 }
 0x90d   : > { %5042 = vrcp.f32 %v2910_v31  ;;  %v2967_v54 = vand.u32 2147483648, %v2910_v31  ;;  %v2965_v42 = vand.u32 2147483647, %v2910_v31  ;;  %vm2961_vm10 = vweird.f32 %v2910_v31 }
 0x90f   : > { %v2968_v27 = vor.u32 1.1754944e-38, %v2967_v54  ;;  %vm2966_vm12 = vcmp.eq.f32.partialorder %v2965_v42, 8.507059e+37 }
 0x911   : > { %v6246_v35 = vpop.eup %5040 }
 0x912   : > { %v2926_v38 = vsel %vm764_vm8, %v6246_v35, 0.0 }
 0x913   : > { %v5043_v4 = vpop.eup %5042  ;;  %2927 = vadd.xlane.f32.xlu1 %v2926_v38 }
 0x914   : > { %v2957_v53 = vmul.f32 %v5043_v4, %v2910_v31  ;;  %2930 = vadd.xlane.f32.xlu2 %v2929_v22  ;;  %vm2962_vm0 = vweird.f32 %v5043_v4 }
 0x915   : > { %vm2963_vm11 = vmor %vm2961_vm10, %vm2962_vm0 }
 0x916   : > { %v2958_v9 = vsub.f32 1.0, %v2957_v53 }
 0x918   : > { %v2959_v6 = vmul.f32 %v5043_v4, %v2958_v9 }
 0x91a   : > { %v2960_v57 = vadd.f32 %v5043_v4, %v2959_v6 }
 0x91c   : > { %v2964_v47 = vsel %vm2963_vm11, %v5043_v4, %v2960_v57 }
 0x91d   : > { %v2969_v49 = vsel %vm2966_vm12, %v2968_v27, %v2964_v47 }
 0x91e   : > { %v2970_v19 = vmul.f32 %v6181_v40, %v2969_v49 }
 0x920   : > { %4645 = vmatmul.msk.f32.vlgmr.msrb.gmra.mxu0 %vm764_vm8, %v2970_v19 }
 0x921   : > { %3456 = vmatpush.msrb.mxu0 %v6124_v37 }
 0x92a   : > { %v2847_v11 = vpop.xlane.xlu2 %2846 }
 0x92b   : > { %v2871_v40 = vsub.f32 %v6185_v14, %v2847_v11 }
 0x92c   : > { %3618 = vrot.lane.b32.xlu1 %v6124_v37, %s5336_s29 }
 0x92d   : > { %v2898_v3 = vmul.f32 1.442695, %v2871_v40 }
 0x932   : > { %v2859_v20 = vpop.xlane.xlu0 %2858 }
 0x933   : > { %v2875_v50 = vsub.f32 %v6189_v62, %v2859_v20 }
 0x935   : > { %v2841_v51 = vpop.xlane.xlu1 %2840  ;;  %v2906_v61 = vmul.f32 1.442695, %v2875_v50 }
 0x936   : > { %v2869_v60 = vsub.f32 %v6193_v41, %v2841_v51 }
 0x938   : > { %v2894_v46 = vmul.f32 1.442695, %v2869_v60 }
 0x93a   : > { %5044 = vpow2.f32 %v2894_v46 }
 0x93d   : > { %v2850_v52 = vpop.xlane.xlu1 %2849  ;;  %v2853_v41 = vpop.xlane.xlu2 %2852 }
 0x93e   : > { %v2872_v56 = vsub.f32 %v6199_v43, %v2850_v52  ;;  %v2873_v14 = vsub.f32 %v6201_v44, %v2853_v41 }
 0x940   : > { %v6259_v48 = vpop.eup %5044  ;;  %v2900_v36 = vmul.f32 1.442695, %v2872_v56  ;;  %v2902_v21 = vmul.f32 1.442695, %v2873_v14 }
 0x941   : > { %v2935_v33 = vsel %vm764_vm8, %v6259_v48, 0.0 }
 0x942   : > { %2936 = vadd.xlane.f32.xlu2 %v2935_v33  ;;  %5046 = vpow2.f32 %v2900_v36 }
 0x943   : > { %5048 = vpow2.f32 %v2898_v3 }
 0x945   : > { %v2844_v63 = vpop.xlane.xlu1 %2843  ;;  %v2856_v62 = vpop.xlane.xlu2 %2855 }
 0x946   : > { %v2870_v58 = vsub.f32 %v6197_v39, %v2844_v63  ;;  %v2874_v39 = vsub.f32 %v6207_v13, %v2856_v62 }
 0x948   : > { %v2896_v43 = vmul.f32 1.442695, %v2870_v58  ;;  %v6266_v0 = vpop.eup %5046  ;;  %v2904_v16 = vmul.f32 1.442695, %v2874_v39 }
 0x949   : > { %v2944_v2 = vsel %vm764_vm8, %v6266_v0, 0.0  ;;  %v6271_v7 = vpop.eup %5048 }
 0x94a   : > { %5050 = vpow2.f32 %v2896_v43  ;;  %2945 = vadd.xlane.f32.xlu0 %v2944_v2  ;;  %v2941_v44 = vsel %vm764_vm8, %v6271_v7, 0.0 }
 0x94b   : > { %5052 = vpow2.f32 %v2906_v61 }
 0x94c   : > { %5054 = vpow2.f32 %v2902_v21 }
 0x94d   : > { %5056 = vpow2.f32 %v2904_v16 }
 0x950   : > { %v6273_v8 = vpop.eup %5050 }
 0x951   : > { %v6276_v12 = vpop.eup %5052  ;;  %v2938_v15 = vsel %vm764_vm8, %v6273_v8, 0.0 }
 0x952   : > { %2942 = vadd.xlane.f32.xlu0 %v2941_v44  ;;  %2939 = vadd.xlane.f32.xlu2 %v2938_v15  ;;  %v2953_v17 = vsel %vm764_vm8, %v6276_v12, 0.0  ;;  %v6284_v1 = vpop.eup %5054 }
 0x953   : > { %v2947_v13 = vsel %vm764_vm8, %v6284_v1, 0.0  ;;  %v6288_v34 = vpop.eup %5056 }
 0x954   : > { %v2950_v24 = vsel %vm764_vm8, %v6288_v34, 0.0 }
 0x956   : > { %2954 = vadd.xlane.f32.xlu1 %v2953_v17 }
 0x95a   : > { %2948 = vadd.xlane.f32.xlu2 %v2947_v13 }
 0x962   : > { %2951 = vadd.xlane.f32.xlu2 %v2950_v24 }
 0x966   : > { %3649 = vrot.lane.b32.xlu0 %v6124_v37, %s5332_s11 }
 0x96c   : > { %v2919_v18 = vpop.xlane.xlu1 %2918 }
 0x96d   : > { %5058 = vrcp.f32 %v2919_v18  ;;  %v3010_v54 = vand.u32 2147483647, %v2919_v18  ;;  %v3012_v6 = vand.u32 2147483648, %v2919_v18  ;;  %vm3006_vm14 = vweird.f32 %v2919_v18 }
 0x96e   : > { %v2913_v23 = vpop.xlane.xlu0 %2912  ;;  %3587 = vrot.lane.b32.xlu0 %v6124_v37, %s5338_s18 }
 0x96f   : > { %5060 = vrcp.f32 %v2913_v23  ;;  %3556 = vrot.lane.b32.xlu1 %v6124_v37, %s5337_s24  ;;  %v2982_v47 = vand.u32 2147483648, %v2913_v23  ;;  %v2980_v51 = vand.u32 2147483647, %v2913_v23  ;;  %v3013_v60 = vor.u32 1.1754944e-38, %v3012_v6 }
 0x970   : > { %vm3011_vm10 = vcmp.eq.f32.partialorder %v3010_v54, 8.507059e+37  ;;  %vm2976_vm11 = vweird.f32 %v2913_v23 }
 0x971   : > { %v2983_v36 = vor.u32 1.1754944e-38, %v2982_v47  ;;  %vm2981_vm1 = vcmp.eq.f32.partialorder %v2980_v51, 8.507059e+37 }
 0x973   : > { %v5059_v31 = vpop.eup %5058 }
 0x974   : > { %v3002_v38 = vmul.f32 %v5059_v31, %v2919_v18  ;;  %vm3007_vm13 = vweird.f32 %v5059_v31 }
 0x975   : > { %v5061_v4 = vpop.eup %5060  ;;  %vm3008_vm0 = vmor %vm3006_vm14, %vm3007_vm13 }
 0x976   : > { %v3003_v22 = vsub.f32 1.0, %v3002_v38  ;;  %v2972_v53 = vmul.f32 %v5061_v4, %v2913_v23  ;;  %v6298_v9 = vpop.xlane.xlu0 %2921  ;;  %vm2977_vm15 = vweird.f32 %v5061_v4 }
 0x977   : > { %v6300_v42 = vpop.xlane.xlu1 %2924  ;;  %5062 = vrcp.f32 %v6298_v9  ;;  %vm2978_vm12 = vmor %vm2976_vm11, %vm2977_vm15  ;;  %v3027_v14 = vand.u32 2147483648, %v6298_v9  ;;  %v3025_v62 = vand.u32 2147483647, %v6298_v9  ;;  %vm3021_vm14 = vweird.f32 %v6298_v9 }
 0x978   : > { %v3004_v57 = vmul.f32 %v5059_v31, %v3003_v22  ;;  %v2973_v27 = vsub.f32 1.0, %v2972_v53  ;;  %5064 = vrcp.f32 %v6300_v42  ;;  %v3042_v21 = vand.u32 2147483648, %v6300_v42 }
 0x979   : > { %v3040_v39 = vand.u32 2147483647, %v6300_v42  ;;  %vm3036_vm15 = vweird.f32 %v6300_v42  ;;  %v3028_v17 = vor.u32 1.1754944e-38, %v3027_v14  ;;  %vm3026_vm11 = vcmp.eq.f32.partialorder %v3025_v62, 8.507059e+37 }
 0x97a   : > { %v3005_v49 = vadd.f32 %v5059_v31, %v3004_v57  ;;  %v2974_v19 = vmul.f32 %v5061_v4, %v2973_v27  ;;  %3463 = vrot.lane.b32.xlu2 %v6124_v37, %s5333_s20  ;;  %v3043_v23 = vor.u32 1.1754944e-38, %v3042_v21 }
 0x97c   : > { %v3009_v46 = vsel %vm3008_vm0, %v5059_v31, %v3005_v49  ;;  %v2975_v11 = vadd.f32 %v5061_v4, %v2974_v19 }
 0x97d   : > { %v5063_v52 = vpop.eup %5062  ;;  %v3014_v56 = vsel %vm3011_vm10, %v3013_v60, %v3009_v46 }
 0x97e   : > { %v5065_v40 = vpop.eup %5064  ;;  %v2979_v20 = vsel %vm2978_vm12, %v5061_v4, %v2975_v11  ;;  %v3017_v33 = vmul.f32 %v5063_v52, %v6298_v9  ;;  %v6307_v50 = vpop.xlane.xlu0 %2915  ;;  %v3015_v41 = vmul.f32 %v6215_v55, %v3014_v56  ;;  %vm3022_vm13 = vweird.f32 %v5063_v52 }
 0x97f   : > { %v2984_v3 = vsel %vm2981_vm1, %v2983_v36, %v2979_v20  ;;  %v3032_v37 = vmul.f32 %v5065_v40, %v6300_v42  ;;  %v6311_v63 = vpop.xlane.xlu2 %2933  ;;  %5066 = vrcp.f32 %v6307_v50  ;;  %vm3037_vm1 = vweird.f32 %v5065_v40  ;;  %vm3023_vm0 = vmor %vm3021_vm14, %vm3022_vm13 }
 0x980   : > { %v3018_v58 = vsub.f32 1.0, %v3017_v33  ;;  %5068 = vrcp.f32 %v6311_v63  ;;  %4648 = vmatmul.msk.f32.vlgmr.msrb.gmra.mxu3 %vm764_vm8, %v3015_v41  ;;  %v2985_v55 = vmul.f32 %v6220_v59, %v2984_v3  ;;  %vm3038_vm10 = vmor %vm3036_vm15, %vm3037_vm1  ;;  %vm3041_vm12 = vcmp.eq.f32.partialorder %v3040_v39, 8.507059e+37 }
 0x981   : > { %v3033_v61 = vsub.f32 1.0, %v3032_v37  ;;  %3546 = vmatpush.msrb.mxu3 %v6213_v29  ;;  %v2997_v54 = vand.u32 2147483648, %v6307_v50  ;;  %v3087_v6 = vand.u32 2147483648, %v6311_v63  ;;  %v2995_v57 = vand.u32 2147483647, %v6307_v50 }
 0x982   : > { %v3019_v43 = vmul.f32 %v5063_v52, %v3018_v58  ;;  %4646 = vmatmul.msk.f32.vlgmr.msrb.gmra.mxu1 %vm764_vm8, %v2985_v55  ;;  %v3085_v47 = vand.u32 2147483647, %v6311_v63  ;;  %vm2991_vm14 = vweird.f32 %v6307_v50  ;;  %vm3081_vm15 = vweird.f32 %v6311_v63 }
 0x983   : > { %v3034_v2 = vmul.f32 %v5065_v40, %v3033_v61  ;;  %v2998_v46 = vor.u32 1.1754944e-38, %v2997_v54 }
 0x984   : > { %v3020_v44 = vadd.f32 %v5063_v52, %v3019_v43 }
 0x985   : > { %v5067_v29 = vpop.eup %5066  ;;  %v3035_v15 = vadd.f32 %v5065_v40, %v3034_v2 }
 0x986   : > { %v5069_v16 = vpop.eup %5068  ;;  %v3024_v59 = vsel %vm3023_vm0, %v5063_v52, %v3020_v44  ;;  %v2987_v13 = vmul.f32 %v5067_v29, %v6307_v50  ;;  %v6326_v24 = vpop.xlane.xlu1 %2927  ;;  %vm2992_vm13 = vweird.f32 %v5067_v29  ;;  %v3088_v52 = vor.u32 1.1754944e-38, %v3087_v6 }
 0x987   : > { %v3039_v18 = vsel %vm3038_vm10, %v5065_v40, %v3035_v15  ;;  %v3077_v31 = vmul.f32 %v5069_v16, %v6311_v63  ;;  %v2931_v38 = vpop.xlane.xlu2 %2930  ;;  %v3029_v4 = vsel %vm3026_vm11, %v3028_v17, %v3024_v59  ;;  %vm3082_vm1 = vweird.f32 %v5069_v16  ;;  %vm2993_vm0 = vmor %vm2991_vm14, %vm2992_vm13 }
 0x988   : > { %v2988_v22 = vsub.f32 1.0, %v2987_v13  ;;  %5070 = vrcp.f32 %v2931_v38  ;;  %v3044_v53 = vsel %vm3041_vm12, %v3043_v23, %v3039_v18  ;;  %v3030_v49 = vmul.f32 %v6226_v5, %v3029_v4  ;;  %vm3083_vm10 = vmor %vm3081_vm15, %vm3082_vm1 }
 0x989   : > { %v3078_v9 = vsub.f32 1.0, %v3077_v31  ;;  %5072 = vrcp.f32 %v6326_v24  ;;  %v3045_v51 = vmul.f32 %v6228_v10, %v3044_v53  ;;  %vm2996_vm11 = vcmp.eq.f32.partialorder %v2995_v57, 8.507059e+37 }
 0x98a   : > { %v2989_v42 = vmul.f32 %v5067_v29, %v2988_v22  ;;  %4649 = vmatmul.msk.f32.vlgmr.msra.gmra.mxu0 %vm764_vm8, %v3030_v49  ;;  %vm3086_vm12 = vcmp.eq.f32.partialorder %v3085_v47, 8.507059e+37  ;;  %v3072_v37 = vand.u32 2147483648, %v2931_v38  ;;  %v3070_v61 = vand.u32 2147483647, %v2931_v38 }
 0x98b   : > { %v3079_v27 = vmul.f32 %v5069_v16, %v3078_v9  ;;  %4650 = vmatmul.msk.f32.vlgmr.msra.gmra.mxu1 %vm764_vm8, %v3045_v51  ;;  %v3057_v43 = vand.u32 2147483648, %v6326_v24  ;;  %v3055_v55 = vand.u32 2147483647, %v6326_v24  ;;  %vm3066_vm14 = vweird.f32 %v2931_v38 }
 0x98c   : > { %v2990_v19 = vadd.f32 %v5067_v29, %v2989_v42 }
 0x98d   : > { %v3080_v60 = vadd.f32 %v5069_v16, %v3079_v27  ;;  %v3058_v62 = vor.u32 1.1754944e-38, %v3057_v43 }
 0x98e   : > { %v5071_v11 = vpop.eup %5070  ;;  %v2994_v56 = vsel %vm2993_vm0, %v5067_v29, %v2990_v19  ;;  %vm3051_vm0 = vweird.f32 %v6326_v24 }
 0x98f   : > { %v5073_v5 = vpop.eup %5072  ;;  %v3084_v36 = vsel %vm3083_vm10, %v5069_v16, %v3080_v60  ;;  %v2999_v40 = vsel %vm2996_vm11, %v2998_v46, %v2994_v56  ;;  %v3062_v20 = vmul.f32 %v5071_v11, %v2931_v38  ;;  %vm3067_vm13 = vweird.f32 %v5071_v11 }
 0x990   : > { %v3089_v10 = vsel %vm3086_vm12, %v3088_v52, %v3084_v36  ;;  %v3047_v33 = vmul.f32 %v5073_v5, %v6326_v24  ;;  %v3000_v50 = vmul.f32 %v6236_v45, %v2999_v40  ;;  %vm3052_vm1 = vweird.f32 %v5073_v5  ;;  %vm3068_vm15 = vmor %vm3066_vm14, %vm3067_vm13 }
 0x991   : > { %v3063_v41 = vsub.f32 1.0, %v3062_v20  ;;  %v3090_v3 = vmul.f32 %v6238_v26, %v3089_v10  ;;  %v3073_v45 = vor.u32 1.1754944e-38, %v3072_v37  ;;  %vm3071_vm10 = vcmp.eq.f32.partialorder %v3070_v61, 8.507059e+37  ;;  %vm3053_vm11 = vmor %vm3051_vm0, %vm3052_vm1 }
 0x992   : > { %v3048_v63 = vsub.f32 1.0, %v3047_v33  ;;  %4647 = vmatmul.msk.f32.vlgmr.msra.gmra.mxu2 %vm764_vm8, %v3000_v50  ;;  %vm3056_vm12 = vcmp.eq.f32.partialorder %v3055_v55, 8.507059e+37 }
 0x993   : > { %v3064_v58 = vmul.f32 %v5071_v11, %v3063_v41  ;;  %3515 = vmatpush.msra.mxu2 %v6166_v25  ;;  %4653 = vmatmul.msk.f32.vlgmr.msrb.gmra.mxu0 %vm764_vm8, %v3090_v3 }
 0x994   : > { %v3049_v14 = vmul.f32 %v5073_v5, %v3048_v63 }
 0x995   : > { %v3065_v2 = vadd.f32 %v5071_v11, %v3064_v58 }
 0x996   : > { %v3050_v26 = vadd.f32 %v5073_v5, %v3049_v14 }
 0x997   : > { %v3069_v21 = vsel %vm3068_vm15, %v5071_v11, %v3065_v2 }
 0x998   : > { %v3074_v39 = vsel %vm3071_vm10, %v3073_v45, %v3069_v21  ;;  %v3054_v44 = vsel %vm3053_vm11, %v5073_v5, %v3050_v26 }
 0x999   : > { %v3059_v25 = vsel %vm3056_vm12, %v3058_v62, %v3054_v44  ;;  %v3075_v29 = vmul.f32 %v6244_v32, %v3074_v39 }
 0x99a   : > { %v3060_v15 = vmul.f32 %v6246_v35, %v3059_v25 }
 0x99b   : > { %4652 = vmatmul.msk.f32.vlgmr.msra.gmra.mxu3 %vm764_vm8, %v3075_v29 }
 0x99c   : > { %4651 = vmatmul.msk.f32.vlgmr.msrb.gmra.mxu2 %vm764_vm8, %v3060_v15 }
 0x99d   : > { %v3216_v16 = vpop.f32.mrf.mxu0 }
 0x99e   : > { %3219 = vst.msk [vmem:[#allocation3] sm:$0xff] %vm764_vm8, %v3216_v16  ;;  %v3619_v59 = vpop.permute.xlu1 %3618 }
 0x99f   : > { %3639 = vmatpush.msrb.mxu2 %v3619_v59 }
 0x9b5   : > { %v2937_v17 = vpop.xlane.xlu2 %2936 }
 0x9b6   : > { %5074 = vrcp.f32 %v2937_v17  ;;  %v3102_v53 = vand.u32 2147483648, %v2937_v17  ;;  %v3100_v6 = vand.u32 2147483647, %v2937_v17  ;;  %vm3096_vm1 = vweird.f32 %v2937_v17 }
 0x9b8   : > { %v3103_v19 = vor.u32 1.1754944e-38, %v3102_v53  ;;  %vm6387_vm0 = vcmp.eq.f32.partialorder %v3100_v6, 8.507059e+37 }
 0x9bc   : > { %v6354_v13 = vpop.eup %5074 }
 0x9bd   : > { %v6356_v24 = vpop.xlane.xlu0 %2945  ;;  %v3092_v18 = vmul.f32 %v6354_v13, %v2937_v17  ;;  %vm3097_vm13 = vweird.f32 %v6354_v13 }
 0x9be   : > { %5076 = vrcp.f32 %v6356_v24  ;;  %vm6374_vm14 = vmor %vm3096_vm1, %vm3097_vm13  ;;  %v3147_v51 = vand.u32 2147483648, %v6356_v24  ;;  %vm3141_vm15 = vweird.f32 %v6356_v24  ;;  %v3145_v25 = vand.u32 2147483647, %v6356_v24 }
 0x9bf   : > { %v3093_v32 = vsub.f32 1.0, %v3092_v18 }
 0x9c1   : > { %v3094_v38 = vmul.f32 %v6354_v13, %v3093_v32 }
 0x9c3   : > { %v6369_v9 = vadd.f32 %v6354_v13, %v3094_v38 }
 0x9c4   : > { %v6360_v31 = vpop.eup %5076 }
 0x9c5   : > { %v2940_v35 = vpop.xlane.xlu2 %2939  ;;  %v2943_v23 = vpop.xlane.xlu0 %2942  ;;  %v3137_v22 = vmul.f32 %v6360_v31, %v6356_v24  ;;  %v3099_v11 = vsel %vm6374_vm14, %v6354_v13, %v6369_v9  ;;  %vm3142_vm10 = vweird.f32 %v6360_v31 }
 0x9c6   : > { %5078 = vrcp.f32 %v2940_v35  ;;  %v3115_v56 = vand.u32 2147483647, %v2940_v35  ;;  %v3117_v5 = vand.u32 2147483648, %v2940_v35  ;;  %v3130_v20 = vand.u32 2147483647, %v2943_v23 }
 0x9c7   : > { %5080 = vrcp.f32 %v2943_v23  ;;  %v3138_v57 = vsub.f32 1.0, %v3137_v22  ;;  %v3132_v10 = vand.u32 2147483648, %v2943_v23  ;;  %vm3111_vm12 = vweird.f32 %v2940_v35 }
 0x9c8   : > { %vm3116_vm1 = vcmp.eq.f32.partialorder %v3115_v56, 8.507059e+37  ;;  %v3118_v58 = vor.u32 1.1754944e-38, %v3117_v5  ;;  %vm3126_vm14 = vweird.f32 %v2943_v23  ;;  %vm3131_vm7 = vcmp.eq.f32.partialorder %v3130_v20, 8.507059e+37 }
 0x9c9   : > { %v6363_v4 = vpop.xlane.xlu1 %2954  ;;  %v3139_v50 = vmul.f32 %v6360_v31, %v3138_v57  ;;  %v3133_v14 = vor.u32 1.1754944e-38, %v3132_v10 }
 0x9ca   : > { %5082 = vrcp.f32 %v6363_v4  ;;  %v3192_v15 = vand.u32 2147483648, %v6363_v4  ;;  %v3190_v17 = vand.u32 2147483647, %v6363_v4 }
 0x9cb   : > { %v3140_v2 = vadd.f32 %v6360_v31, %v3139_v50 }
 0x9cc   : > { %v5079_v54 = vpop.eup %5078 }
 0x9cd   : > { %v5081_v42 = vpop.eup %5080  ;;  %v3107_v27 = vmul.f32 %v5079_v54, %v2940_v35  ;;  %v6372_v47 = vpop.xlane.xlu2 %2948  ;;  %vm3112_vm11 = vweird.f32 %v5079_v54  ;;  %v3104_v35 = vsel %vm6387_vm0, %v3103_v19, %v3099_v11  ;;  %vm3191_vm0 = vcmp.eq.f32.partialorder %v3190_v17, 8.507059e+37 }
 0x9ce   : > { %v3122_v60 = vmul.f32 %v5081_v42, %v2943_v23  ;;  %5084 = vrcp.f32 %v6372_v47  ;;  %vm3127_vm13 = vweird.f32 %v5081_v42  ;;  %vm3113_vm9 = vmor %vm3111_vm12, %vm3112_vm11  ;;  %v3162_v9 = vand.u32 2147483648, %v6372_v47 }
 0x9cf   : > { %v3108_v52 = vsub.f32 1.0, %v3107_v27  ;;  %vm3128_vm6 = vmor %vm3126_vm14, %vm3127_vm13 }
 0x9d0   : > { %v6380_v46 = vpop.eup %5082  ;;  %v3123_v40 = vsub.f32 1.0, %v3122_v60 }
 0x9d1   : > { %v3182_v33 = vmul.f32 %v6380_v46, %v6363_v4  ;;  %v3109_v41 = vmul.f32 %v5079_v54, %v3108_v52  ;;  %vm3187_vm5 = vweird.f32 %v6380_v46 }
 0x9d2   : > { %v3124_v3 = vmul.f32 %v5081_v42, %v3123_v40 }
 0x9d3   : > { %v3183_v37 = vsub.f32 1.0, %v3182_v33  ;;  %v3110_v63 = vadd.f32 %v5079_v54, %v3109_v41 }
 0x9d4   : > { %v6395_v61 = vpop.eup %5084  ;;  %v3125_v43 = vadd.f32 %v5081_v42, %v3124_v3 }
 0x9d5   : > { %v3184_v55 = vmul.f32 %v6380_v46, %v3183_v37  ;;  %v3114_v45 = vsel %vm3113_vm9, %v5079_v54, %v3110_v63  ;;  %v3152_v26 = vmul.f32 %v6395_v61, %v6372_v47  ;;  %v6402_v21 = vpop.xlane.xlu2 %2951  ;;  %vm6412_vm9 = vmor %vm3141_vm15, %vm3142_vm10  ;;  %vm3146_vm15 = vcmp.eq.f32.partialorder %v3145_v25, 8.507059e+37  ;;  %v4817_v25 = vld [vmem:[%s5532_s9 + $0x60] sm:$0xff] }
 0x9d6   : > { %v3119_v62 = vsel %vm3116_vm1, %v3118_v58, %v3114_v45  ;;  %v3129_v39 = vsel %vm3128_vm6, %v5081_v42, %v3125_v43  ;;  %5086 = vrcp.f32 %v6402_v21  ;;  %vm3186_vm6 = vweird.f32 %v6363_v4  ;;  %v4820_v45 = vld [vmem:[%s5532_s9 + $0x78] sm:$0xff] }
 0x9d7   : > { %v3185_v44 = vadd.f32 %v6380_v46, %v3184_v55  ;;  %v3134_v29 = vsel %vm3131_vm7, %v3133_v14, %v3129_v39  ;;  %v3153_v16 = vsub.f32 1.0, %v3152_v26  ;;  %v3120_v18 = vmul.f32 %v6273_v8, %v3119_v62  ;;  %vm6427_vm7 = vmor %vm3186_vm6, %vm3187_vm5  ;;  %v4819_v62 = vld [vmem:[%s5532_s9 + $0x70] sm:$0xff]  ;;  %v4818_v39 = vld [vmem:[%s5532_s9 + $0x68] sm:$0xff] }
 0x9d8   : > { %v3650_v13 = vpop.permute.xlu0 %3649  ;;  %v3135_v32 = vmul.f32 %v6271_v7, %v3134_v29  ;;  %v3144_v24 = vsel %vm6412_vm9, %v6360_v31, %v3140_v2  ;;  %v3148_v4 = vor.u32 1.1754944e-38, %v3147_v51  ;;  %v3193_v8 = vor.u32 1.1754944e-38, %v3192_v15 }
 0x9d9   : > { %v3154_v38 = vmul.f32 %v6395_v61, %v3153_v16  ;;  %3670 = vmatpush.msra.mxu3 %v3650_v13  ;;  %v3189_v7 = vsel %vm6427_vm7, %v6380_v46, %v3185_v44  ;;  %4655 = vmatmul.msk.f32.vlgmr.msra.gmra.mxu2 %vm764_vm8, %v3120_v18  ;;  %vm3157_vm5 = vweird.f32 %v6395_v61  ;;  %v3105_v54 = vmul.f32 %v6259_v48, %v3104_v35 }
 0x9da   : > { %4656 = vmatmul.msk.f32.vlgmr.msrb.gmra.mxu3 %vm764_vm8, %v3135_v32  ;;  %v3149_v53 = vsel %vm3146_vm15, %v3148_v4, %v3144_v24  ;;  %v3194_v6 = vsel %vm3191_vm0, %v3193_v8, %v3189_v7  ;;  %vm3156_vm10 = vweird.f32 %v6372_v47  ;;  %v3160_v42 = vand.u32 2147483647, %v6372_v47 }
 0x9db   : > { %v3155_v31 = vadd.f32 %v6395_v61, %v3154_v38  ;;  %vm6444_vm11 = vmor %vm3156_vm10, %vm3157_vm5  ;;  %v3163_v48 = vor.u32 1.1754944e-38, %v3162_v9  ;;  %v3177_v60 = vand.u32 2147483648, %v6402_v21  ;;  %v3195_v11 = vmul.f32 %v6276_v12, %v3194_v6 }
 0x9dc   : > { %v5087_v22 = vpop.eup %5086  ;;  %v3150_v52 = vmul.f32 %v6266_v0, %v3149_v53  ;;  %vm3161_vm12 = vcmp.eq.f32.partialorder %v3160_v42, 8.507059e+37  ;;  %v3175_v5 = vand.u32 2147483647, %v6402_v21  ;;  %vm3171_vm1 = vweird.f32 %v6402_v21 }
 0x9dd   : > { %v3167_v57 = vmul.f32 %v5087_v22, %v6402_v21  ;;  %v3464_v27 = vpop.permute.xlu2 %3463  ;;  %v3159_v19 = vsel %vm6444_vm11, %v6395_v61, %v3155_v31  ;;  %vm3172_vm13 = vweird.f32 %v5087_v22  ;;  %v3178_v20 = vor.u32 1.1754944e-38, %v3177_v60  ;;  %v6499_v31 = vld [vmem:[%s5521_s23 + $0x8] sm:$0xff] }
 0x9de   : > { %3484 = vmatpush.msrb.mxu1 %v3464_v27  ;;  %v3164_v36 = vsel %vm3161_vm12, %v3163_v48, %v3159_v19  ;;  %vm3173_vm14 = vmor %vm3171_vm1, %vm3172_vm13  ;;  %vm3176_vm9 = vcmp.eq.f32.partialorder %v3175_v5, 8.507059e+37  ;;  %vm6688_vm6 = vcmask 392512   ;;  %vm6689_vm7 = vcmask 458112   ;;  %v4828_v5 = vld [vmem:[%s5537_s26 + $0x34] sm:$0xf0] }
 0x9df   : > { %v3168_v51 = vsub.f32 1.0, %v3167_v57  ;;  %4654 = vmatmul.msk.f32.vlgmr.msrb.gmra.mxu1 %vm764_vm8, %v3105_v54  ;;  %v3165_v0 = vmul.f32 %v6284_v1, %v3164_v36  ;;  %vm6690_vm15 = vcmask 523712   ;;  %vm6691_vm5 = vcmask 523264   ;;  %vm6693_vm10 = vmmov %vm6688_vm6  ;;  %v4827_v36 = vld [vmem:[%s5537_s26 + $0x34] sm:$0xf] }
 0x9e0   : > { %v3588_v46 = vpop.permute.xlu0 %3587  ;;  %vm6694_vm11 = vmmov %vm6689_vm7 }
 0x9e1   : > { %v3557_v47 = vpop.permute.xlu1 %3556  ;;  %v3169_v56 = vmul.f32 %v5087_v22, %v3168_v51  ;;  %3608 = vmatpush.msra.mxu1 %v3588_v46  ;;  %vm6695_vm12 = vmmov %vm6690_vm15 }
 0x9e2   : > { %3577 = vmatpush.msra.mxu0 %v3557_v47  ;;  %4660 = vmatmul.msk.f32.vlgmr.msra.gmra.mxu3 %vm764_vm8, %v3195_v11  ;;  %vm6696_vm13 = vmmov %vm6691_vm5 }
 0x9e3   : > { %4657 = vmatmul.msk.f32.vlgmr.msra.gmra.mxu0 %vm764_vm8, %v3150_v52  ;;  %v3170_v40 = vadd.f32 %v5087_v22, %v3169_v56  ;;  %v4705_v56 = vld [vmem:[%s5537_s26 + $0x30] sm:$0xf] }
 0x9e4   : > { %3717 = vmatpush.bf16.msrb.mxu0 %v4820_v45  ;;  %v4683_v45 = vld [vmem:[%s5537_s26 + $0x8] sm:$0xf0] }
 0x9e5   : > { %v3174_v12 = vsel %vm3173_vm14, %v5087_v22, %v3170_v40  ;;  %v3682_v22 = vperm.slane %v6499_v31, 5  ;;  %v4706_v40 = vor.u32 %v4828_v5, %v4705_v56  ;;  %v4834_v5 = vld [vmem:[%s5542_s30 + $0x28] sm:$0xff] }
 0x9e6   : > { %v3179_v10 = vsel %vm3176_vm9, %v3178_v20, %v3174_v12  ;;  %v4707_v20 = vld [vmem:[%s5537_s26 + $0x38] sm:$0xf0] }
 0x9e7   : > { %4658 = vmatmul.msk.f32.vlgmr.msra.gmra.mxu1 %vm764_vm8, %v3165_v0  ;;  %v3180_v33 = vmul.f32 %v6288_v34, %v3179_v10  ;;  %v4710_v12 = vor.u32 %v4827_v36, %v4707_v20  ;;  %v4697_v0 = vld [vmem:[%s5537_s26 + $0x20] sm:$0xf]  ;;  %v4826_v10 = vld [vmem:[%s5537_s26 + $0x24] sm:$0xf0] }
 0x9e8   : > { %3718 = vmatpush.bf16.msrb.mxu0 %v4819_v62  ;;  %3844 = vmatpush.bf16.msrb.mxu1 %v4706_v40  ;;  %v4843_v40 = vld [vmem:[%s5542_s30 + $0x70] sm:$0xff] }
 0x9e9   : > { %4659 = vmatmul.msk.f32.vlgmr.msrb.gmra.mxu2 %vm764_vm8, %v3180_v33  ;;  %v4825_v33 = vld [vmem:[%s5537_s26 + $0x24] sm:$0xf] }
 0x9ea   : > { %3859 = vmatpush.bf16.msra.mxu2 %v4710_v12 }
 0x9ec   : > { %3719 = vmatpush.bf16.msrb.mxu0 %v4818_v39 }
 0x9f0   : > { %3720 = vmatpush.bf16.msrb.mxu0 %v4817_v25 }
 0x9ff   : > { %v3244_v50 = vpop.f32.mrf.mxu1 }
 0xa00   : > { %3248 = vrot.lane.b32.xlu1 %v3244_v50, %s5340_s0  ;;  %v4698_v50 = vor.u32 %v4826_v10, %v4697_v0  ;;  %v4833_v10 = vld [vmem:[%s5542_s30 + $0x20] sm:$0xff] }
 0xa02   : > { %3845 = vmatpush.bf16.msrb.mxu1 %v4698_v50 }
 0xa03   : > { %v3306_v41 = vpop.f32.mrf.mxu3 }
 0xa04   : > { %3310 = vrot.lane.b32.xlu2 %v3306_v41, %s5343_s28  ;;  %v4699_v41 = vld [vmem:[%s5537_s26 + $0x28] sm:$0xf0] }
 0xa07   : > { %v3337_v3 = vpop.f32.mrf.mxu0 }
 0xa08   : > { %v3368_v37 = vpop.f32.mrf.mxu1  ;;  %3341 = vrot.lane.b32.xlu1 %v3337_v3, %s5339_s27  ;;  %v4702_v3 = vor.u32 %v4825_v33, %v4699_v41  ;;  %v4842_v41 = vld [vmem:[%s5542_s30 + $0x68] sm:$0xff] }
 0xa09   : > { %3372 = vrot.lane.b32.xlu0 %v3368_v37, %s5341_s2  ;;  %v4689_v37 = vld [vmem:[%s5537_s26 + $0x10] sm:$0xf] }
 0xa0a   : > { %3860 = vmatpush.bf16.msra.mxu2 %v4702_v3  ;;  %v4832_v3 = vld [vmem:[%s5542_s30 + $0x18] sm:$0xff] }
 0xa10   : > { %v3458_v1 = vpop.f32.mrf.mxu0 }
 0xa11   : > { %3461 = vst.msk [vmem:[#allocation3 + $0x8] sm:$0xff] %vm764_vm8, %v3458_v1  ;;  %vm6687_vm8 = vcmask 326912   ;;  %v4824_v1 = vld [vmem:[%s5537_s26 + $0x14] sm:$0xf0] }
 0xa12   : > { %vm6692_vm0 = vmmov %vm6687_vm8 }
 0xa15   : > { %v3275_v63 = vpop.f32.mrf.mxu2 }
 0xa16   : > { %3279 = vrot.lane.b32.xlu0 %v3275_v63, %s5342_s25  ;;  %v4823_v63 = vld [vmem:[%s5537_s26 + $0x14] sm:$0xf] }
 0xa1e   : > { %v3430_v34 = vpop.f32.mrf.mxu3 }
 0xa1f   : > { %v3399_v58 = vpop.f32.mrf.mxu2  ;;  %3434 = vrot.lane.b32.xlu1 %v3430_v34, %s5345_s16  ;;  %v4690_v34 = vor.u32 %v4824_v1, %v4689_v37  ;;  %v4841_v1 = vld [vmem:[%s5542_s30 + $0x60] sm:$0xff] }
 0xa20   : > { %3403 = vrot.lane.b32.xlu2 %v3399_v58, %s5344_s22  ;;  %v4691_v58 = vld [vmem:[%s5537_s26 + $0x18] sm:$0xf0] }
 0xa21   : > { %3846 = vmatpush.bf16.msrb.mxu1 %v4690_v34  ;;  %v4831_v34 = vld [vmem:[%s5542_s30 + $0x10] sm:$0xff] }
 0xa5c   : > { %v3486_v61 = vpop.f32.mrf.mxu1  ;;  %v3517_v43 = vpop.f32.mrf.mxu2 }
 0xa5d   : > { %v3548_v14 = vpop.f32.mrf.mxu3  ;;  %3490 = vrot.lane.b32.xlu0 %v3486_v61, %s5340_s0  ;;  %3521 = vrot.lane.b32.xlu2 %v3517_v43, %s5342_s25  ;;  %v4694_v61 = vor.u32 %v4823_v63, %v4691_v58  ;;  %v4681_v43 = vld [vmem:[%s5537_s26] sm:$0xf] }
 0xa5e   : > { %3552 = vrot.lane.b32.xlu1 %v3548_v14, %s5343_s28  ;;  %v3311_v15 = vpop.permute.xlu2 %3310  ;;  %v4822_v14 = vld [vmem:[%s5537_s26 + $0x4] sm:$0xf0] }
 0xa5f   : > { %3861 = vmatpush.bf16.msra.mxu2 %v4694_v61 }
 0xa60   : > { %v3579_v55 = vpop.f32.mrf.mxu0 }
 0xa64   : > { %v3610_v2 = vpop.f32.mrf.mxu1 }
 0xa65   : > { %3583 = vrot.lane.b32.xlu0 %v3579_v55, %s5339_s27  ;;  %3614 = vrot.lane.b32.xlu2 %v3610_v2, %s5341_s2  ;;  %v3672_v26 = vpop.f32.mrf.mxu3  ;;  %v4821_v55 = vld [vmem:[%s5537_s26 + $0x4] sm:$0xf]  ;;  %v4682_v2 = vor.u32 %v4822_v14, %v4681_v43  ;;  %v4840_v43 = vld [vmem:[%s5542_s30 + $0x58] sm:$0xff] }
 0xa67   : > { %3847 = vmatpush.bf16.msrb.mxu1 %v4682_v2 }
 0xa6c   : > { %v3641_v21 = vpop.f32.mrf.mxu2 }
 0xa6d   : > { %3645 = vrot.lane.b32.xlu1 %v3641_v21, %s5344_s22  ;;  %3676 = vrot.lane.b32.xlu0 %v3672_v26, %s5345_s16  ;;  %v4686_v26 = vor.u32 %v4821_v55, %v4683_v45  ;;  %v4830_v55 = vld [vmem:[%s5542_s30 + $0x8] sm:$0xff] }
 0xa6f   : > { %3862 = vmatpush.bf16.msra.mxu2 %v4686_v26  ;;  %v4839_v26 = vld [vmem:[%s5542_s30 + $0x50] sm:$0xff] }
 0xa72   : > { %v3249_v44 = vpop.permute.xlu1 %3248 }
 0xa73   : > { %3251 = vst.msk [vmem:[#allocation3] sm:$0xff] %vm1664_vm2, %v3249_v44 }
 0xa7a   : > { %v3342_v59 = vpop.permute.xlu1 %3341  ;;  %v3404_v17 = vpop.permute.xlu2 %3403 }
 0xa7b   : > { %v3373_v29 = vpop.permute.xlu0 %3372 }
 0xa88   : > { %v3280_v16 = vpop.permute.xlu0 %3279 }
 0xa89   : > { %3282 = vst.msk [vmem:[#allocation3] sm:$0xff] %vm1696_vm3, %v3280_v16 }
 0xa8a   : > { %3313 = vst.msk [vmem:[#allocation3] sm:$0xff] %vm1728_vm4, %v3311_v15 }
 0xa8b   : > { %3344 = vst.msk [vmem:[#allocation3] sm:$0xff] %vm6687_vm8, %v3342_v59 }
 0xa8c   : > { %3375 = vst.msk [vmem:[#allocation3] sm:$0xff] %vm6688_vm6, %v3373_v29 }
 0xa8d   : > { %3406 = vst.msk [vmem:[#allocation3] sm:$0xff] %vm6689_vm7, %v3404_v17  ;;  %v5113_v17 = vld [vmem:[%s5521_s23] sm:$0xff] }
 0xa91   : > { %v3435_v13 = vpop.permute.xlu1 %3434 }
 0xa92   : > { %3437 = vst.msk [vmem:[#allocation3] sm:$0xff] %vm6690_vm15, %v3435_v13  ;;  %v3774_v13 = vperm.slane %v5113_v17, 4 }
 0xa99   : > { %v3680_v18 = vld [vmem:[#allocation3] sm:$0xff] }
 0xa9a   : > { %4677 = vmatmul.msk.f32.vlgmr.msrb.gmra.mxu0 %vm6691_vm5, %v3680_v18 }
 0xab7   : > { %v3522_v32 = vpop.permute.xlu2 %3521 }
 0xabf   : > { %v3615_v38 = vpop.permute.xlu2 %3614 }
 0xacf   : > { %v3491_v35 = vpop.permute.xlu0 %3490 }
 0xad0   : > { %3493 = vst.msk [vmem:[#allocation3 + $0x8] sm:$0xff] %vm1664_vm2, %v3491_v35  ;;  %v3553_v24 = vpop.permute.xlu1 %3552  ;;  %vm6697_vm2 = vmmov %vm6691_vm5  ;;  %v3777_v35 = vperm.slane %v5113_v17, 5 }
 0xad1   : > { %3524 = vst.msk [vmem:[#allocation3 + $0x8] sm:$0xff] %vm1696_vm3, %v3522_v32  ;;  %vm6698_vm3 = vmmov %vm6697_vm2 }
 0xad2   : > { %3555 = vst.msk [vmem:[#allocation3 + $0x8] sm:$0xff] %vm1728_vm4, %v3553_v24  ;;  %vm6699_vm4 = vmmov %vm6697_vm2 }
 0xad3   : > { %vm6700_vm1 = vmmov %vm6697_vm2 }
 0xad4   : > { %vm6701_vm6 = vmmov %vm6700_vm1 }
 0xad5   : > { %vm6702_vm7 = vmmov %vm6700_vm1 }
 0xad7   : > { %v3584_v23 = vpop.permute.xlu0 %3583 }
 0xad8   : > { %3586 = vst.msk [vmem:[#allocation3 + $0x8] sm:$0xff] %vm6692_vm0, %v3584_v23 }
 0xad9   : > { %3617 = vst.msk [vmem:[#allocation3 + $0x8] sm:$0xff] %vm6693_vm10, %v3615_v38  ;;  %vm6703_vm10 = vmmov %vm6700_vm1 }
 0xadf   : > { %v3646_v4 = vpop.permute.xlu1 %3645  ;;  %v3677_v7 = vpop.permute.xlu0 %3676 }
 0xae0   : > { %3648 = vst.msk [vmem:[#allocation3 + $0x8] sm:$0xff] %vm6694_vm11, %v3646_v4  ;;  %vm6704_vm11 = vmmov %vm6700_vm1 }
 0xae1   : > { %3679 = vst.msk [vmem:[#allocation3 + $0x8] sm:$0xff] %vm6695_vm12, %v3677_v7 }
 0xae8   : > { %v3681_v8 = vld [vmem:[#allocation3 + $0x8] sm:$0xff] }
 0xae9   : > { %4678 = vmatmul.msk.f32.gmra.mxu0 %vm6696_vm13, %v3681_v8 }
 0xb17   : > { %v3722_v53 = vpop.f32.mrf.mxu0 }
 0xb18   : > { %v3723_v9 = vadd.f32 %v3722_v53, %v3682_v22 }
 0xb1a   : > { %v6503_v54 = vadd.f32 %v3723_v9, %v6021_v30 }
 0xb1c   : > { %v3730_v6 = vsel %vm6697_vm2, %v6503_v54, 0.0 }
 0xb1d   : > { %3731 = vadd.xlane.f32.xlu2 %v3730_v6 }
 0xb66   : > { %v3725_v42 = vpop.f32.mrf.mxu0 }
 0xb67   : > { %v3726_v57 = vadd.f32 %v3725_v42, %v3682_v22 }
 0xb69   : > { %v6508_v27 = vadd.f32 %v3726_v57, %v6025_v28 }
 0xb6b   : > { %v3733_v49 = vsel %vm6698_vm3, %v6508_v27, 0.0 }
 0xb6c   : > { %3734 = vadd.xlane.f32.xlu1 %v3733_v49 }
 0xb90   : > { %v3732_v19 = vpop.xlane.xlu2 %3731 }
 0xb91   : > { %v3736_v30 = vmul.f32 0.015625, %v3732_v19 }
 0xb93   : > { %v3738_v51 = vsub.f32 %v6503_v54, %v3736_v30 }
 0xb95   : > { %v3740_v48 = vmul.f32 %v3738_v51, %v3738_v51 }
 0xb97   : > { %v3742_v60 = vsel %vm6699_vm4, %v3740_v48, 0.0  ;;  %v4836_v48 = vld [vmem:[%s5542_s30 + $0x38] sm:$0xff] }
 0xb98   : > { %3743 = vadd.xlane.f32.xlu0 %v3742_v60  ;;  %4158 = vmatpush.bf16.msrb.mxu3 %v4836_v48 }
 0xbdf   : > { %v3735_v46 = vpop.xlane.xlu1 %3734 }
 0xbe0   : > { %v3737_v28 = vmul.f32 0.015625, %v3735_v46  ;;  %v4835_v46 = vld [vmem:[%s5542_s30 + $0x30] sm:$0xff] }
 0xbe1   : > { %4159 = vmatpush.bf16.msrb.mxu3 %v4835_v46 }
 0xbe2   : > { %v6515_v47 = vsub.f32 %v6508_v27, %v3737_v28 }
 0xbe4   : > { %v3741_v11 = vmul.f32 %v6515_v47, %v6515_v47 }
 0xbe5   : > { %4160 = vmatpush.bf16.msrb.mxu3 %v4834_v5 }
 0xbe6   : > { %v3745_v52 = vsel %vm6700_vm1, %v3741_v11, 0.0  ;;  %v4844_v11 = vld [vmem:[%s5542_s30 + $0x78] sm:$0xff] }
 0xbe7   : > { %3746 = vadd.xlane.f32.xlu2 %v3745_v52  ;;  %4173 = vmatpush.bf16.msra.mxu0 %v4844_v11 }
 0xbe9   : > { %4161 = vmatpush.bf16.msrb.mxu3 %v4833_v10 }
 0xbeb   : > { %4174 = vmatpush.bf16.msra.mxu0 %v4843_v40 }
 0xbed   : > { %4162 = vmatpush.bf16.msrb.mxu3 %v4832_v3 }
 0xbef   : > { %4175 = vmatpush.bf16.msra.mxu0 %v4842_v41 }
 0xbf1   : > { %4163 = vmatpush.bf16.msrb.mxu3 %v4831_v34 }
 0xbf3   : > { %4176 = vmatpush.bf16.msra.mxu0 %v4841_v1 }
 0xbf5   : > { %4164 = vmatpush.bf16.msrb.mxu3 %v4830_v55 }
 0xbf7   : > { %4177 = vmatpush.bf16.msra.mxu0 %v4840_v43 }
 0xbfb   : > { %4178 = vmatpush.bf16.msra.mxu0 %v4839_v26 }
 0xc0b   : > { %v3744_v21 = vpop.xlane.xlu0 %3743 }
 0xc0c   : > { %v3748_v62 = vmul.f32 0.015625, %v3744_v21 }
 0xc0e   : > { %v3750_v39 = vadd.f32 1e-05, %v3748_v62 }
 0xc10   : > { %5088 = vrsqrt.f32 %v3750_v39  ;;  %vm3758_vm9 = vweird.f32 %v3750_v39 }
 0xc16   : > { %v5089_v44 = vpop.eup %5088 }
 0xc17   : > { %v3753_v25 = vmul.f32 %v5089_v44, %v3750_v39  ;;  %vm3759_vm14 = vweird.f32 %v5089_v44  ;;  %v4829_v39 = vld [vmem:[%s5542_s30] sm:$0xff] }
 0xc18   : > { %vm3760_vm8 = vmor %vm3758_vm9, %vm3759_vm14  ;;  %4165 = vmatpush.bf16.msrb.mxu3 %v4829_v39 }
 0xc19   : > { %v3754_v29 = vmul.f32 %v5089_v44, %v3753_v25 }
 0xc1b   : > { %v3755_v15 = vmul.f32 0.5, %v3754_v29 }
 0xc1d   : > { %v3756_v16 = vsub.f32 1.5, %v3755_v15 }
 0xc1f   : > { %v3757_v59 = vmul.f32 %v5089_v44, %v3756_v16  ;;  %v4838_v16 = vld [vmem:[%s5542_s30 + $0x48] sm:$0xff] }
 0xc20   : > { %4179 = vmatpush.bf16.msra.mxu0 %v4838_v16 }
 0xc21   : > { %v3761_v18 = vsel %vm3760_vm8, %v5089_v44, %v3757_v59 }
 0xc22   : > { %v3772_v32 = vmul.f32 %v3761_v18, %v3738_v51  ;;  %v6543_v51 = vld [vmem:[%s5547_s1] sm:$0x3] }
 0xc23   : > { %v3790_v60 = vperm.slane %v6543_v51, 0  ;;  %v3791_v56 = vperm.slane %v6543_v51, 1 }
 0xc24   : > { %v3775_v24 = vmul.f32 %v3774_v13, %v3772_v32 }
 0xc26   : > { %v3778_v23 = vadd.f32 %v3777_v35, %v3775_v24 }
 0xc28   : > { %4711 = vmatmul.msk.f32.vlgmr.msrb.gmra.mxu1 %vm6701_vm6, %v3778_v23  ;;  %4713 = vmatmul.msk.f32.vlgmr.msra.gmra.mxu2 %vm6702_vm7, %v3778_v23 }
 0xc5a   : > { %v3747_v38 = vpop.xlane.xlu2 %3746 }
 0xc5b   : > { %v3749_v4 = vmul.f32 0.015625, %v3747_v38  ;;  %v4837_v38 = vld [vmem:[%s5542_s30 + $0x40] sm:$0xff] }
 0xc5c   : > { %4180 = vmatpush.bf16.msra.mxu0 %v4837_v38 }
 0xc5d   : > { %v3751_v7 = vadd.f32 1e-05, %v3749_v4 }
 0xc5f   : > { %5090 = vrsqrt.f32 %v3751_v7  ;;  %vm3768_vm5 = vweird.f32 %v3751_v7 }
 0xc65   : > { %v5091_v8 = vpop.eup %5090 }
 0xc66   : > { %v3763_v22 = vmul.f32 %v5091_v8, %v3751_v7  ;;  %vm3769_vm15 = vweird.f32 %v5091_v8 }
 0xc67   : > { %vm3770_vm0 = vmor %vm3768_vm5, %vm3769_vm15 }
 0xc68   : > { %v3764_v53 = vmul.f32 %v5091_v8, %v3763_v22 }
 0xc6a   : > { %v3765_v9 = vmul.f32 0.5, %v3764_v53 }
 0xc6c   : > { %v3766_v6 = vsub.f32 1.5, %v3765_v9 }
 0xc6e   : > { %v3767_v42 = vmul.f32 %v5091_v8, %v3766_v6 }
 0xc70   : > { %v3771_v57 = vsel %vm3770_vm0, %v5091_v8, %v3767_v42 }
 0xc71   : > { %v3773_v49 = vmul.f32 %v3771_v57, %v6515_v47 }
 0xc73   : > { %v3776_v19 = vmul.f32 %v3774_v13, %v3773_v49 }
 0xc75   : > { %v3779_v30 = vadd.f32 %v3777_v35, %v3776_v19 }
 0xc77   : > { %4712 = vmatmul.msk.f32.gmra.mxu1 %vm6703_vm10, %v3779_v30  ;;  %4714 = vmatmul.msk.f32.gmra.mxu2 %vm6704_vm11, %v3779_v30 }
 0xca5   : > { %v3849_v28 = vpop.f32.mrf.mxu1 }
 0xca6   : > { %v6550_v47 = vadd.f32 %v3849_v28, %v3790_v60 }
 0xca8   : > { %v6554_v52 = vmul.f32 0.70710677, %v6550_v47 }
 0xcaa   : > { %v3878_v36 = vand.u32 2147483647, %v6554_v52  ;;  %vm4010_vm8 = vcmp.ge.f32.partialorder %v6554_v52, 0.0 }
 0xcab   : > { %v3864_v20 = vpop.f32.mrf.mxu2 }
 0xcac   : > { %v3882_v12 = vmul.f32 0.3275911, %v3878_v36  ;;  %v6562_v0 = vadd.f32 %v3864_v20, %v3791_v56  ;;  %v3986_v13 = vsub.f32 0.0, %v3878_v36 }
 0xcae   : > { %v3886_v33 = vadd.f32 1.0, %v3882_v12  ;;  %v6566_v50 = vmul.f32 0.70710677, %v6562_v0  ;;  %v3990_v7 = vmul.f32 %v3986_v13, %v3878_v36  ;;  %v3871_v39 = vmul.f32 0.5, %v6562_v0 }
 0xcb0   : > { %5092 = vrcp.f32 %v3886_v33  ;;  %v3879_v37 = vand.u32 2147483647, %v6566_v50  ;;  %v3901_v45 = vand.u32 2147483648, %v3886_v33  ;;  %v3899_v62 = vand.u32 2147483647, %v3886_v33 }
 0xcb1   : > { %vm3895_vm13 = vweird.f32 %v3886_v33  ;;  %v3994_v49 = vmul.f32 1.442695, %v3990_v7  ;;  %vm4011_vm6 = vcmp.ge.f32.partialorder %v6566_v50, 0.0 }
 0xcb2   : > { %v3883_v63 = vmul.f32 0.3275911, %v3879_v37  ;;  %v3902_v29 = vor.u32 1.1754944e-38, %v3901_v45  ;;  %vm3900_vm3 = vcmp.eq.f32.partialorder %v3899_v62, 8.507059e+37  ;;  %v3987_v57 = vsub.f32 0.0, %v3879_v37 }
 0xcb4   : > { %v3887_v58 = vadd.f32 1.0, %v3883_v63  ;;  %v3991_v28 = vmul.f32 %v3987_v57, %v3879_v37 }
 0xcb6   : > { %v5093_v61 = vpop.eup %5092  ;;  %5094 = vrcp.f32 %v3887_v58  ;;  %v3916_v35 = vand.u32 2147483648, %v3887_v58  ;;  %v3914_v23 = vand.u32 2147483647, %v3887_v58  ;;  %vm3910_vm1 = vweird.f32 %v3887_v58 }
 0xcb7   : > { %v3891_v14 = vmul.f32 %v5093_v61, %v3886_v33  ;;  %vm3896_vm12 = vweird.f32 %v5093_v61  ;;  %5096 = vpow2.f32 %v3994_v49  ;;  %v3996_v20 = vmul.f32 1.442695, %v3991_v28 }
 0xcb8   : > { %vm3897_vm2 = vmor %vm3895_vm13, %vm3896_vm12  ;;  %v3917_v53 = vor.u32 1.1754944e-38, %v3916_v35  ;;  %vm3915_vm9 = vcmp.eq.f32.partialorder %v3914_v23, 8.507059e+37 }
 0xcb9   : > { %v3892_v2 = vsub.f32 1.0, %v3891_v14  ;;  %5098 = vpow2.f32 %v3996_v20  ;;  %v3870_v14 = vmul.f32 0.5, %v6550_v47 }
 0xcbb   : > { %v3893_v21 = vmul.f32 %v5093_v61, %v3892_v2 }
 0xcbc   : > { %v5095_v44 = vpop.eup %5094 }
 0xcbd   : > { %v3894_v25 = vadd.f32 %v5093_v61, %v3893_v21  ;;  %v3906_v15 = vmul.f32 %v5095_v44, %v3887_v58  ;;  %vm3911_vm4 = vweird.f32 %v5095_v44  ;;  %v5097_v33 = vpop.eup %5096 }
 0xcbe   : > { %vm3912_vm14 = vmor %vm3910_vm1, %vm3911_vm4  ;;  %vm6705_vm4 = vcmask 523264  }
 0xcbf   : > { %v3898_v59 = vsel %vm3897_vm2, %v5093_v61, %v3894_v25  ;;  %v3907_v18 = vsub.f32 1.0, %v3906_v15  ;;  %v5099_v37 = vpop.eup %5098  ;;  %vm6706_vm1 = vmmov %vm6705_vm4 }
 0xcc0   : > { %v3903_v17 = vsel %vm3900_vm3, %v3902_v29, %v3898_v59 }
 0xcc1   : > { %v3950_v32 = vmul.f32 1.0614054, %v3903_v17  ;;  %v3908_v24 = vmul.f32 %v5095_v44, %v3907_v18 }
 0xcc3   : > { %v3954_v4 = vadd.f32 -1.4531521, %v3950_v32  ;;  %v3909_v8 = vadd.f32 %v5095_v44, %v3908_v24 }
 0xcc5   : > { %v3958_v22 = vmul.f32 %v3954_v4, %v3903_v17  ;;  %v3913_v9 = vsel %vm3912_vm14, %v5095_v44, %v3909_v8 }
 0xcc6   : > { %v3918_v42 = vsel %vm3915_vm9, %v3917_v53, %v3913_v9 }
 0xcc7   : > { %v3962_v6 = vadd.f32 1.4214138, %v3958_v22  ;;  %v3951_v19 = vmul.f32 1.0614054, %v3918_v42 }
 0xcc9   : > { %v3966_v30 = vmul.f32 %v3962_v6, %v3903_v17  ;;  %v3955_v48 = vadd.f32 -1.4531521, %v3951_v19 }
 0xccb   : > { %v3970_v46 = vadd.f32 -0.28449672, %v3966_v30  ;;  %v3959_v11 = vmul.f32 %v3955_v48, %v3918_v42 }
 0xccd   : > { %v3974_v5 = vmul.f32 %v3970_v46, %v3903_v17  ;;  %v3963_v36 = vadd.f32 1.4214138, %v3959_v11 }
 0xccf   : > { %v3978_v40 = vadd.f32 0.2548296, %v3974_v5  ;;  %v3967_v12 = vmul.f32 %v3963_v36, %v3918_v42 }
 0xcd1   : > { %v3982_v10 = vmul.f32 %v3978_v40, %v3903_v17  ;;  %v3971_v41 = vadd.f32 -0.28449672, %v3967_v12 }
 0xcd3   : > { %v4002_v3 = vmul.f32 %v5097_v33, %v3982_v10  ;;  %v3975_v1 = vmul.f32 %v3971_v41, %v3918_v42 }
 0xcd5   : > { %v4006_v63 = vsub.f32 1.0, %v4002_v3  ;;  %v3979_v34 = vadd.f32 0.2548296, %v3975_v1 }
 0xcd7   : > { %v4014_v58 = vsub.f32 0.0, %v4006_v63  ;;  %v3983_v61 = vmul.f32 %v3979_v34, %v3918_v42 }
 0xcd9   : > { %v4018_v43 = vsel %vm4010_vm8, %v4006_v63, %v4014_v58  ;;  %v4003_v2 = vmul.f32 %v5099_v37, %v3983_v61 }
 0xcda   : > { %v4022_v55 = vadd.f32 1.0, %v4018_v43 }
 0xcdb   : > { %v4007_v26 = vsub.f32 1.0, %v4003_v2 }
 0xcdc   : > { %v4026_v45 = vmul.f32 %v4022_v55, %v3870_v14 }
 0xcdd   : > { %v4015_v21 = vsub.f32 0.0, %v4007_v26 }
 0xcde   : > { %4166 = vmatmul.f32.vlgmr.msrb.gmra.mxu3 %v4026_v45 }
 0xcdf   : > { %v4019_v62 = vsel %vm4011_vm6, %v4007_v26, %v4015_v21 }
 0xce0   : > { %v4023_v44 = vadd.f32 1.0, %v4019_v62 }
 0xce2   : > { %v4027_v25 = vmul.f32 %v4023_v44, %v3871_v39 }
 0xce4   : > { %4181 = vmatmul.f32.vlgmr.msra.gmra.mxu0 %v4027_v25 }
 0xcf4   : > { %v3852_v52 = vpop.f32.mrf.mxu1 }
 0xcf5   : > { %v6585_v29 = vadd.f32 %v3852_v52, %v3790_v60 }
 0xcf7   : > { %v6588_v47 = vmul.f32 0.70710677, %v6585_v29 }
 0xcf9   : > { %v3880_v15 = vand.u32 2147483647, %v6588_v47  ;;  %vm4012_vm2 = vcmp.ge.f32.partialorder %v6588_v47, 0.0 }
 0xcfa   : > { %v3867_v16 = vpop.f32.mrf.mxu2 }
 0xcfb   : > { %v3884_v59 = vmul.f32 0.3275911, %v3880_v15  ;;  %v6593_v50 = vadd.f32 %v3867_v16, %v3791_v56  ;;  %v3988_v9 = vsub.f32 0.0, %v3880_v15  ;;  %v3872_v16 = vmul.f32 0.5, %v6585_v29 }
 0xcfd   : > { %v3888_v0 = vadd.f32 1.0, %v3884_v59  ;;  %v6596_v17 = vmul.f32 0.70710677, %v6593_v50  ;;  %v3992_v46 = vmul.f32 %v3988_v9, %v3880_v15 }
 0xcff   : > { %5100 = vrcp.f32 %v3888_v0  ;;  %v3881_v13 = vand.u32 2147483647, %v6596_v17  ;;  %v3931_v23 = vand.u32 2147483648, %v3888_v0  ;;  %v3929_v4 = vand.u32 2147483647, %v3888_v0 }
 0xd00   : > { %vm3925_vm15 = vweird.f32 %v3888_v0  ;;  %v3998_v10 = vmul.f32 1.442695, %v3992_v46  ;;  %vm4013_vm3 = vcmp.ge.f32.partialorder %v6596_v17, 0.0 }
 0xd01   : > { %v3885_v60 = vmul.f32 0.3275911, %v3881_v13  ;;  %v3932_v8 = vor.u32 1.1754944e-38, %v3931_v23  ;;  %vm3930_vm0 = vcmp.eq.f32.partialorder %v3929_v4, 8.507059e+37  ;;  %v3989_v36 = vsub.f32 0.0, %v3881_v13 }
 0xd02   : > { %v4190_v4 = vperm.slane %v6499_v31, 6 }
 0xd03   : > { %v3889_v18 = vadd.f32 1.0, %v3885_v60  ;;  %v3993_v3 = vmul.f32 %v3989_v36, %v3881_v13 }
 0xd05   : > { %v5101_v32 = vpop.eup %5100  ;;  %5102 = vrcp.f32 %v3889_v18  ;;  %v3946_v42 = vand.u32 2147483648, %v3889_v18  ;;  %v3944_v19 = vand.u32 2147483647, %v3889_v18  ;;  %vm3940_vm11 = vweird.f32 %v3889_v18 }
 0xd06   : > { %v3921_v35 = vmul.f32 %v5101_v32, %v3888_v0  ;;  %vm3926_vm7 = vweird.f32 %v5101_v32  ;;  %5104 = vpow2.f32 %v3998_v10  ;;  %v4000_v61 = vmul.f32 1.442695, %v3993_v3 }
 0xd07   : > { %vm3927_vm5 = vmor %vm3925_vm15, %vm3926_vm7  ;;  %v3947_v28 = vor.u32 1.1754944e-38, %v3946_v42  ;;  %vm3945_vm13 = vcmp.eq.f32.partialorder %v3944_v19, 8.507059e+37 }
 0xd08   : > { %v3922_v24 = vsub.f32 1.0, %v3921_v35  ;;  %5106 = vpow2.f32 %v4000_v61 }
 0xd0a   : > { %v3923_v38 = vmul.f32 %v5101_v32, %v3922_v24 }
 0xd0b   : > { %v5103_v51 = vpop.eup %5102 }
 0xd0c   : > { %v3936_v56 = vmul.f32 %v5103_v51, %v3889_v18  ;;  %v3924_v7 = vadd.f32 %v5101_v32, %v3923_v38  ;;  %vm3941_vm10 = vweird.f32 %v5103_v51  ;;  %v5105_v2 = vpop.eup %5104 }
 0xd0d   : > { %vm3942_vm12 = vmor %vm3940_vm11, %vm3941_vm10 }
 0xd0e   : > { %v3937_v22 = vsub.f32 1.0, %v3936_v56  ;;  %v3928_v53 = vsel %vm3927_vm5, %v5101_v32, %v3924_v7  ;;  %v5107_v25 = vpop.eup %5106  ;;  %v3873_v32 = vmul.f32 0.5, %v6593_v50 }
 0xd0f   : > { %v3933_v6 = vsel %vm3930_vm0, %v3932_v8, %v3928_v53 }
 0xd10   : > { %v3938_v57 = vmul.f32 %v5103_v51, %v3937_v22  ;;  %v3952_v49 = vmul.f32 1.0614054, %v3933_v6 }
 0xd12   : > { %v3956_v30 = vadd.f32 -1.4531521, %v3952_v49  ;;  %v3939_v48 = vadd.f32 %v5103_v51, %v3938_v57 }
 0xd14   : > { %v3960_v11 = vmul.f32 %v3956_v30, %v3933_v6  ;;  %v3943_v5 = vsel %vm3942_vm12, %v5103_v51, %v3939_v48 }
 0xd15   : > { %v3948_v40 = vsel %vm3945_vm13, %v3947_v28, %v3943_v5 }
 0xd16   : > { %v3964_v20 = vadd.f32 1.4214138, %v3960_v11  ;;  %v3953_v12 = vmul.f32 1.0614054, %v3948_v40 }
 0xd18   : > { %v3968_v33 = vmul.f32 %v3964_v20, %v3933_v6  ;;  %v3957_v41 = vadd.f32 -1.4531521, %v3953_v12 }
 0xd1a   : > { %v3972_v1 = vadd.f32 -0.28449672, %v3968_v33  ;;  %v3961_v63 = vmul.f32 %v3957_v41, %v3948_v40 }
 0xd1c   : > { %v3976_v34 = vmul.f32 %v3972_v1, %v3933_v6  ;;  %v3965_v58 = vadd.f32 1.4214138, %v3961_v63 }
 0xd1e   : > { %v3980_v37 = vadd.f32 0.2548296, %v3976_v34  ;;  %v3969_v43 = vmul.f32 %v3965_v58, %v3948_v40 }
 0xd20   : > { %v3984_v14 = vmul.f32 %v3980_v37, %v3933_v6  ;;  %v3973_v55 = vadd.f32 -0.28449672, %v3969_v43 }
 0xd22   : > { %v4004_v45 = vmul.f32 %v5105_v2, %v3984_v14  ;;  %v3977_v26 = vmul.f32 %v3973_v55, %v3948_v40 }
 0xd24   : > { %v4008_v21 = vsub.f32 1.0, %v4004_v45  ;;  %v3981_v62 = vadd.f32 0.2548296, %v3977_v26 }
 0xd26   : > { %v4016_v39 = vsub.f32 0.0, %v4008_v21  ;;  %v3985_v44 = vmul.f32 %v3981_v62, %v3948_v40 }
 0xd28   : > { %v4020_v52 = vsel %vm4012_vm2, %v4008_v21, %v4016_v39  ;;  %v4005_v15 = vmul.f32 %v5107_v25, %v3985_v44 }
 0xd29   : > { %v4024_v59 = vadd.f32 1.0, %v4020_v52 }
 0xd2a   : > { %v4009_v0 = vsub.f32 1.0, %v4005_v15 }
 0xd2b   : > { %v4028_v13 = vmul.f32 %v4024_v59, %v3872_v16 }
 0xd2c   : > { %v4017_v60 = vsub.f32 0.0, %v4009_v0 }
 0xd2d   : > { %4169 = vmatmul.f32.gmra.mxu3 %v4028_v13 }
 0xd2e   : > { %v4021_v18 = vsel %vm4013_vm3, %v4009_v0, %v4017_v60 }
 0xd2f   : > { %v4025_v35 = vadd.f32 1.0, %v4021_v18 }
 0xd31   : > { %v4029_v24 = vmul.f32 %v4025_v35, %v3873_v32 }
 0xd33   : > { %4184 = vmatmul.f32.gmra.mxu0 %v4029_v24 }
 0xd61   : > { %v4167_v23 = vpop.f32.mrf.mxu3  ;;  %v4182_v38 = vpop.f32.mrf.mxu0 }
 0xd62   : > { %v4183_v47 = vadd.f32 %v4182_v38, %v4167_v23 }
 0xd64   : > { %v4188_v29 = vadd.f32 %v4183_v47, %v6503_v54 }
 0xd66   : > { %v4191_v51 = vadd.f32 %v4190_v4, %v4188_v29 }
 0xd68   : > { %4193 = vst.msk [vmem:[#allocation2] sm:$0xff] %vm6705_vm4, %v4191_v51 }
 0xdb0   : > { %v4170_v56 = vpop.f32.mrf.mxu3  ;;  %v4185_v7 = vpop.f32.mrf.mxu0 }
 0xdb1   : > { %v4186_v17 = vadd.f32 %v4185_v7, %v4170_v56 }
 0xdb3   : > { %v4189_v8 = vadd.f32 %v4186_v17, %v6508_v27  ;;  %4198 = sbr.rel (%p4779_p3) target bundleno = 3515 (0xdbb), region = 80 }
 0xdb5   : > { %v4192_v22 = vadd.f32 %v4190_v4, %v4189_v8 }
 0xdb7   : > { %4194 = vst.msk [vmem:[#allocation2 + $0x8] sm:$0xff] %vm6706_vm1, %v4192_v22 }
 0xdb8   : > { %vm6707_vm14 = vcmask 523264  }
 0xdb9   : > { %4199 = vst.msk [vmem:[#allocation11] sm:$0xff] %vm6707_vm14, %v4191_v51  ;;  %vm6708_vm9 = vmmov %vm6707_vm14 }
 0xdba   : > { %4200 = vst.msk [vmem:[#allocation11 + $0x8] sm:$0xff] %vm6708_vm9, %v4192_v22 }
 0xdbb PF: > { %p4880_p4 = scmp.eq.s32.totalorder %s5427_s15, 1  ;;  %s6709_s26 = sld [smem:[#allocation23_spill]] }
 0xdbc   : > { %s5346_s1 = smov [#allocation11]   ;;  %s5347_s11 = smov 128  }
 0xdbd   : > { %s4209_s3 = sshll.u32 %s5346_s1, 4  ;;  %s4210_s3 = int_to_ptr.vmem [resolvable:$true] %s4209_s3 }
 0xdc1   : > { %s4211_s30 = sshll.u32 %s6709_s26, 4  ;;  %s4212_s30 = int_to_ptr.hbm [resolvable:$true] %s4211_s30 }
 0xdc2   : > { %4858 = dma.vmem_to_hbm [thread:$0]  (%p4880_p4), %s4210_s3, 256, %s4212_s30, [#allocation6], %s5347_s11, %s5347_s11, %s5340_s0  }
 0xdc3   : > { %5299 = dma.done.wait (%p4880_p4), [#allocation6], 256  }
 0xdc4   : > { %5301 = vsyncadd (%p4880_p4), [#allocation6], 4294967040 }
 0xdc5 PF: > { %s22_s14 = sadd.s32 1, %s5324_s14   ;;  %s6710_s12 = sld [smem:[#allocation16_spill]] }
 0xdc6   : > { %p19_p5 = scmp.ge.s32.totalorder %s22_s14, 4   ;;  %s6711_s11 = sld [smem:[#allocation18_spill]] }
 0xdc7   : > { %s6712_s15 = sld [smem:[#allocation17_spill]]  ;;  %s6713_s30 = smov %s5308_s10 }
 0xdc9   :  { %21 = sbr.rel (!%p19_p5) target bundleno = 11 (0xb), region = 140 }
 0xdcb   : > { %s6714_s10 = smov %s6710_s12  ;;  %s6715_s12 = smov %s5320_s13 }
 0xdcd   : > { %s6716_s13 = smov %s6712_s15 }
 0xdce   :  { %4228 = vsyncpa [#allocation5], 1 }
 0xdcf   :  { %4230 = vsyncpa [#allocation5 + $0x1], 1 }
 0xdd0   :  { %4231 = vsyncpa [#allocation8], 1 }
 0xdd1   :  { %4232 = vsyncpa [#allocation6], 1 }
 0xdd2   :  { %4234 = vsyncpa [#allocation6 + $0x1], 1 }

</bundles_post_ra>
